<compile_context>
chip_gen: v6e
topology: v6e:2x2x1
jax: 0.10.0
libtpu: 0.0.40
codegen_flags: <defaults>
</compile_context>

<pallas_src>
import functools

import jax
import jax.numpy as jnp
from jax.experimental import pallas as pl
from jax.experimental.pallas import tpu as pltpu


def _round_up(x, m):
    return ((x + m - 1) // m) * m


def _layer_norm(x, gamma, beta, eps=1e-5):
    mean = jnp.mean(x, axis=-1, keepdims=True)
    var = jnp.mean((x - mean) ** 2, axis=-1, keepdims=True)
    return (x - mean) * jax.lax.rsqrt(var + eps) * gamma + beta


def _const_index_map(ndim, b):
    return (0,) * ndim


def _decoder_layer_kernel(n_head, d_k, d_v, return_attns, *refs):
    (dec_ref, enc_ref, npm_ref, slf_mask_ref, de_mask_ref,
     w_sg, b_sg, s_wo, s_bo, s_lng, s_lnb,
     e_wq, e_bq, w_ekv, b_ekv, e_wo, e_bo, e_lng, e_lnb,
     f_w1, f_b1, f_w2, f_b2, f_lng, f_lnb) = refs[:25]
    out_ref = refs[25]
    slf_attn_ref = refs[26] if return_attns else None
    enc_attn_ref = refs[27] if return_attns else None

    bf = jnp.bfloat16
    Bt, N, D = dec_ref.shape
    _, M, _ = enc_ref.shape
    hk = n_head * d_k
    hv = n_head * d_v
    hk_p = _round_up(hk, 128)           # 128-aligned fused-projection segments
    hv_p = _round_up(hv, 128)

    # Flatten the batch tile into the matmul M dimension (MXU row utilization).
    dec2 = dec_ref[...].reshape(Bt * N, D)           # (Bt*N, D) f32
    enc2 = enc_ref[...].reshape(Bt * M, D)           # (Bt*M, D) f32
    npm2 = npm_ref[...].reshape(Bt * N, 1)           # (Bt*N, 1) f32

    neg = jnp.float32(-1e30)                         # finite -> no NaN rows
    slf_bias = slf_mask_ref[...].astype(jnp.float32) * neg     # (Bt, N, N)
    de_bias = de_mask_ref[...].astype(jnp.float32) * neg       # (Bt, N, M)

    def split_heads(x2d, dh):
        # (Bt*L, H*dh) -> (H*Bt, L, dh): one lane<->sublane transpose, one
        # batched minormost transpose, and free major-dim re-factorings.
        L = x2d.shape[0] // Bt
        xt = x2d.T.reshape(n_head, dh, Bt * L)       # (H, dh, Bt*L)
        xt = jnp.transpose(xt, (0, 2, 1))            # (H, Bt*L, dh)
        return xt.reshape(n_head * Bt, L, dh)        # (H*Bt, L, dh)

    def attention(q, k, v, bias, wo3, bo, lng, lnb, residual, attn_ref):
        # q: (Bt*N, hk), k/v: (Bt*Lk, hk/hv), bias: (Bt, N, Lk)
        Lk = bias.shape[-1]
        qh = split_heads(q, d_k).astype(bf)          # (G, N, dk), G = H*Bt
        kh = split_heads(k, d_k).astype(bf)          # (G, Lk, dk)
        vh = split_heads(v, d_v).astype(bf)          # (G, Lk, dv)

        s = jnp.einsum('gqd,gkd->gqk', qh, kh,
                       preferred_element_type=jnp.float32)      # (G, N, Lk)
        s = (s.reshape(n_head, Bt, N, Lk) + bias[None]) \
            .reshape(n_head * Bt, N, Lk)
        s = s - jnp.max(s, axis=-1, keepdims=True)
        p = jnp.exp(s)
        # Exact normalization (stored maps sum to 1); sum is only (G, N, 1).
        attn = p * (1.0 / jnp.sum(p, axis=-1, keepdims=True))

        if attn_ref is not None:
            # Head-major bf16 writeback: one batched store per attention stage.
            attn_ref[...] = attn.reshape(n_head, Bt, N, Lk).astype(attn_ref.dtype)

        ctx = jnp.einsum('gqk,gkd->gqd', attn.astype(bf), vh,
                         preferred_element_type=jnp.float32)    # (G, N, dv)
        # Fuse head-merge into the output projection: no XLU transposes.
        ctx_h = ctx.reshape(n_head, Bt * N, d_v).astype(bf)     # (H, Bt*N, dv)
        proj = jnp.einsum('hnd,hdk->hnk', ctx_h, wo3[...],
                          preferred_element_type=jnp.float32)   # (H, Bt*N, D)
        o = jnp.sum(proj, axis=0) + bo[...]
        return _layer_norm(o + residual, lng[...], lnb[...])

    # --- 1) fused self-attn QKV + highway-gate projection (padded segments) --
    sg = jnp.dot(dec2.astype(bf), w_sg[...],
                 preferred_element_type=jnp.float32) + b_sg[...]
    q = sg[:, :hk]
    k = sg[:, hk_p:hk_p + hk]
    v = sg[:, 2 * hk_p:2 * hk_p + hv]
    gate_pre = sg[:, 2 * hk_p + hv_p:2 * hk_p + hv_p + D]

    x = attention(q, k, v, slf_bias, s_wo, s_bo, s_lng, s_lnb, dec2,
                  slf_attn_ref)
    x = x * npm2

    # --- 2) decoder-encoder attention (fused, padded K/V projection) ---------
    eq = jnp.dot(x.astype(bf), e_wq[...],
                 preferred_element_type=jnp.float32) + e_bq[...]
    ekv = jnp.dot(enc2.astype(bf), w_ekv[...],
                  preferred_element_type=jnp.float32) + b_ekv[...]
    ek = ekv[:, :hk]
    ev = ekv[:, hk_p:hk_p + hv]

    x = attention(eq, ek, ev, de_bias, e_wo, e_bo, e_lng, e_lnb, x,
                  enc_attn_ref)
    x = x * npm2

    # --- 3) positionwise FFN (Conv1d k=1 == feature matmul) + LayerNorm ------
    hid = jnp.maximum(
        jnp.dot(x.astype(bf), f_w1[...],
                preferred_element_type=jnp.float32) + f_b1[...], 0.0)
    ffn = jnp.dot(hid.astype(bf), f_w2[...],
                  preferred_element_type=jnp.float32) + f_b2[...]
    ffn = _layer_norm(ffn + x, f_lng[...], f_lnb[...])
    ffn = ffn * npm2

    # --- 4) highway gate: sigmoid(Linear(dec_input)) --------------------------
    gate = jax.nn.sigmoid(gate_pre)
    out = (gate * ffn + (1.0 - gate) * dec2) * npm2
    out_ref[...] = out.reshape(Bt, N, D).astype(out_ref.dtype)


def prepare_params(params, n_head, d_k, d_v):
    """One-time host-side weight fusion, padding, scale-folding and bf16 cast.

    Hoisted out of the per-call path so the forward pass pays no XLA
    concat/cast HBM traffic before the kernel launches.
    """
    (s_wq, s_bq, s_wk, s_bk, s_wv, s_bv, s_wo, s_bo, s_lng, s_lnb,
     e_wq, e_bq, e_wk, e_bk, e_wv, e_bv, e_wo, e_bo, e_lng, e_lnb,
     f_w1, f_b1, f_w2, f_b2, f_lng, f_lnb, g_w, g_b) = params

    bf = jnp.bfloat16
    d_model = s_wq.shape[0]
    hk, hv = n_head * d_k, n_head * d_v
    hk_p = _round_up(hk, 128)
    hv_p = _round_up(hv, 128)
    d_p = _round_up(d_model, 128)
    inv_temp = 1.0 / (float(d_k) ** 0.5)

    def pad_cols(w, b, width):
        n = w.shape[1]
        if n == width:
            return w, b
        wz = jnp.zeros((w.shape[0], width), w.dtype).at[:, :n].set(w)
        bz = jnp.zeros((1, width), b.dtype).at[:, :n].set(b)
        return wz, bz

    # Fold 1/sqrt(d_k) into the query projections (weights AND biases).
    wq_s, bq_s = s_wq * inv_temp, s_bq * inv_temp
    ewq_s, ebq_s = e_wq * inv_temp, e_bq * inv_temp

    # Fused dec-side projection [Wq | Wk | Wv | Wgate], 128-aligned segments.
    wq_p, bq_p = pad_cols(wq_s, bq_s, hk_p)
    wk_p, bk_p = pad_cols(s_wk, s_bk, hk_p)
    wv_p, bv_p = pad_cols(s_wv, s_bv, hv_p)
    gw_p, gb_p = pad_cols(g_w, g_b, d_p)
    w_sg = jnp.concatenate([wq_p, wk_p, wv_p, gw_p], axis=1).astype(bf)
    b_sg = jnp.concatenate([bq_p, bk_p, bv_p, gb_p], axis=1)

    # Fused enc-side projection [Wk | Wv], 128-aligned segments.
    ewk_p, ebk_p = pad_cols(e_wk, e_bk, hk_p)
    ewv_p, ebv_p = pad_cols(e_wv, e_bv, hv_p)
    w_ekv = jnp.concatenate([ewk_p, ewv_p], axis=1).astype(bf)
    b_ekv = jnp.concatenate([ebk_p, ebv_p], axis=1)

    # Output projections reshaped head-major so the head-merge fuses into the
    # projection einsum in-kernel.
    s_wo3 = s_wo.reshape(n_head, d_v, d_model).astype(bf)
    e_wo3 = e_wo.reshape(n_head, d_v, d_model).astype(bf)

    weights = (
        w_sg, b_sg, s_wo3, s_bo, s_lng, s_lnb,
        ewq_s.astype(bf), ebq_s, w_ekv, b_ekv, e_wo3, e_bo, e_lng, e_lnb,
        f_w1.astype(bf), f_b1, f_w2.astype(bf), f_b2, f_lng, f_lnb,
    )
    return jax.tree_util.tree_map(jnp.asarray, weights)


def _pick_batch_tile(B, N, target_rows=256, max_rows=2048):
    """Largest divisor of B with Bt*N <= max_rows, stopping once the MXU M-dim
    target (>=256 rows) is reached."""
    best = 1
    for d in range(1, B + 1):
        if B % d:
            continue
        if d * N > max_rows:
            break
        best = d
        if d * N >= target_rows:
            break
    return best


def trf_decoder_layer(dec_input, enc_output, non_pad_mask, slf_attn_mask,
                      dec_enc_attn_mask, prepared_weights, n_head, d_k, d_v,
                      return_attns=True, batch_tile=None):
    B, N, D = dec_input.shape
    _, M, _ = enc_output.shape

    Bt = batch_tile if batch_tile is not None else _pick_batch_tile(B, N)
    if B % Bt != 0:
        raise ValueError(f"batch_tile={Bt} must divide batch={B}")
    n_tiles = B // Bt

    weights = list(prepared_weights)

    # Masks as int8 (4x less DMA than fp32); kernel rebuilds the additive bias.
    slf_mask_i8 = (slf_attn_mask != 0).astype(jnp.int8)
    de_mask_i8 = (dec_enc_attn_mask != 0).astype(jnp.int8)
    npm_f32 = non_pad_mask.astype(jnp.float32)

    data_specs = [
        pl.BlockSpec((Bt, N, D), lambda b: (b, 0, 0)),   # dec_input
        pl.BlockSpec((Bt, M, D), lambda b: (b, 0, 0)),   # enc_output
        pl.BlockSpec((Bt, N, 1), lambda b: (b, 0, 0)),   # non_pad_mask
        pl.BlockSpec((Bt, N, N), lambda b: (b, 0, 0)),   # slf_attn_mask (int8)
        pl.BlockSpec((Bt, N, M), lambda b: (b, 0, 0)),   # dec_enc_attn_mask
    ]
    # Constant index maps: Pallas DMAs each weight block once for the whole
    # grid (no per-step re-fetch).
    weight_specs = [
        pl.BlockSpec(w.shape, functools.partial(_const_index_map, w.ndim))
        for w in weights
    ]

    out_shapes = [jax.ShapeDtypeStruct((B, N, D), jnp.float32)]
    out_specs = [pl.BlockSpec((Bt, N, D), lambda b: (b, 0, 0))]
    if return_attns:
        # Head-major bf16 maps: the PyTorch (n_head*B, Lq, Lk) view is a free
        # contiguous reshape, and bf16 halves writeback + output buffering.
        out_shapes += [jax.ShapeDtypeStruct((n_head, B, N, N), jnp.bfloat16),
                       jax.ShapeDtypeStruct((n_head, B, N, M), jnp.bfloat16)]
        out_specs += [pl.BlockSpec((n_head, Bt, N, N), lambda b: (0, b, 0, 0)),
                      pl.BlockSpec((n_head, Bt, N, M), lambda b: (0, b, 0, 0))]

    kernel = functools.partial(_decoder_layer_kernel, n_head, d_k, d_v,
                               return_attns)

    outs = pl.pallas_call(
        kernel,
        out_shape=tuple(out_shapes),
        grid=(n_tiles,),
        in_specs=data_specs + weight_specs,
        out_specs=tuple(out_specs),
        compiler_params=pltpu.CompilerParams(
            dimension_semantics=("parallel",),      # batch tiles -> both TCs
            vmem_limit_bytes=64 * 1024 * 1024),     # explicit scoped-VMEM limit
    )(dec_input, enc_output, npm_f32, slf_mask_i8, de_mask_i8, *weights)

    if return_attns:
        dec_out, slf_attn, enc_attn = outs
        slf_attn = slf_attn.reshape(n_head * B, N, N)   # contiguous, no copy
        enc_attn = enc_attn.reshape(n_head * B, N, M)
        return dec_out, (slf_attn, enc_attn)
    dec_out = outs[0] if isinstance(outs, (tuple, list)) else outs
    return dec_out, (None, None)


def build_params(key, d_model, d_inner, n_head, d_k, d_v):
    """Deterministic synthetic parameters (2-D float32 arrays, biases (1, n))."""
    keys = iter(jax.random.split(key, 32))

    def w(shape, scale=0.05):
        return (scale * jax.random.normal(next(keys), shape)).astype(jnp.float32)

    def b(n, scale=0.02):
        return (scale * jax.random.normal(next(keys), (1, n))).astype(jnp.float32)

    def attn_block():
        return [
            w((d_model, n_head * d_k)), b(n_head * d_k),   # w_qs
            w((d_model, n_head * d_k)), b(n_head * d_k),   # w_ks
            w((d_model, n_head * d_v)), b(n_head * d_v),   # w_vs
            w((n_head * d_v, d_model)), b(d_model),        # fc
            jnp.ones((1, d_model), jnp.float32),           # layer_norm gamma
            jnp.zeros((1, d_model), jnp.float32),          # layer_norm beta
        ]

    params = []
    params += attn_block()   # self attention
    params += attn_block()   # enc-dec attention
    params += [
        w((d_model, d_inner)), b(d_inner),                 # w_1 (Conv1d k=1)
        w((d_inner, d_model)), b(d_model),                 # w_2 (Conv1d k=1)
        jnp.ones((1, d_model), jnp.float32),
        jnp.zeros((1, d_model), jnp.float32),
    ]
    params += [w((d_model, d_model)), b(d_model)]          # highway gate Linear
    return params


def _reference(dec_input, enc_output, non_pad_mask, slf_mask, de_mask, params,
               n_head, d_k, d_v):
    """Pure-JAX f32 reference of the PyTorch forward (for validation)."""
    (s_wq, s_bq, s_wk, s_bk, s_wv, s_bv, s_wo, s_bo, s_lng, s_lnb,
     e_wq, e_bq, e_wk, e_bk, e_wv, e_bv, e_wo, e_bo, e_lng, e_lnb,
     f_w1, f_b1, f_w2, f_b2, f_lng, f_lnb, g_w, g_b) = params

    def mha(qx, kx, vx, mask, wq, bq, wk, bk, wv, bv, wo, bo, lng, lnb):
        B, Lq, _ = qx.shape
        Lk = kx.shape[1]
        q = (qx @ wq + bq).reshape(B, Lq, n_head, d_k)
        k = (kx @ wk + bk).reshape(B, Lk, n_head, d_k)
        v = (vx @ wv + bv).reshape(B, Lk, n_head, d_v)
        s = jnp.einsum('bqhd,bkhd->bhqk', q, k) / jnp.sqrt(jnp.float32(d_k))
        s = jnp.where(mask[:, None] > 0, -1e30, s)
        a = jax.nn.softmax(s, axis=-1)
        ctx = jnp.einsum('bhqk,bkhd->bqhd', a, v).reshape(B, Lq, n_head * d_v)
        o = _layer_norm((ctx @ wo + bo) + qx, lng, lnb)
        return o, a

    x, a_slf = mha(dec_input, dec_input, dec_input, slf_mask,
                   s_wq, s_bq, s_wk, s_bk, s_wv, s_bv, s_wo, s_bo, s_lng, s_lnb)
    x = x * non_pad_mask
    x, a_enc = mha(x, enc_output, enc_output, de_mask,
                   e_wq, e_bq, e_wk, e_bk, e_wv, e_bv, e_wo, e_bo, e_lng, e_lnb)
    x = x * non_pad_mask
    hid = jnp.maximum(x @ f_w1 + f_b1, 0.0)
    ffn = _layer_norm((hid @ f_w2 + f_b2) + x, f_lng, f_lnb)
    ffn = ffn * non_pad_mask
    gate = jax.nn.sigmoid(dec_input @ g_w + g_b)
    out = (gate * ffn + (1.0 - gate) * dec_input) * non_pad_mask

    B = dec_input.shape[0]
    a_slf = jnp.transpose(a_slf, (1, 0, 2, 3)).reshape(n_head * B, a_slf.shape[2], -1)
    a_enc = jnp.transpose(a_enc, (1, 0, 2, 3)).reshape(n_head * B, a_enc.shape[2], -1)
    return out, a_slf, a_enc


if __name__ == "__main__":
    d_model, d_inner = 32, 64
    n_head, d_k, d_v = 4, 8, 8
    B, N, M = 2, 8, 8

    key = jax.random.PRNGKey(0)
    k_dec, k_enc, k_par = jax.random.split(key, 3)

    dec_input = jax.random.normal(k_dec, (B, N, d_model), jnp.float32)
    enc_output = jax.random.normal(k_enc, (B, M, d_model), jnp.float32)

    # non-pad mask: (B, N, 1), 1.0 for real tokens, 0.0 for padding
    lengths = jnp.array([N, N - 2])
    pos = jnp.arange(N)
    non_pad_mask = (pos[None, :] < lengths[:, None]).astype(jnp.float32)[..., None]

    # self-attention mask: causal + key padding (1.0 = masked)
    causal = (pos[None, :] > pos[:, None]).astype(jnp.float32)          # (N, N)
    key_pad = (pos[None, :] >= lengths[:, None]).astype(jnp.float32)    # (B, N)
    slf_attn_mask = jnp.clip(causal[None] + key_pad[:, None, :], 0.0, 1.0)

    # dec-enc attention mask: mask out last encoder position of batch 1
    enc_pos = jnp.arange(M)
    enc_len = jnp.array([M, M - 1])
    dec_enc_attn_mask = jnp.broadcast_to(
        (enc_pos[None, :] >= enc_len[:, None]).astype(jnp.float32)[:, None, :],
        (B, N, M))

    params = build_params(k_par, d_model, d_inner, n_head, d_k, d_v)
    prepared = prepare_params(params, n_head, d_k, d_v)   # one-time prep

    dec_out, (slf_attn, enc_attn) = trf_decoder_layer(
        dec_input, enc_output, non_pad_mask, slf_attn_mask, dec_enc_attn_mask,
        prepared, n_head, d_k, d_v, return_attns=True)
    jax.block_until_ready((dec_out, slf_attn, enc_attn))

    assert dec_out.shape == (B, N, d_model)
    assert slf_attn.shape == (n_head * B, N, N)
    assert enc_attn.shape == (n_head * B, N, M)
    assert bool(jnp.all(jnp.isfinite(dec_out)))

    # Validate against a pure-JAX f32 reference (loose tolerance: bf16 MXU
    # operands in the kernel; attention maps returned in bf16).
    ref_out, ref_slf, ref_enc = _reference(
        dec_input, enc_output, non_pad_mask, slf_attn_mask, dec_enc_attn_mask,
        params, n_head, d_k, d_v)
    err = max(
        float(jnp.max(jnp.abs(dec_out - ref_out))),
        float(jnp.max(jnp.abs(slf_attn.astype(jnp.float32) - ref_slf))),
        float(jnp.max(jnp.abs(enc_attn.astype(jnp.float32) - ref_enc))))
    assert err < 0.2, f"mismatch vs reference: max abs err {err}"

    print("KERNEL_OK")
</pallas_src>

<mosaic_0001>
module attributes {stable_mosaic.version = 11 : i64} {
  func.func @_decoder_layer_kernel(%arg0: i32, %arg1: memref<2x8x32xf32, #tpu.memory_space<vmem>>, %arg2: memref<2x8x32xf32, #tpu.memory_space<vmem>>, %arg3: memref<2x8x1xf32, #tpu.memory_space<vmem>>, %arg4: memref<2x8x8xi8, #tpu.memory_space<vmem>>, %arg5: memref<2x8x8xi8, #tpu.memory_space<vmem>>, %arg6: memref<32x512xbf16, #tpu.memory_space<vmem>>, %arg7: memref<1x512xf32, #tpu.memory_space<vmem>>, %arg8: memref<4x8x32xbf16, #tpu.memory_space<vmem>>, %arg9: memref<1x32xf32, #tpu.memory_space<vmem>>, %arg10: memref<1x32xf32, #tpu.memory_space<vmem>>, %arg11: memref<1x32xf32, #tpu.memory_space<vmem>>, %arg12: memref<32x32xbf16, #tpu.memory_space<vmem>>, %arg13: memref<1x32xf32, #tpu.memory_space<vmem>>, %arg14: memref<32x256xbf16, #tpu.memory_space<vmem>>, %arg15: memref<1x256xf32, #tpu.memory_space<vmem>>, %arg16: memref<4x8x32xbf16, #tpu.memory_space<vmem>>, %arg17: memref<1x32xf32, #tpu.memory_space<vmem>>, %arg18: memref<1x32xf32, #tpu.memory_space<vmem>>, %arg19: memref<1x32xf32, #tpu.memory_space<vmem>>, %arg20: memref<32x64xbf16, #tpu.memory_space<vmem>>, %arg21: memref<1x64xf32, #tpu.memory_space<vmem>>, %arg22: memref<64x32xbf16, #tpu.memory_space<vmem>>, %arg23: memref<1x32xf32, #tpu.memory_space<vmem>>, %arg24: memref<1x32xf32, #tpu.memory_space<vmem>>, %arg25: memref<1x32xf32, #tpu.memory_space<vmem>>, %arg26: memref<2x8x32xf32, #tpu.memory_space<vmem>>, %arg27: memref<4x2x8x8xbf16, #tpu.memory_space<vmem>>, %arg28: memref<4x2x8x8xbf16, #tpu.memory_space<vmem>>) attributes {dimension_semantics = [#tpu.dimension_semantics<parallel>], iteration_bounds = array<i64: 1>, scalar_prefetch = 0 : i64, scratch_operands = 0 : i64, tpu.core_type = #tpu.core_type<tc>, window_params = [{transform_indices = @transform_0, window_bounds = array<i64: 2, 8, 32>}, {transform_indices = @transform_1, window_bounds = array<i64: 2, 8, 32>}, {transform_indices = @transform_2, window_bounds = array<i64: 2, 8, 1>}, {transform_indices = @transform_3, window_bounds = array<i64: 2, 8, 8>}, {transform_indices = @transform_4, window_bounds = array<i64: 2, 8, 8>}, {pipeline_mode = #tpu.pipeline_mode<synchronous>, transform_indices = @transform_5, window_bounds = array<i64: 32, 512>}, {pipeline_mode = #tpu.pipeline_mode<synchronous>, transform_indices = @transform_6, window_bounds = array<i64: 1, 512>}, {pipeline_mode = #tpu.pipeline_mode<synchronous>, transform_indices = @transform_7, window_bounds = array<i64: 4, 8, 32>}, {pipeline_mode = #tpu.pipeline_mode<synchronous>, transform_indices = @transform_8, window_bounds = array<i64: 1, 32>}, {pipeline_mode = #tpu.pipeline_mode<synchronous>, transform_indices = @transform_9, window_bounds = array<i64: 1, 32>}, {pipeline_mode = #tpu.pipeline_mode<synchronous>, transform_indices = @transform_10, window_bounds = array<i64: 1, 32>}, {pipeline_mode = #tpu.pipeline_mode<synchronous>, transform_indices = @transform_11, window_bounds = array<i64: 32, 32>}, {pipeline_mode = #tpu.pipeline_mode<synchronous>, transform_indices = @transform_12, window_bounds = array<i64: 1, 32>}, {pipeline_mode = #tpu.pipeline_mode<synchronous>, transform_indices = @transform_13, window_bounds = array<i64: 32, 256>}, {pipeline_mode = #tpu.pipeline_mode<synchronous>, transform_indices = @transform_14, window_bounds = array<i64: 1, 256>}, {pipeline_mode = #tpu.pipeline_mode<synchronous>, transform_indices = @transform_15, window_bounds = array<i64: 4, 8, 32>}, {pipeline_mode = #tpu.pipeline_mode<synchronous>, transform_indices = @transform_16, window_bounds = array<i64: 1, 32>}, {pipeline_mode = #tpu.pipeline_mode<synchronous>, transform_indices = @transform_17, window_bounds = array<i64: 1, 32>}, {pipeline_mode = #tpu.pipeline_mode<synchronous>, transform_indices = @transform_18, window_bounds = array<i64: 1, 32>}, {pipeline_mode = #tpu.pipeline_mode<synchronous>, transform_indices = @transform_19, window_bounds = array<i64: 32, 64>}, {pipeline_mode = #tpu.pipeline_mode<synchronous>, transform_indices = @transform_20, window_bounds = array<i64: 1, 64>}, {pipeline_mode = #tpu.pipeline_mode<synchronous>, transform_indices = @transform_21, window_bounds = array<i64: 64, 32>}, {pipeline_mode = #tpu.pipeline_mode<synchronous>, transform_indices = @transform_22, window_bounds = array<i64: 1, 32>}, {pipeline_mode = #tpu.pipeline_mode<synchronous>, transform_indices = @transform_23, window_bounds = array<i64: 1, 32>}, {pipeline_mode = #tpu.pipeline_mode<synchronous>, transform_indices = @transform_24, window_bounds = array<i64: 1, 32>}, {transform_indices = @transform_25, window_bounds = array<i64: 2, 8, 32>}, {transform_indices = @transform_26, window_bounds = array<i64: 4, 2, 8, 8>}, {transform_indices = @transform_27, window_bounds = array<i64: 4, 2, 8, 8>}]} {
    %c0 = arith.constant 0 : index
    %c0_0 = arith.constant 0 : index
    %c0_1 = arith.constant 0 : index
    %0 = vector.load %arg1[%c0, %c0_0, %c0_1] : memref<2x8x32xf32, #tpu.memory_space<vmem>>, vector<2x8x32xf32>
    %1 = vector.shape_cast %0 : vector<2x8x32xf32> to vector<16x32xf32>
    %c0_2 = arith.constant 0 : index
    %c0_3 = arith.constant 0 : index
    %c0_4 = arith.constant 0 : index
    %2 = vector.load %arg2[%c0_2, %c0_3, %c0_4] : memref<2x8x32xf32, #tpu.memory_space<vmem>>, vector<2x8x32xf32>
    %3 = vector.shape_cast %2 : vector<2x8x32xf32> to vector<16x32xf32>
    %c0_5 = arith.constant 0 : index
    %c0_6 = arith.constant 0 : index
    %c0_7 = arith.constant 0 : index
    %4 = vector.load %arg3[%c0_5, %c0_6, %c0_7] : memref<2x8x1xf32, #tpu.memory_space<vmem>>, vector<2x8x1xf32>
    %5 = vector.shape_cast %4 : vector<2x8x1xf32> to vector<16x1xf32>
    %c0_8 = arith.constant 0 : index
    %c0_9 = arith.constant 0 : index
    %c0_10 = arith.constant 0 : index
    %6 = vector.load %arg4[%c0_8, %c0_9, %c0_10] : memref<2x8x8xi8, #tpu.memory_space<vmem>>, vector<2x8x8xi8>
    %7 = arith.sitofp %6 : vector<2x8x8xi8> to vector<2x8x8xf32>
    %cst = arith.constant -1.000000e+30 : f32
    %8 = vector.broadcast %cst : f32 to vector<2x8x8xf32>
    %9 = arith.mulf %7, %8 : vector<2x8x8xf32>
    %c0_11 = arith.constant 0 : index
    %c0_12 = arith.constant 0 : index
    %c0_13 = arith.constant 0 : index
    %10 = vector.load %arg5[%c0_11, %c0_12, %c0_13] : memref<2x8x8xi8, #tpu.memory_space<vmem>>, vector<2x8x8xi8>
    %11 = arith.sitofp %10 : vector<2x8x8xi8> to vector<2x8x8xf32>
    %cst_14 = arith.constant -1.000000e+30 : f32
    %12 = vector.broadcast %cst_14 : f32 to vector<2x8x8xf32>
    %13 = arith.mulf %11, %12 : vector<2x8x8xf32>
    %14 = arith.truncf %1 : vector<16x32xf32> to vector<16x32xbf16>
    %c0_15 = arith.constant 0 : index
    %c0_16 = arith.constant 0 : index
    %15 = vector.load %arg6[%c0_15, %c0_16] : memref<32x512xbf16, #tpu.memory_space<vmem>>, vector<32x512xbf16>
    %cst_17 = arith.constant dense<0.000000e+00> : vector<16x512xf32>
    %16 = tpu.matmul %14, %15, %cst_17 {dimension_numbers = #tpu.dot_dimension_numbers<[1], [0], [0], [1], [0, 0, 1, 1], [], []>} : vector<16x32xbf16>, vector<32x512xbf16>, vector<16x512xf32> -> vector<16x512xf32>
    %c0_18 = arith.constant 0 : index
    %c0_19 = arith.constant 0 : index
    %17 = vector.load %arg7[%c0_18, %c0_19] : memref<1x512xf32, #tpu.memory_space<vmem>>, vector<1x512xf32>
    %18 = vector.broadcast %17 : vector<1x512xf32> to vector<16x512xf32>
    %19 = arith.addf %16, %18 : vector<16x512xf32>
    %20 = vector.extract_strided_slice %19 {offsets = [0, 0], sizes = [16, 32], strides = [1, 1]} : vector<16x512xf32> to vector<16x32xf32>
    %21 = vector.extract_strided_slice %19 {offsets = [0, 128], sizes = [16, 32], strides = [1, 1]} : vector<16x512xf32> to vector<16x32xf32>
    %22 = vector.extract_strided_slice %19 {offsets = [0, 256], sizes = [16, 32], strides = [1, 1]} : vector<16x512xf32> to vector<16x32xf32>
    %23 = vector.extract_strided_slice %19 {offsets = [0, 384], sizes = [16, 32], strides = [1, 1]} : vector<16x512xf32> to vector<16x32xf32>
    %24 = tpu.transpose %20, [1, 0] : vector<16x32xf32> -> vector<32x16xf32>
    %25 = vector.shape_cast %24 : vector<32x16xf32> to vector<4x8x16xf32>
    %26 = tpu.transpose %25, [0, 2, 1] : vector<4x8x16xf32> -> vector<4x16x8xf32>
    %27 = vector.shape_cast %26 : vector<4x16x8xf32> to vector<8x8x8xf32>
    %28 = arith.truncf %27 : vector<8x8x8xf32> to vector<8x8x8xbf16>
    %29 = tpu.transpose %21, [1, 0] : vector<16x32xf32> -> vector<32x16xf32>
    %30 = vector.shape_cast %29 : vector<32x16xf32> to vector<4x8x16xf32>
    %31 = tpu.transpose %30, [0, 2, 1] : vector<4x8x16xf32> -> vector<4x16x8xf32>
    %32 = vector.shape_cast %31 : vector<4x16x8xf32> to vector<8x8x8xf32>
    %33 = arith.truncf %32 : vector<8x8x8xf32> to vector<8x8x8xbf16>
    %34 = tpu.transpose %22, [1, 0] : vector<16x32xf32> -> vector<32x16xf32>
    %35 = vector.shape_cast %34 : vector<32x16xf32> to vector<4x8x16xf32>
    %36 = tpu.transpose %35, [0, 2, 1] : vector<4x8x16xf32> -> vector<4x16x8xf32>
    %37 = vector.shape_cast %36 : vector<4x16x8xf32> to vector<8x8x8xf32>
    %38 = arith.truncf %37 : vector<8x8x8xf32> to vector<8x8x8xbf16>
    "tpu.trace_start"() <{level = 10 : i32, message = "gqd,gkd->gqk"}> : () -> ()
    %cst_20 = arith.constant dense<0.000000e+00> : vector<8x8x8xf32>
    %39 = tpu.matmul %28, %33, %cst_20 {dimension_numbers = #tpu.dot_dimension_numbers<[2], [2], [1], [1], [0, 0, 0, 1, 1, 1], [0], [0]>} : vector<8x8x8xbf16>, vector<8x8x8xbf16>, vector<8x8x8xf32> -> vector<8x8x8xf32>
    "tpu.trace_stop"() : () -> ()
    %40 = vector.shape_cast %39 : vector<8x8x8xf32> to vector<4x2x8x8xf32>
    %41 = vector.shape_cast %9 : vector<2x8x8xf32> to vector<1x2x8x8xf32>
    %42 = vector.broadcast %41 : vector<1x2x8x8xf32> to vector<4x2x8x8xf32>
    %43 = arith.addf %40, %42 : vector<4x2x8x8xf32>
    %44 = vector.shape_cast %43 : vector<4x2x8x8xf32> to vector<8x8x8xf32>
    %cst_21 = arith.constant dense<0xFF800000> : vector<8x8xf32>
    %45 = vector.multi_reduction <maximumf>, %44, %cst_21 [2] : vector<8x8x8xf32> to vector<8x8xf32>
    %46 = vector.shape_cast %45 : vector<8x8xf32> to vector<8x8x1xf32>
    %47 = vector.broadcast %46 : vector<8x8x1xf32> to vector<8x8x8xf32>
    %48 = arith.subf %44, %47 : vector<8x8x8xf32>
    %49 = math.exp %48 : vector<8x8x8xf32>
    %cst_22 = arith.constant dense<0.000000e+00> : vector<8x8xf32>
    %50 = vector.multi_reduction <add>, %49, %cst_22 [2] : vector<8x8x8xf32> to vector<8x8xf32>
    %51 = vector.shape_cast %50 : vector<8x8xf32> to vector<8x8x1xf32>
    %cst_23 = arith.constant 1.000000e+00 : f32
    %52 = vector.broadcast %cst_23 : f32 to vector<8x8x1xf32>
    %53 = arith.divf %52, %51 : vector<8x8x1xf32>
    %54 = vector.broadcast %53 : vector<8x8x1xf32> to vector<8x8x8xf32>
    %55 = arith.mulf %49, %54 : vector<8x8x8xf32>
    %56 = vector.shape_cast %55 : vector<8x8x8xf32> to vector<4x2x8x8xf32>
    %57 = arith.truncf %56 : vector<4x2x8x8xf32> to vector<4x2x8x8xbf16>
    %c0_24 = arith.constant 0 : index
    %c0_25 = arith.constant 0 : index
    %c0_26 = arith.constant 0 : index
    %c0_27 = arith.constant 0 : index
    %58 = vector.load %arg27[%c0_24, %c0_25, %c0_26, %c0_27] : memref<4x2x8x8xbf16, #tpu.memory_space<vmem>>, vector<4x2x8x8xbf16>
    tpu.vector_store %arg27[%c0_24, %c0_25, %c0_26, %c0_27], %57 {strides = array<i32>} : memref<4x2x8x8xbf16, #tpu.memory_space<vmem>>, vector<4x2x8x8xbf16>,
    %59 = arith.truncf %55 : vector<8x8x8xf32> to vector<8x8x8xbf16>
    "tpu.trace_start"() <{level = 10 : i32, message = "gqk,gkd->gqd"}> : () -> ()
    %cst_28 = arith.constant dense<0.000000e+00> : vector<8x8x8xf32>
    %60 = tpu.matmul %59, %38, %cst_28 {dimension_numbers = #tpu.dot_dimension_numbers<[2], [1], [1], [2], [0, 0, 0, 1, 1, 2], [0], [0]>} : vector<8x8x8xbf16>, vector<8x8x8xbf16>, vector<8x8x8xf32> -> vector<8x8x8xf32>
    "tpu.trace_stop"() : () -> ()
    %61 = vector.shape_cast %60 : vector<8x8x8xf32> to vector<4x16x8xf32>
    %62 = arith.truncf %61 : vector<4x16x8xf32> to vector<4x16x8xbf16>
    %c0_29 = arith.constant 0 : index
    %c0_30 = arith.constant 0 : index
    %c0_31 = arith.constant 0 : index
    %63 = vector.load %arg8[%c0_29, %c0_30, %c0_31] : memref<4x8x32xbf16, #tpu.memory_space<vmem>>, vector<4x8x32xbf16>
    "tpu.trace_start"() <{level = 10 : i32, message = "hnd,hdk->hnk"}> : () -> ()
    %cst_32 = arith.constant dense<0.000000e+00> : vector<4x16x32xf32>
    %64 = tpu.matmul %62, %63, %cst_32 {dimension_numbers = #tpu.dot_dimension_numbers<[2], [1], [1], [2], [0, 0, 0, 1, 1, 2], [0], [0]>} : vector<4x16x8xbf16>, vector<4x8x32xbf16>, vector<4x16x32xf32> -> vector<4x16x32xf32>
    "tpu.trace_stop"() : () -> ()
    %cst_33 = arith.constant dense<0.000000e+00> : vector<16x32xf32>
    %65 = vector.multi_reduction <add>, %64, %cst_33 [0] : vector<4x16x32xf32> to vector<16x32xf32>
    %c0_34 = arith.constant 0 : index
    %c0_35 = arith.constant 0 : index
    %66 = vector.load %arg9[%c0_34, %c0_35] : memref<1x32xf32, #tpu.memory_space<vmem>>, vector<1x32xf32>
    %67 = vector.broadcast %66 : vector<1x32xf32> to vector<16x32xf32>
    %68 = arith.addf %65, %67 : vector<16x32xf32>
    %69 = arith.addf %68, %1 : vector<16x32xf32>
    %c0_36 = arith.constant 0 : index
    %c0_37 = arith.constant 0 : index
    %70 = vector.load %arg10[%c0_36, %c0_37] : memref<1x32xf32, #tpu.memory_space<vmem>>, vector<1x32xf32>
    %c0_38 = arith.constant 0 : index
    %c0_39 = arith.constant 0 : index
    %71 = vector.load %arg11[%c0_38, %c0_39] : memref<1x32xf32, #tpu.memory_space<vmem>>, vector<1x32xf32>
    %cst_40 = arith.constant dense<0.000000e+00> : vector<16xf32>
    %72 = vector.multi_reduction <add>, %69, %cst_40 [1] : vector<16x32xf32> to vector<16xf32>
    %73 = vector.shape_cast %72 : vector<16xf32> to vector<16x1xf32>
    %cst_41 = arith.constant 3.200000e+01 : f32
    %74 = vector.broadcast %cst_41 : f32 to vector<16x1xf32>
    %75 = arith.divf %73, %74 : vector<16x1xf32>
    %76 = vector.broadcast %75 : vector<16x1xf32> to vector<16x32xf32>
    %77 = arith.subf %69, %76 : vector<16x32xf32>
    %78 = arith.mulf %77, %77 : vector<16x32xf32>
    %cst_42 = arith.constant dense<0.000000e+00> : vector<16xf32>
    %79 = vector.multi_reduction <add>, %78, %cst_42 [1] : vector<16x32xf32> to vector<16xf32>
    %80 = vector.shape_cast %79 : vector<16xf32> to vector<16x1xf32>
    %cst_43 = arith.constant 3.200000e+01 : f32
    %81 = vector.broadcast %cst_43 : f32 to vector<16x1xf32>
    %82 = arith.divf %80, %81 : vector<16x1xf32>
    %83 = vector.broadcast %75 : vector<16x1xf32> to vector<16x32xf32>
    %84 = arith.subf %69, %83 : vector<16x32xf32>
    %cst_44 = arith.constant 9.99999974E-6 : f32
    %85 = vector.broadcast %cst_44 : f32 to vector<16x1xf32>
    %86 = arith.addf %82, %85 : vector<16x1xf32>
    %87 = math.rsqrt %86 : vector<16x1xf32>
    %88 = vector.broadcast %87 : vector<16x1xf32> to vector<16x32xf32>
    %89 = arith.mulf %84, %88 : vector<16x32xf32>
    %90 = vector.broadcast %70 : vector<1x32xf32> to vector<16x32xf32>
    %91 = arith.mulf %89, %90 : vector<16x32xf32>
    %92 = vector.broadcast %71 : vector<1x32xf32> to vector<16x32xf32>
    %93 = arith.addf %91, %92 : vector<16x32xf32>
    %94 = vector.broadcast %5 : vector<16x1xf32> to vector<16x32xf32>
    %95 = arith.mulf %93, %94 : vector<16x32xf32>
    %96 = arith.truncf %95 : vector<16x32xf32> to vector<16x32xbf16>
    %c0_45 = arith.constant 0 : index
    %c0_46 = arith.constant 0 : index
    %97 = vector.load %arg12[%c0_45, %c0_46] : memref<32x32xbf16, #tpu.memory_space<vmem>>, vector<32x32xbf16>
    %cst_47 = arith.constant dense<0.000000e+00> : vector<16x32xf32>
    %98 = tpu.matmul %96, %97, %cst_47 {dimension_numbers = #tpu.dot_dimension_numbers<[1], [0], [0], [1], [0, 0, 1, 1], [], []>} : vector<16x32xbf16>, vector<32x32xbf16>, vector<16x32xf32> -> vector<16x32xf32>
    %c0_48 = arith.constant 0 : index
    %c0_49 = arith.constant 0 : index
    %99 = vector.load %arg13[%c0_48, %c0_49] : memref<1x32xf32, #tpu.memory_space<vmem>>, vector<1x32xf32>
    %100 = vector.broadcast %99 : vector<1x32xf32> to vector<16x32xf32>
    %101 = arith.addf %98, %100 : vector<16x32xf32>
    %102 = arith.truncf %3 : vector<16x32xf32> to vector<16x32xbf16>
    %c0_50 = arith.constant 0 : index
    %c0_51 = arith.constant 0 : index
    %103 = vector.load %arg14[%c0_50, %c0_51] : memref<32x256xbf16, #tpu.memory_space<vmem>>, vector<32x256xbf16>
    %cst_52 = arith.constant dense<0.000000e+00> : vector<16x256xf32>
    %104 = tpu.matmul %102, %103, %cst_52 {dimension_numbers = #tpu.dot_dimension_numbers<[1], [0], [0], [1], [0, 0, 1, 1], [], []>} : vector<16x32xbf16>, vector<32x256xbf16>, vector<16x256xf32> -> vector<16x256xf32>
    %c0_53 = arith.constant 0 : index
    %c0_54 = arith.constant 0 : index
    %105 = vector.load %arg15[%c0_53, %c0_54] : memref<1x256xf32, #tpu.memory_space<vmem>>, vector<1x256xf32>
    %106 = vector.broadcast %105 : vector<1x256xf32> to vector<16x256xf32>
    %107 = arith.addf %104, %106 : vector<16x256xf32>
    %108 = vector.extract_strided_slice %107 {offsets = [0, 0], sizes = [16, 32], strides = [1, 1]} : vector<16x256xf32> to vector<16x32xf32>
    %109 = vector.extract_strided_slice %107 {offsets = [0, 128], sizes = [16, 32], strides = [1, 1]} : vector<16x256xf32> to vector<16x32xf32>
    %110 = tpu.transpose %101, [1, 0] : vector<16x32xf32> -> vector<32x16xf32>
    %111 = vector.shape_cast %110 : vector<32x16xf32> to vector<4x8x16xf32>
    %112 = tpu.transpose %111, [0, 2, 1] : vector<4x8x16xf32> -> vector<4x16x8xf32>
    %113 = vector.shape_cast %112 : vector<4x16x8xf32> to vector<8x8x8xf32>
    %114 = arith.truncf %113 : vector<8x8x8xf32> to vector<8x8x8xbf16>
    %115 = tpu.transpose %108, [1, 0] : vector<16x32xf32> -> vector<32x16xf32>
    %116 = vector.shape_cast %115 : vector<32x16xf32> to vector<4x8x16xf32>
    %117 = tpu.transpose %116, [0, 2, 1] : vector<4x8x16xf32> -> vector<4x16x8xf32>
    %118 = vector.shape_cast %117 : vector<4x16x8xf32> to vector<8x8x8xf32>
    %119 = arith.truncf %118 : vector<8x8x8xf32> to vector<8x8x8xbf16>
    %120 = tpu.transpose %109, [1, 0] : vector<16x32xf32> -> vector<32x16xf32>
    %121 = vector.shape_cast %120 : vector<32x16xf32> to vector<4x8x16xf32>
    %122 = tpu.transpose %121, [0, 2, 1] : vector<4x8x16xf32> -> vector<4x16x8xf32>
    %123 = vector.shape_cast %122 : vector<4x16x8xf32> to vector<8x8x8xf32>
    %124 = arith.truncf %123 : vector<8x8x8xf32> to vector<8x8x8xbf16>
    "tpu.trace_start"() <{level = 10 : i32, message = "gqd,gkd->gqk"}> : () -> ()
    %cst_55 = arith.constant dense<0.000000e+00> : vector<8x8x8xf32>
    %125 = tpu.matmul %114, %119, %cst_55 {dimension_numbers = #tpu.dot_dimension_numbers<[2], [2], [1], [1], [0, 0, 0, 1, 1, 1], [0], [0]>} : vector<8x8x8xbf16>, vector<8x8x8xbf16>, vector<8x8x8xf32> -> vector<8x8x8xf32>
    "tpu.trace_stop"() : () -> ()
    %126 = vector.shape_cast %125 : vector<8x8x8xf32> to vector<4x2x8x8xf32>
    %127 = vector.shape_cast %13 : vector<2x8x8xf32> to vector<1x2x8x8xf32>
    %128 = vector.broadcast %127 : vector<1x2x8x8xf32> to vector<4x2x8x8xf32>
    %129 = arith.addf %126, %128 : vector<4x2x8x8xf32>
    %130 = vector.shape_cast %129 : vector<4x2x8x8xf32> to vector<8x8x8xf32>
    %cst_56 = arith.constant dense<0xFF800000> : vector<8x8xf32>
    %131 = vector.multi_reduction <maximumf>, %130, %cst_56 [2] : vector<8x8x8xf32> to vector<8x8xf32>
    %132 = vector.shape_cast %131 : vector<8x8xf32> to vector<8x8x1xf32>
    %133 = vector.broadcast %132 : vector<8x8x1xf32> to vector<8x8x8xf32>
    %134 = arith.subf %130, %133 : vector<8x8x8xf32>
    %135 = math.exp %134 : vector<8x8x8xf32>
    %cst_57 = arith.constant dense<0.000000e+00> : vector<8x8xf32>
    %136 = vector.multi_reduction <add>, %135, %cst_57 [2] : vector<8x8x8xf32> to vector<8x8xf32>
    %137 = vector.shape_cast %136 : vector<8x8xf32> to vector<8x8x1xf32>
    %cst_58 = arith.constant 1.000000e+00 : f32
    %138 = vector.broadcast %cst_58 : f32 to vector<8x8x1xf32>
    %139 = arith.divf %138, %137 : vector<8x8x1xf32>
    %140 = vector.broadcast %139 : vector<8x8x1xf32> to vector<8x8x8xf32>
    %141 = arith.mulf %135, %140 : vector<8x8x8xf32>
    %142 = vector.shape_cast %141 : vector<8x8x8xf32> to vector<4x2x8x8xf32>
    %143 = arith.truncf %142 : vector<4x2x8x8xf32> to vector<4x2x8x8xbf16>
    %c0_59 = arith.constant 0 : index
    %c0_60 = arith.constant 0 : index
    %c0_61 = arith.constant 0 : index
    %c0_62 = arith.constant 0 : index
    %144 = vector.load %arg28[%c0_59, %c0_60, %c0_61, %c0_62] : memref<4x2x8x8xbf16, #tpu.memory_space<vmem>>, vector<4x2x8x8xbf16>
    tpu.vector_store %arg28[%c0_59, %c0_60, %c0_61, %c0_62], %143 {strides = array<i32>} : memref<4x2x8x8xbf16, #tpu.memory_space<vmem>>, vector<4x2x8x8xbf16>,
    %145 = arith.truncf %141 : vector<8x8x8xf32> to vector<8x8x8xbf16>
    "tpu.trace_start"() <{level = 10 : i32, message = "gqk,gkd->gqd"}> : () -> ()
    %cst_63 = arith.constant dense<0.000000e+00> : vector<8x8x8xf32>
    %146 = tpu.matmul %145, %124, %cst_63 {dimension_numbers = #tpu.dot_dimension_numbers<[2], [1], [1], [2], [0, 0, 0, 1, 1, 2], [0], [0]>} : vector<8x8x8xbf16>, vector<8x8x8xbf16>, vector<8x8x8xf32> -> vector<8x8x8xf32>
    "tpu.trace_stop"() : () -> ()
    %147 = vector.shape_cast %146 : vector<8x8x8xf32> to vector<4x16x8xf32>
    %148 = arith.truncf %147 : vector<4x16x8xf32> to vector<4x16x8xbf16>
    %c0_64 = arith.constant 0 : index
    %c0_65 = arith.constant 0 : index
    %c0_66 = arith.constant 0 : index
    %149 = vector.load %arg16[%c0_64, %c0_65, %c0_66] : memref<4x8x32xbf16, #tpu.memory_space<vmem>>, vector<4x8x32xbf16>
    "tpu.trace_start"() <{level = 10 : i32, message = "hnd,hdk->hnk"}> : () -> ()
    %cst_67 = arith.constant dense<0.000000e+00> : vector<4x16x32xf32>
    %150 = tpu.matmul %148, %149, %cst_67 {dimension_numbers = #tpu.dot_dimension_numbers<[2], [1], [1], [2], [0, 0, 0, 1, 1, 2], [0], [0]>} : vector<4x16x8xbf16>, vector<4x8x32xbf16>, vector<4x16x32xf32> -> vector<4x16x32xf32>
    "tpu.trace_stop"() : () -> ()
    %cst_68 = arith.constant dense<0.000000e+00> : vector<16x32xf32>
    %151 = vector.multi_reduction <add>, %150, %cst_68 [0] : vector<4x16x32xf32> to vector<16x32xf32>
    %c0_69 = arith.constant 0 : index
    %c0_70 = arith.constant 0 : index
    %152 = vector.load %arg17[%c0_69, %c0_70] : memref<1x32xf32, #tpu.memory_space<vmem>>, vector<1x32xf32>
    %153 = vector.broadcast %152 : vector<1x32xf32> to vector<16x32xf32>
    %154 = arith.addf %151, %153 : vector<16x32xf32>
    %155 = arith.addf %154, %95 : vector<16x32xf32>
    %c0_71 = arith.constant 0 : index
    %c0_72 = arith.constant 0 : index
    %156 = vector.load %arg18[%c0_71, %c0_72] : memref<1x32xf32, #tpu.memory_space<vmem>>, vector<1x32xf32>
    %c0_73 = arith.constant 0 : index
    %c0_74 = arith.constant 0 : index
    %157 = vector.load %arg19[%c0_73, %c0_74] : memref<1x32xf32, #tpu.memory_space<vmem>>, vector<1x32xf32>
    %cst_75 = arith.constant dense<0.000000e+00> : vector<16xf32>
    %158 = vector.multi_reduction <add>, %155, %cst_75 [1] : vector<16x32xf32> to vector<16xf32>
    %159 = vector.shape_cast %158 : vector<16xf32> to vector<16x1xf32>
    %cst_76 = arith.constant 3.200000e+01 : f32
    %160 = vector.broadcast %cst_76 : f32 to vector<16x1xf32>
    %161 = arith.divf %159, %160 : vector<16x1xf32>
    %162 = vector.broadcast %161 : vector<16x1xf32> to vector<16x32xf32>
    %163 = arith.subf %155, %162 : vector<16x32xf32>
    %164 = arith.mulf %163, %163 : vector<16x32xf32>
    %cst_77 = arith.constant dense<0.000000e+00> : vector<16xf32>
    %165 = vector.multi_reduction <add>, %164, %cst_77 [1] : vector<16x32xf32> to vector<16xf32>
    %166 = vector.shape_cast %165 : vector<16xf32> to vector<16x1xf32>
    %cst_78 = arith.constant 3.200000e+01 : f32
    %167 = vector.broadcast %cst_78 : f32 to vector<16x1xf32>
    %168 = arith.divf %166, %167 : vector<16x1xf32>
    %169 = vector.broadcast %161 : vector<16x1xf32> to vector<16x32xf32>
    %170 = arith.subf %155, %169 : vector<16x32xf32>
    %cst_79 = arith.constant 9.99999974E-6 : f32
    %171 = vector.broadcast %cst_79 : f32 to vector<16x1xf32>
    %172 = arith.addf %168, %171 : vector<16x1xf32>
    %173 = math.rsqrt %172 : vector<16x1xf32>
    %174 = vector.broadcast %173 : vector<16x1xf32> to vector<16x32xf32>
    %175 = arith.mulf %170, %174 : vector<16x32xf32>
    %176 = vector.broadcast %156 : vector<1x32xf32> to vector<16x32xf32>
    %177 = arith.mulf %175, %176 : vector<16x32xf32>
    %178 = vector.broadcast %157 : vector<1x32xf32> to vector<16x32xf32>
    %179 = arith.addf %177, %178 : vector<16x32xf32>
    %180 = vector.broadcast %5 : vector<16x1xf32> to vector<16x32xf32>
    %181 = arith.mulf %179, %180 : vector<16x32xf32>
    %182 = arith.truncf %181 : vector<16x32xf32> to vector<16x32xbf16>
    %c0_80 = arith.constant 0 : index
    %c0_81 = arith.constant 0 : index
    %183 = vector.load %arg20[%c0_80, %c0_81] : memref<32x64xbf16, #tpu.memory_space<vmem>>, vector<32x64xbf16>
    %cst_82 = arith.constant dense<0.000000e+00> : vector<16x64xf32>
    %184 = tpu.matmul %182, %183, %cst_82 {dimension_numbers = #tpu.dot_dimension_numbers<[1], [0], [0], [1], [0, 0, 1, 1], [], []>} : vector<16x32xbf16>, vector<32x64xbf16>, vector<16x64xf32> -> vector<16x64xf32>
    %c0_83 = arith.constant 0 : index
    %c0_84 = arith.constant 0 : index
    %185 = vector.load %arg21[%c0_83, %c0_84] : memref<1x64xf32, #tpu.memory_space<vmem>>, vector<1x64xf32>
    %186 = vector.broadcast %185 : vector<1x64xf32> to vector<16x64xf32>
    %187 = arith.addf %184, %186 : vector<16x64xf32>
    %cst_85 = arith.constant 0.000000e+00 : f32
    %188 = vector.broadcast %cst_85 : f32 to vector<16x64xf32>
    %189 = arith.maximumf %187, %188 : vector<16x64xf32>
    %190 = arith.truncf %189 : vector<16x64xf32> to vector<16x64xbf16>
    %c0_86 = arith.constant 0 : index
    %c0_87 = arith.constant 0 : index
    %191 = vector.load %arg22[%c0_86, %c0_87] : memref<64x32xbf16, #tpu.memory_space<vmem>>, vector<64x32xbf16>
    %cst_88 = arith.constant dense<0.000000e+00> : vector<16x32xf32>
    %192 = tpu.matmul %190, %191, %cst_88 {dimension_numbers = #tpu.dot_dimension_numbers<[1], [0], [0], [1], [0, 0, 1, 1], [], []>} : vector<16x64xbf16>, vector<64x32xbf16>, vector<16x32xf32> -> vector<16x32xf32>
    %c0_89 = arith.constant 0 : index
    %c0_90 = arith.constant 0 : index
    %193 = vector.load %arg23[%c0_89, %c0_90] : memref<1x32xf32, #tpu.memory_space<vmem>>, vector<1x32xf32>
    %194 = vector.broadcast %193 : vector<1x32xf32> to vector<16x32xf32>
    %195 = arith.addf %192, %194 : vector<16x32xf32>
    %196 = arith.addf %195, %181 : vector<16x32xf32>
    %c0_91 = arith.constant 0 : index
    %c0_92 = arith.constant 0 : index
    %197 = vector.load %arg24[%c0_91, %c0_92] : memref<1x32xf32, #tpu.memory_space<vmem>>, vector<1x32xf32>
    %c0_93 = arith.constant 0 : index
    %c0_94 = arith.constant 0 : index
    %198 = vector.load %arg25[%c0_93, %c0_94] : memref<1x32xf32, #tpu.memory_space<vmem>>, vector<1x32xf32>
    %cst_95 = arith.constant dense<0.000000e+00> : vector<16xf32>
    %199 = vector.multi_reduction <add>, %196, %cst_95 [1] : vector<16x32xf32> to vector<16xf32>
    %200 = vector.shape_cast %199 : vector<16xf32> to vector<16x1xf32>
    %cst_96 = arith.constant 3.200000e+01 : f32
    %201 = vector.broadcast %cst_96 : f32 to vector<16x1xf32>
    %202 = arith.divf %200, %201 : vector<16x1xf32>
    %203 = vector.broadcast %202 : vector<16x1xf32> to vector<16x32xf32>
    %204 = arith.subf %196, %203 : vector<16x32xf32>
    %205 = arith.mulf %204, %204 : vector<16x32xf32>
    %cst_97 = arith.constant dense<0.000000e+00> : vector<16xf32>
    %206 = vector.multi_reduction <add>, %205, %cst_97 [1] : vector<16x32xf32> to vector<16xf32>
    %207 = vector.shape_cast %206 : vector<16xf32> to vector<16x1xf32>
    %cst_98 = arith.constant 3.200000e+01 : f32
    %208 = vector.broadcast %cst_98 : f32 to vector<16x1xf32>
    %209 = arith.divf %207, %208 : vector<16x1xf32>
    %210 = vector.broadcast %202 : vector<16x1xf32> to vector<16x32xf32>
    %211 = arith.subf %196, %210 : vector<16x32xf32>
    %cst_99 = arith.constant 9.99999974E-6 : f32
    %212 = vector.broadcast %cst_99 : f32 to vector<16x1xf32>
    %213 = arith.addf %209, %212 : vector<16x1xf32>
    %214 = math.rsqrt %213 : vector<16x1xf32>
    %215 = vector.broadcast %214 : vector<16x1xf32> to vector<16x32xf32>
    %216 = arith.mulf %211, %215 : vector<16x32xf32>
    %217 = vector.broadcast %197 : vector<1x32xf32> to vector<16x32xf32>
    %218 = arith.mulf %216, %217 : vector<16x32xf32>
    %219 = vector.broadcast %198 : vector<1x32xf32> to vector<16x32xf32>
    %220 = arith.addf %218, %219 : vector<16x32xf32>
    %221 = vector.broadcast %5 : vector<16x1xf32> to vector<16x32xf32>
    %222 = arith.mulf %220, %221 : vector<16x32xf32>
    %223 = arith.negf %23 : vector<16x32xf32>
    %224 = math.exp %223 : vector<16x32xf32>
    %cst_100 = arith.constant 1.000000e+00 : f32
    %225 = vector.broadcast %cst_100 : f32 to vector<16x32xf32>
    %226 = arith.addf %225, %224 : vector<16x32xf32>
    %227 = arith.divf %225, %226 : vector<16x32xf32>
    %228 = arith.mulf %227, %222 : vector<16x32xf32>
    %cst_101 = arith.constant 1.000000e+00 : f32
    %229 = vector.broadcast %cst_101 : f32 to vector<16x32xf32>
    %230 = arith.subf %229, %227 : vector<16x32xf32>
    %231 = arith.mulf %230, %1 : vector<16x32xf32>
    %232 = arith.addf %228, %231 : vector<16x32xf32>
    %233 = vector.broadcast %5 : vector<16x1xf32> to vector<16x32xf32>
    %234 = arith.mulf %232, %233 : vector<16x32xf32>
    %235 = vector.shape_cast %234 : vector<16x32xf32> to vector<2x8x32xf32>
    %c0_102 = arith.constant 0 : index
    %c0_103 = arith.constant 0 : index
    %c0_104 = arith.constant 0 : index
    %236 = vector.load %arg26[%c0_102, %c0_103, %c0_104] : memref<2x8x32xf32, #tpu.memory_space<vmem>>, vector<2x8x32xf32>
    tpu.vector_store %arg26[%c0_102, %c0_103, %c0_104], %235 {strides = array<i32>} : memref<2x8x32xf32, #tpu.memory_space<vmem>>, vector<2x8x32xf32>,
    return
  }
  func.func @transform_0(%arg0: i32) -> (i32, i32, i32) {
    %c0_i32 = arith.constant 0 : i32
    %c0_i32_0 = arith.constant 0 : i32
    %c0_i32_1 = arith.constant 0 : i32
    return %arg0, %c0_i32, %c0_i32_0 : i32, i32, i32
  }
  func.func @transform_1(%arg0: i32) -> (i32, i32, i32) {
    %c0_i32 = arith.constant 0 : i32
    %c0_i32_0 = arith.constant 0 : i32
    %c0_i32_1 = arith.constant 0 : i32
    return %arg0, %c0_i32, %c0_i32_0 : i32, i32, i32
  }
  func.func @transform_2(%arg0: i32) -> (i32, i32, i32) {
    %c0_i32 = arith.constant 0 : i32
    %c0_i32_0 = arith.constant 0 : i32
    %c0_i32_1 = arith.constant 0 : i32
    return %arg0, %c0_i32, %c0_i32_0 : i32, i32, i32
  }
  func.func @transform_3(%arg0: i32) -> (i32, i32, i32) {
    %c0_i32 = arith.constant 0 : i32
    %c0_i32_0 = arith.constant 0 : i32
    %c0_i32_1 = arith.constant 0 : i32
    return %arg0, %c0_i32, %c0_i32_0 : i32, i32, i32
  }
  func.func @transform_4(%arg0: i32) -> (i32, i32, i32) {
    %c0_i32 = arith.constant 0 : i32
    %c0_i32_0 = arith.constant 0 : i32
    %c0_i32_1 = arith.constant 0 : i32
    return %arg0, %c0_i32, %c0_i32_0 : i32, i32, i32
  }
  func.func @transform_5(%arg0: i32) -> (i32, i32) {
    %c0_i32 = arith.constant 0 : i32
    %c0_i32_0 = arith.constant 0 : i32
    %c0_i32_1 = arith.constant 0 : i32
    return %c0_i32, %c0_i32_0 : i32, i32
  }
  func.func @transform_6(%arg0: i32) -> (i32, i32) {
    %c0_i32 = arith.constant 0 : i32
    %c0_i32_0 = arith.constant 0 : i32
    %c0_i32_1 = arith.constant 0 : i32
    return %c0_i32, %c0_i32_0 : i32, i32
  }
  func.func @transform_7(%arg0: i32) -> (i32, i32, i32) {
    %c0_i32 = arith.constant 0 : i32
    %c0_i32_0 = arith.constant 0 : i32
    %c0_i32_1 = arith.constant 0 : i32
    %c0_i32_2 = arith.constant 0 : i32
    return %c0_i32, %c0_i32_0, %c0_i32_1 : i32, i32, i32
  }
  func.func @transform_8(%arg0: i32) -> (i32, i32) {
    %c0_i32 = arith.constant 0 : i32
    %c0_i32_0 = arith.constant 0 : i32
    %c0_i32_1 = arith.constant 0 : i32
    return %c0_i32, %c0_i32_0 : i32, i32
  }
  func.func @transform_9(%arg0: i32) -> (i32, i32) {
    %c0_i32 = arith.constant 0 : i32
    %c0_i32_0 = arith.constant 0 : i32
    %c0_i32_1 = arith.constant 0 : i32
    return %c0_i32, %c0_i32_0 : i32, i32
  }
  func.func @transform_10(%arg0: i32) -> (i32, i32) {
    %c0_i32 = arith.constant 0 : i32
    %c0_i32_0 = arith.constant 0 : i32
    %c0_i32_1 = arith.constant 0 : i32
    return %c0_i32, %c0_i32_0 : i32, i32
  }
  func.func @transform_11(%arg0: i32) -> (i32, i32) {
    %c0_i32 = arith.constant 0 : i32
    %c0_i32_0 = arith.constant 0 : i32
    %c0_i32_1 = arith.constant 0 : i32
    return %c0_i32, %c0_i32_0 : i32, i32
  }
  func.func @transform_12(%arg0: i32) -> (i32, i32) {
    %c0_i32 = arith.constant 0 : i32
    %c0_i32_0 = arith.constant 0 : i32
    %c0_i32_1 = arith.constant 0 : i32
    return %c0_i32, %c0_i32_0 : i32, i32
  }
  func.func @transform_13(%arg0: i32) -> (i32, i32) {
    %c0_i32 = arith.constant 0 : i32
    %c0_i32_0 = arith.constant 0 : i32
    %c0_i32_1 = arith.constant 0 : i32
    return %c0_i32, %c0_i32_0 : i32, i32
  }
  func.func @transform_14(%arg0: i32) -> (i32, i32) {
    %c0_i32 = arith.constant 0 : i32
    %c0_i32_0 = arith.constant 0 : i32
    %c0_i32_1 = arith.constant 0 : i32
    return %c0_i32, %c0_i32_0 : i32, i32
  }
  func.func @transform_15(%arg0: i32) -> (i32, i32, i32) {
    %c0_i32 = arith.constant 0 : i32
    %c0_i32_0 = arith.constant 0 : i32
    %c0_i32_1 = arith.constant 0 : i32
    %c0_i32_2 = arith.constant 0 : i32
    return %c0_i32, %c0_i32_0, %c0_i32_1 : i32, i32, i32
  }
  func.func @transform_16(%arg0: i32) -> (i32, i32) {
    %c0_i32 = arith.constant 0 : i32
    %c0_i32_0 = arith.constant 0 : i32
    %c0_i32_1 = arith.constant 0 : i32
    return %c0_i32, %c0_i32_0 : i32, i32
  }
  func.func @transform_17(%arg0: i32) -> (i32, i32) {
    %c0_i32 = arith.constant 0 : i32
    %c0_i32_0 = arith.constant 0 : i32
    %c0_i32_1 = arith.constant 0 : i32
    return %c0_i32, %c0_i32_0 : i32, i32
  }
  func.func @transform_18(%arg0: i32) -> (i32, i32) {
    %c0_i32 = arith.constant 0 : i32
    %c0_i32_0 = arith.constant 0 : i32
    %c0_i32_1 = arith.constant 0 : i32
    return %c0_i32, %c0_i32_0 : i32, i32
  }
  func.func @transform_19(%arg0: i32) -> (i32, i32) {
    %c0_i32 = arith.constant 0 : i32
    %c0_i32_0 = arith.constant 0 : i32
    %c0_i32_1 = arith.constant 0 : i32
    return %c0_i32, %c0_i32_0 : i32, i32
  }
  func.func @transform_20(%arg0: i32) -> (i32, i32) {
    %c0_i32 = arith.constant 0 : i32
    %c0_i32_0 = arith.constant 0 : i32
    %c0_i32_1 = arith.constant 0 : i32
    return %c0_i32, %c0_i32_0 : i32, i32
  }
  func.func @transform_21(%arg0: i32) -> (i32, i32) {
    %c0_i32 = arith.constant 0 : i32
    %c0_i32_0 = arith.constant 0 : i32
    %c0_i32_1 = arith.constant 0 : i32
    return %c0_i32, %c0_i32_0 : i32, i32
  }
  func.func @transform_22(%arg0: i32) -> (i32, i32) {
    %c0_i32 = arith.constant 0 : i32
    %c0_i32_0 = arith.constant 0 : i32
    %c0_i32_1 = arith.constant 0 : i32
    return %c0_i32, %c0_i32_0 : i32, i32
  }
  func.func @transform_23(%arg0: i32) -> (i32, i32) {
    %c0_i32 = arith.constant 0 : i32
    %c0_i32_0 = arith.constant 0 : i32
    %c0_i32_1 = arith.constant 0 : i32
    return %c0_i32, %c0_i32_0 : i32, i32
  }
  func.func @transform_24(%arg0: i32) -> (i32, i32) {
    %c0_i32 = arith.constant 0 : i32
    %c0_i32_0 = arith.constant 0 : i32
    %c0_i32_1 = arith.constant 0 : i32
    return %c0_i32, %c0_i32_0 : i32, i32
  }
  func.func @transform_25(%arg0: i32) -> (i32, i32, i32) {
    %c0_i32 = arith.constant 0 : i32
    %c0_i32_0 = arith.constant 0 : i32
    %c0_i32_1 = arith.constant 0 : i32
    return %arg0, %c0_i32, %c0_i32_0 : i32, i32, i32
  }
  func.func @transform_26(%arg0: i32) -> (i32, i32, i32, i32) {
    %c0_i32 = arith.constant 0 : i32
    %c0_i32_0 = arith.constant 0 : i32
    %c0_i32_1 = arith.constant 0 : i32
    %c0_i32_2 = arith.constant 0 : i32
    return %c0_i32, %arg0, %c0_i32_0, %c0_i32_1 : i32, i32, i32, i32
  }
  func.func @transform_27(%arg0: i32) -> (i32, i32, i32, i32) {
    %c0_i32 = arith.constant 0 : i32
    %c0_i32_0 = arith.constant 0 : i32
    %c0_i32_1 = arith.constant 0 : i32
    %c0_i32_2 = arith.constant 0 : i32
    return %c0_i32, %arg0, %c0_i32_0, %c0_i32_1 : i32, i32, i32, i32
  }
}

</mosaic_0001>

<bundles_post_ra>
// kernel: tpu_custom_call.1
= control target key start
LH: loop header
LB: loop body
LE: loop exit
PB: predicated region body
PF: predicated region fallthrough
CT: control target
= control target key end

     0   :  { %s5946_s0 = inlined_call_operand.hbm [shape: f32[2,8,32], index: 0, kind: input, shape index: {}]   ;;  %s5947_s1 = inlined_call_operand.hbm [shape: f32[2,8,32], index: 1, kind: input, shape index: {}]   ;;  %s5948_s2 = inlined_call_operand.vmem [shape: f32[2,8,1], index: 2, kind: input, shape index: {}]   ;;  %s5949_s3 = inlined_call_operand.hbm [shape: s8[2,8,8], index: 3, kind: input, shape index: {}]   ;;  %s5950_s4 = inlined_call_operand.hbm [shape: s8[2,8,8], index: 4, kind: input, shape index: {}]   ;;  %s5951_s5 = inlined_call_operand.vmem [shape: bf16[32,512], index: 5, kind: input, shape index: {}]   ;;  %s5952_s6 = inlined_call_operand.hbm [shape: f32[1,512], index: 6, kind: input, shape index: {}]   ;;  %s5953_s7 = inlined_call_operand.hbm [shape: bf16[4,8,32], index: 7, kind: input, shape index: {}]   ;;  %s5954_s8 = inlined_call_operand.hbm [shape: f32[1,32], index: 8, kind: input, shape index: {}]   ;;  %s5955_s9 = inlined_call_operand.vmem [shape: f32[1,32], index: 9, kind: input, shape index: {}]   ;;  %s5956_s10 = inlined_call_operand.hbm [shape: f32[1,32], index: 10, kind: input, shape index: {}]   ;;  %s5957_s11 = inlined_call_operand.hbm [shape: bf16[32,32], index: 11, kind: input, shape index: {}]   ;;  %s5958_s12 = inlined_call_operand.hbm [shape: f32[1,32], index: 12, kind: input, shape index: {}]   ;;  %s5959_s13 = inlined_call_operand.hbm [shape: bf16[32,256], index: 13, kind: input, shape index: {}]   ;;  %s5960_s14 = inlined_call_operand.hbm [shape: f32[1,256], index: 14, kind: input, shape index: {}]   ;;  %s5961_s15 = inlined_call_operand.hbm [shape: bf16[4,8,32], index: 15, kind: input, shape index: {}]   ;;  %s5962_s16 = inlined_call_operand.hbm [shape: f32[1,32], index: 16, kind: input, shape index: {}]   ;;  %s5963_s17 = inlined_call_operand.hbm [shape: f32[1,32], index: 17, kind: input, shape index: {}]   ;;  %s5964_s18 = inlined_call_operand.vmem [shape: f32[1,32], index: 18, kind: input, shape index: {}]   ;;  %s5965_s19 = inlined_call_operand.vmem [shape: bf16[32,64], index: 19, kind: input, shape index: {}]   ;;  %s5966_s20 = inlined_call_operand.vmem [shape: f32[1,64], index: 20, kind: input, shape index: {}]   ;;  %s5967_s21 = inlined_call_operand.vmem [shape: bf16[64,32], index: 21, kind: input, shape index: {}]   ;;  %s5968_s22 = inlined_call_operand.vmem [shape: f32[1,32], index: 22, kind: input, shape index: {}]   ;;  %s5969_s23 = inlined_call_operand.vmem [shape: f32[1,32], index: 23, kind: input, shape index: {}]   ;;  %s5970_s24 = inlined_call_operand.vmem [shape: f32[1,32], index: 24, kind: input, shape index: {}]   ;;  %s5971_s25 = inlined_call_operand.hbm [shape: f32[2,8,32], index: 25, kind: output, shape index: {0}]   ;;  %s5972_s26 = inlined_call_operand.hbm [shape: bf16[4,2,8,8], index: 26, kind: output, shape index: {1}]   ;;  %s5973_s27 = inlined_call_operand.hbm [shape: bf16[4,2,8,8], index: 27, kind: output, shape index: {2}]  }
   0x1   :  { %5984 = sst [smem:[#allocation40_spill]] %s5946_s0 }
   0x2   :  { %5985 = sst [smem:[#allocation41_spill]] %s5947_s1 }
   0x3   :  { %5986 = sst [smem:[#allocation42_spill]] %s5948_s2 }
   0x4   :  { %5987 = sst [smem:[#allocation43_spill]] %s5949_s3 }
   0x5   :  { %5988 = sst [smem:[#allocation44_spill]] %s5950_s4 }
   0x6   :  { %5989 = sst [smem:[#allocation45_spill]] %s5951_s5 }
   0x7   :  { %5990 = sst [smem:[#allocation46_spill]] %s5952_s6 }
   0x8   :  { %5991 = sst [smem:[#allocation47_spill]] %s5953_s7 }
   0x9   :  { %5992 = sst [smem:[#allocation48_spill]] %s5954_s8 }
   0xa   :  { %5993 = sst [smem:[#allocation49_spill]] %s5955_s9 }
   0xb   :  { %5994 = sst [smem:[#allocation50_spill]] %s5956_s10 }
   0xc   :  { %5995 = sst [smem:[#allocation51_spill]] %s5957_s11 }
   0xd   :  { %33 = vsyncpa [#allocation3], 0 }
   0xe   :  { %34 = vsyncpa [#allocation6], 0 }
   0xf   :  { %35 = vsyncpa [#allocation9], 0 }
  0x10   :  { %36 = vsyncpa [#allocation12], 0 }
  0x11   :  { %37 = vsyncpa [#allocation15], 0 }
  0x12   :  { %38 = vsyncpa [#allocation18], 0 }
  0x13   :  { %39 = vsyncpa [#allocation21], 0 }
  0x14   :  { %40 = vsyncpa [#allocation24], 0 }
  0x15   :  { %41 = vsyncpa [#allocation4], 0 }
  0x16   :  { %42 = vsyncpa [#allocation28], 0  ;;  %s5199_s7 = smov [#allocation5]  }
  0x17   :  { %s60_s4 = sshll.u32 %s5199_s7, 4  ;;  %s61_s4 = int_to_ptr.vmem [resolvable:$true] %s60_s4 }
  0x18   :  { %s4827_s8 = scalar_lea.vmem %s61_s4, 256  ;;  %p4832_p1 = scmp.lt.s32.totalorder %s61_s4, %s61_s4 }
  0x19   :  { %p4828_p0 = scmp.ne.s32.totalorder %s61_s4, %s4827_s8  ;;  %p4833_p2 = scmp.lt.s32.totalorder %s4827_s8, %s4827_s8 }
  0x1b   :  { %p4834_p3 = por %p4833_p2, %p4832_p1 }
  0x1d   :  { %p4835_p4 = pnand %p4834_p3, %p4828_p0 }
  0x1f   :  { %4838 = shalt.err (!%p4835_p4)
}
  0x20   :  { %s5976_s30 = smov 128   ;;  %s5980_s9 = smov 8  }
  0x21   :  { %s5996_s0 = sld [smem:[#allocation41_spill]]  ;;  %s5202_s10 = smov [#allocation8]  }
  0x22   :  { %s86_s29 = sshll.u32 %s5202_s10, 4  ;;  %s5203_s1 = smov [#allocation11]   ;;  %s87_s29 = int_to_ptr.vmem [resolvable:$true] %s86_s29 }
  0x23   :  { %s110_s6 = sshll.u32 %s5203_s1, 4  ;;  %s4847_s11 = scalar_lea.vmem %s87_s29, 64  ;;  %s111_s6 = int_to_ptr.vmem [resolvable:$true] %s110_s6 }
  0x24   :  { %p4848_p5 = scmp.ne.s32.totalorder %s87_s29, %s4847_s11  ;;  %p4852_p6 = scmp.lt.s32.totalorder %s87_s29, %s87_s29 }
  0x25   :  { %p4853_p7 = scmp.lt.s32.totalorder %s4847_s11, %s4847_s11 }
  0x27   :  { %66 = dma.hbm_to_vmem [thread:$0]  %s5996_s0, 256, %s61_s4, [#allocation6], %s5976_s30, %s5976_s30, %s5980_s9  }
  0x28   :  { %p4854_p8 = por %p4853_p7, %p4852_p6 }
  0x2a   :  { %p4855_p9 = pnand %p4854_p8, %p4848_p5 }
  0x2c   :  { %4858 = shalt.err (!%p4855_p9)
}
  0x2d   :  { %s5978_s2 = smov 32   ;;  %s5979_s3 = smov 2  }
  0x2e   :  { %s5997_s4 = sld [smem:[#allocation44_spill]]  ;;  %s4867_s5 = scalar_lea.vmem %s111_s6, 256 }
  0x2f   :  { %p4868_p10 = scmp.ne.s32.totalorder %s111_s6, %s4867_s5  ;;  %p4872_p11 = scmp.lt.s32.totalorder %s111_s6, %s111_s6 }
  0x30   :  { %p4873_p12 = scmp.lt.s32.totalorder %s4867_s5, %s4867_s5 }
  0x32   :  { %p4874_p13 = por %p4873_p12, %p4872_p11 }
  0x34   :  { %92 = dma.hbm_to_vmem [thread:$0]  %s5997_s4, 64, %s87_s29, [#allocation9], %s5978_s2, %s5978_s2, %s5979_s3  }
  0x35   :  { %p4875_p0 = pnand %p4874_p13, %p4868_p10 }
  0x37   :  { %4878 = shalt.err (!%p4875_p0)
}
  0x38   :  { %s5982_s28 = smov 64   ;;  %s5207_s0 = smov 4  }
  0x39   :  { %s5998_s11 = sld [smem:[#allocation47_spill]]  ;;  %s5208_s30 = smov [#allocation14]  }
  0x3a   :  { %s135_s7 = sshll.u32 %s5208_s30, 4  ;;  %s5209_s29 = smov [#allocation17]   ;;  %s136_s7 = int_to_ptr.vmem [resolvable:$true] %s135_s7 }
  0x3b   :  { %s157_s8 = sshll.u32 %s5209_s29, 4  ;;  %s4887_s4 = scalar_lea.vmem %s136_s7, 16  ;;  %s158_s8 = int_to_ptr.vmem [resolvable:$true] %s157_s8 }
  0x3c   :  { %p4888_p1 = scmp.ne.s32.totalorder %s136_s7, %s4887_s4  ;;  %s4891_s5 = scalar_lea.vmem %s136_s7, 32 }
  0x3d   :  { %p4892_p2 = scmp.lt.s32.totalorder %s136_s7, %s136_s7  ;;  %p4893_p3 = scmp.lt.s32.totalorder %s4891_s5, %s4887_s4 }
  0x3f   :  { %116 = dma.hbm_to_vmem [thread:$0]  %s5998_s11, 256, %s111_s6, [#allocation12], %s5982_s28, %s5982_s28, %s5207_s0  }
  0x40   :  { %p4894_p4 = por %p4893_p3, %p4892_p2 }
  0x42   :  { %p4895_p5 = pnand %p4894_p4, %p4888_p1 }
  0x44   :  { %4898 = shalt.err (!%p4895_p5)
}
  0x45   :  { %s5999_s9 = sld [smem:[#allocation50_spill]]  ;;  %s4907_s10 = scalar_lea.vmem %s158_s8, 16 }
  0x46   :  { %p4908_p6 = scmp.ne.s32.totalorder %s158_s8, %s4907_s10  ;;  %s4911_s6 = scalar_lea.vmem %s158_s8, 32 }
  0x47   :  { %p4912_p7 = scmp.lt.s32.totalorder %s158_s8, %s158_s8  ;;  %p4913_p8 = scmp.lt.s32.totalorder %s4911_s6, %s4907_s10 }
  0x49   :  { %p4914_p9 = por %p4913_p8, %p4912_p7 }
  0x4b   :  { %138 = dma.hbm_to_vmem [thread:$0]  %s5999_s9, 16, %s136_s7, [#allocation15]  }
  0x4c   :  { %p4915_p10 = pnand %p4914_p9, %p4908_p6 }
  0x4e   :  { %4918 = shalt.err (!%p4915_p10)
}
  0x4f   :  { %160 = dma.hbm_to_vmem [thread:$0]  %s5958_s12, 16, %s158_s8, [#allocation18]  }
  0x50   :  { %s5210_s11 = smov [#allocation20]   ;;  %s5211_s4 = smov [#allocation23]  }
  0x51   :  { %s179_s29 = sshll.u32 %s5210_s11, 4  ;;  %s201_s5 = sshll.u32 %s5211_s4, 4  ;;  %s180_s29 = int_to_ptr.vmem [resolvable:$true] %s179_s29  ;;  %s202_s5 = int_to_ptr.vmem [resolvable:$true] %s201_s5 }
  0x52   :  { %s4927_s2 = scalar_lea.vmem %s180_s29, 32  ;;  %p4932_p12 = scmp.lt.s32.totalorder %s180_s29, %s180_s29 }
  0x53   :  { %p4928_p11 = scmp.ne.s32.totalorder %s180_s29, %s4927_s2  ;;  %p4933_p13 = scmp.lt.s32.totalorder %s4927_s2, %s4927_s2 }
  0x55   :  { %p4934_p0 = por %p4933_p13, %p4932_p12 }
  0x57   :  { %p4935_p1 = pnand %p4934_p0, %p4928_p11 }
  0x59   :  { %4938 = shalt.err (!%p4935_p1)
}
  0x5a   :  { %182 = dma.hbm_to_vmem [thread:$0]  %s5960_s14, 32, %s180_s29, [#allocation21]  }
  0x5b   :  { %s4947_s7 = scalar_lea.vmem %s202_s5, 16  ;;  %s4951_s12 = scalar_lea.vmem %s202_s5, 32 }
  0x5c   :  { %p4948_p2 = scmp.ne.s32.totalorder %s202_s5, %s4947_s7  ;;  %p4952_p3 = scmp.lt.s32.totalorder %s202_s5, %s202_s5 }
  0x5d   :  { %p4953_p4 = scmp.lt.s32.totalorder %s4951_s12, %s4947_s7 }
  0x5f   :  { %p4954_p5 = por %p4953_p4, %p4952_p3 }
  0x61   :  { %p4955_p6 = pnand %p4954_p5, %p4948_p2 }
  0x63   :  { %4958 = shalt.err (!%p4955_p6)
}
  0x64   :  { %204 = dma.hbm_to_vmem [thread:$0]  %s5962_s16, 16, %s202_s5, [#allocation24]  }
  0x65   :  { %s5212_s6 = smov [#allocation2]   ;;  %s5213_s1 = smov [#allocation7]  }
  0x66   :  { %s48_s30 = sshll.u32 %s5212_s6, 4  ;;  %s74_s11 = sshll.u32 %s5213_s1, 4  ;;  %s49_s30 = int_to_ptr.vmem [resolvable:$true] %s48_s30  ;;  %s75_s11 = int_to_ptr.vmem [resolvable:$true] %s74_s11 }
  0x67   :  { %s4967_s4 = scalar_lea.vmem %s49_s30, 256  ;;  %p4972_p8 = scmp.lt.s32.totalorder %s49_s30, %s49_s30 }
  0x68   :  { %p4968_p7 = scmp.ne.s32.totalorder %s49_s30, %s4967_s4  ;;  %p4973_p9 = scmp.lt.s32.totalorder %s4967_s4, %s4967_s4 }
  0x6a   :  { %p4974_p10 = por %p4973_p9, %p4972_p8 }
  0x6c   :  { %p4975_p11 = pnand %p4974_p10, %p4968_p7 }
  0x6e   :  { %4978 = shalt.err (!%p4975_p11)
}
  0x6f   :  { %s6000_s14 = smov 8   ;;  %s6001_s29 = smov 128  }
  0x70   :  { %s6002_s3 = sld [smem:[#allocation40_spill]]  ;;  %s4987_s16 = scalar_lea.vmem %s75_s11, 64 }
  0x71   :  { %p4988_p12 = scmp.ne.s32.totalorder %s75_s11, %s4987_s16  ;;  %p4992_p13 = scmp.lt.s32.totalorder %s75_s11, %s75_s11 }
  0x72   :  { %p4993_p0 = scmp.lt.s32.totalorder %s4987_s16, %s4987_s16 }
  0x74   :  { %p4994_p1 = por %p4993_p0, %p4992_p13 }
  0x76   :  { %54 = dma.hbm_to_vmem [thread:$0]  %s6002_s3, 256, %s49_s30, [#allocation3], %s6001_s29, %s6001_s29, %s6000_s14  }
  0x77   :  { %p4995_p2 = pnand %p4994_p1, %p4988_p12 }
  0x79   :  { %4998 = shalt.err (!%p4995_p2)
}
  0x7a   :  { %s6003_s5 = smov 2   ;;  %s6004_s7 = smov 32  }
  0x7b   :  { %s6005_s10 = sld [smem:[#allocation43_spill]]  ;;  %s5214_s6 = smov [#allocation10]  }
  0x7c   :  { %s101_s1 = sshll.u32 %s5214_s6, 4  ;;  %s5215_s4 = smov [#allocation13]   ;;  %s102_s1 = int_to_ptr.vmem [resolvable:$true] %s101_s1 }
  0x7d   :  { %s123_s30 = sshll.u32 %s5215_s4, 4  ;;  %s5007_s2 = scalar_lea.vmem %s102_s1, 64  ;;  %s124_s30 = int_to_ptr.vmem [resolvable:$true] %s123_s30 }
  0x7e   :  { %p5008_p3 = scmp.ne.s32.totalorder %s102_s1, %s5007_s2  ;;  %p5012_p4 = scmp.lt.s32.totalorder %s102_s1, %s102_s1 }
  0x7f   :  { %p5013_p5 = scmp.lt.s32.totalorder %s5007_s2, %s5007_s2 }
  0x81   :  { %80 = dma.hbm_to_vmem [thread:$0]  %s6005_s10, 64, %s75_s11, [#allocation6], %s6004_s7, %s6004_s7, %s6003_s5  }
  0x82   :  { %p5014_p6 = por %p5013_p5, %p5012_p4 }
  0x84   :  { %p5015_p7 = pnand %p5014_p6, %p5008_p3 }
  0x86   :  { %5018 = shalt.err (!%p5015_p7)
}
  0x87   :  { %s6006_s16 = sld [smem:[#allocation46_spill]]  ;;  %s5027_s28 = scalar_lea.vmem %s124_s30, 16 }
  0x88   :  { %p5028_p8 = scmp.ne.s32.totalorder %s124_s30, %s5027_s28  ;;  %s5031_s11 = scalar_lea.vmem %s124_s30, 32 }
  0x89   :  { %p5032_p9 = scmp.lt.s32.totalorder %s124_s30, %s124_s30  ;;  %p5033_p10 = scmp.lt.s32.totalorder %s5031_s11, %s5027_s28 }
  0x8b   :  { %p5034_p11 = por %p5033_p10, %p5032_p9 }
  0x8d   :  { %104 = dma.hbm_to_vmem [thread:$0]  %s6006_s16, 64, %s102_s1, [#allocation9]  }
  0x8e   :  { %p5035_p12 = pnand %p5034_p11, %p5028_p8 }
  0x90   :  { %5038 = shalt.err (!%p5035_p12)
}
  0x91   :  { %s6007_s12 = sld [smem:[#allocation48_spill]]  ;;  %s5216_s8 = smov [#allocation16]  }
  0x92   :  { %s144_s10 = sshll.u32 %s5216_s8, 4  ;;  %s5217_s6 = smov [#allocation19]   ;;  %s145_s10 = int_to_ptr.vmem [resolvable:$true] %s144_s10 }
  0x93   :  { %s166_s4 = sshll.u32 %s5217_s6, 4  ;;  %s5047_s2 = scalar_lea.vmem %s145_s10, 256  ;;  %s167_s4 = int_to_ptr.vmem [resolvable:$true] %s166_s4 }
  0x94   :  { %p5048_p13 = scmp.ne.s32.totalorder %s145_s10, %s5047_s2  ;;  %p5052_p0 = scmp.lt.s32.totalorder %s145_s10, %s145_s10 }
  0x95   :  { %p5053_p1 = scmp.lt.s32.totalorder %s5047_s2, %s5047_s2 }
  0x97   :  { %126 = dma.hbm_to_vmem [thread:$0]  %s6007_s12, 16, %s124_s30, [#allocation12]  }
  0x98   :  { %p5054_p2 = por %p5053_p1, %p5052_p0 }
  0x9a   :  { %p5055_p3 = pnand %p5054_p2, %p5048_p13 }
  0x9c   :  { %5058 = shalt.err (!%p5055_p3)
}
  0x9d   :  { %s6008_s28 = smov 64   ;;  %s6009_s3 = sld [smem:[#allocation51_spill]] }
  0x9e   :  { %s5067_s30 = scalar_lea.vmem %s167_s4, 512  ;;  %p5072_p5 = scmp.lt.s32.totalorder %s167_s4, %s167_s4 }
  0x9f   :  { %p5068_p4 = scmp.ne.s32.totalorder %s167_s4, %s5067_s30  ;;  %p5073_p6 = scmp.lt.s32.totalorder %s5067_s30, %s5067_s30 }
  0xa1   :  { %p5074_p7 = por %p5073_p6, %p5072_p5 }
  0xa3   :  { %150 = dma.hbm_to_vmem [thread:$0]  %s6009_s3, 256, %s145_s10, [#allocation15], %s6008_s28, %s6008_s28, %s5207_s0  }
  0xa4   :  { %p5075_p8 = pnand %p5074_p7, %p5068_p4 }
  0xa6   :  { %5078 = shalt.err (!%p5075_p8)
}
  0xa7   :  { %172 = dma.hbm_to_vmem [thread:$0]  %s5959_s13, 512, %s167_s4, [#allocation18], %s6001_s29, %s6001_s29, %s6000_s14  }
  0xa8   :  { %s5218_s5 = smov [#allocation22]   ;;  %s5219_s12 = smov [#allocation25]  }
  0xa9   :  { %s188_s7 = sshll.u32 %s5218_s5, 4  ;;  %s211_s8 = sshll.u32 %s5219_s12, 4  ;;  %s189_s7 = int_to_ptr.vmem [resolvable:$true] %s188_s7  ;;  %s212_s8 = int_to_ptr.vmem [resolvable:$true] %s211_s8 }
  0xaa   :  { %s5087_s10 = scalar_lea.vmem %s189_s7, 256  ;;  %p5092_p10 = scmp.lt.s32.totalorder %s189_s7, %s189_s7 }
  0xab   :  { %p5088_p9 = scmp.ne.s32.totalorder %s189_s7, %s5087_s10  ;;  %p5093_p11 = scmp.lt.s32.totalorder %s5087_s10, %s5087_s10 }
  0xad   :  { %p5094_p12 = por %p5093_p11, %p5092_p10 }
  0xaf   :  { %p5095_p13 = pnand %p5094_p12, %p5088_p9 }
  0xb1   :  { %5098 = shalt.err (!%p5095_p13)
}
  0xb2   :  { %194 = dma.hbm_to_vmem [thread:$0]  %s5961_s15, 256, %s189_s7, [#allocation21], %s6008_s28, %s6008_s28, %s5207_s0  }
  0xb3   :  { %s5107_s13 = scalar_lea.vmem %s212_s8, 16  ;;  %s5111_s4 = scalar_lea.vmem %s212_s8, 32 }
  0xb4   :  { %p5108_p0 = scmp.ne.s32.totalorder %s212_s8, %s5107_s13  ;;  %p5112_p1 = scmp.lt.s32.totalorder %s212_s8, %s212_s8 }
  0xb5   :  { %p5113_p2 = scmp.lt.s32.totalorder %s5111_s4, %s5107_s13 }
  0xb7   :  { %p5114_p3 = por %p5113_p2, %p5112_p1 }
  0xb9   :  { %p5115_p4 = pnand %p5114_p3, %p5108_p0 }
  0xbb   :  { %5118 = shalt.err (!%p5115_p4)
}
  0xbc   :  { %214 = dma.hbm_to_vmem [thread:$0]  %s5963_s17, 16, %s212_s8, [#allocation24]  }
  0xbd   :  { %5179 = dma.done.wait [#allocation3], 256  }
  0xbe   :  { %5180 = vsyncadd [#allocation3], 4294967040 }
  0xbf   :  { %5181 = dma.done.wait [#allocation6], 320  }
  0xc0   :  { %5182 = vsyncadd [#allocation6], 4294966976 }
  0xc1   :  { %5183 = dma.done.wait [#allocation9], 128  }
  0xc2   :  { %5184 = vsyncadd [#allocation9], 4294967168 }
  0xc3   :  { %5185 = dma.done.wait [#allocation12], 272  }
  0xc4   :  { %5186 = vsyncadd [#allocation12], 4294967024 }
  0xc5   :  { %5187 = dma.done.wait [#allocation15], 272  }
  0xc6   :  { %5188 = vsyncadd [#allocation15], 4294967024 }
  0xc7   :  { %5189 = dma.done.wait [#allocation18], 528  }
  0xc8   :  { %5190 = vsyncadd [#allocation18], 4294966768 }
  0xc9   :  { %5191 = dma.done.wait [#allocation21], 288  }
  0xca   :  { %5192 = vsyncadd [#allocation21], 4294967008 }
  0xcb   :  { %5193 = dma.done.wait [#allocation24], 32  }
  0xcc   :  { %5194 = vsyncadd [#allocation24], 4294967264  ;;  %v5220_v0 = vmov 0   ;;  %s6010_s3 = sld [smem:[#allocation45_spill]]  ;;  %v5449_v5 = vld [vmem:[#allocation2] sm:$0xff]  ;;  %v5451_v6 = vld [vmem:[#allocation2 + $0x8] sm:$0xff]  ;;  %v308_v8 = vlaneseq }
  0xcd   :  { %404 = vmatprep.mubr.bf16.mxu0 %v5220_v0  ;;  %447 = vmatprep.mubr.bf16.mxu1 %v5220_v0  ;;  %vm368_vm0 = vcmask 261120   ;;  %v297_v7 = vpack.c.bf16 %v5451_v6, %v5449_v5  ;;  %v5459_v11 = vld [vmem:[#allocation10] sm:$0xf]  ;;  %v5221_v28 = vmov 0.0   ;;  %vm5222_vm1 = vmmov 0   ;;  %s6012_s7 = sld [smem:[#allocation49_spill]] }
  0xce   :  { %v5456_v9 = vshrl.u32 %v308_v8, 7  ;;  %vm962_vm2 = vcmask 64512   ;;  %vm1443_vm3 = vcmask 60416   ;;  %vm1455_vm4 = vcmask 1043456  }
  0xcf   :  { %vm3987_vm5 = vcmask 523264  }
  0xd0   :  { %v310_v10 = vsub.s32 0, %v5456_v9  ;;  %v314_v12 = vsub.s32 1, %v5456_v9 }
  0xd2   :  { %v4706_v1 = vld [vmem:[%s6010_s3 + $0x24] ss:$16 sps:$4 sm:$0xff]   ;;  %v4708_v2 = vld [vmem:[%s6010_s3 + $0x20] ss:$16 sps:$4 sm:$0xff]   ;;  %v311_v13 = vrot.slane %v5459_v11, %v310_v10  ;;  %v315_v14 = vrot.slane %v5459_v11, %v314_v12  ;;  %v4712_v23 = vld [vmem:[%s6010_s3 + $0x2c] ss:$16 sps:$4 sm:$0xff]  }
  0xd3   :  { %384 = vmatprep.subr.bf16.mxu0 %v4706_v1  ;;  %v4709_v3 = vld [vmem:[%s6010_s3 + $0x4] ss:$16 sps:$4 sm:$0xff]   ;;  %v4711_v4 = vld [vmem:[%s6010_s3] ss:$16 sps:$4 sm:$0xff]   ;;  %v4714_v24 = vld [vmem:[%s6010_s3 + $0x28] ss:$16 sps:$4 sm:$0xff]   ;;  %427 = vmatprep.subr.bf16.mxu1 %v4712_v23 }
  0xd4   :  { %385 = vmatpush1.bf16.msra.mxu0 %v4708_v2  ;;  %428 = vmatpush1.bf16.msra.mxu1 %v4714_v24  ;;  %v4715_v25 = vld [vmem:[%s6010_s3 + $0xc] ss:$16 sps:$4 sm:$0xff]   ;;  %v4717_v26 = vld [vmem:[%s6010_s3 + $0x8] ss:$16 sps:$4 sm:$0xff]   ;;  %s6011_s3 = sld [smem:[#allocation42_spill]] }
  0xd5   :  { %386 = vmatprep.subr.bf16.mxu0 %v4709_v3  ;;  %429 = vmatprep.subr.bf16.mxu1 %v4715_v25 }
  0xd8   :  { %387 = vmatpush1.bf16.msra.mxu0 %v4711_v4  ;;  %430 = vmatpush1.bf16.msra.mxu1 %v4717_v26 }
  0xd9   :  { %4337 = vmatprep.subr.bf16.mxu0 %v5221_v28  ;;  %4343 = vmatprep.subr.bf16.mxu1 %v5221_v28 }
  0xdb   :  { %4167 = vmatmul.mubr.msk.bf16.vlgmr.msra.gmra.mxu0 %vm368_vm0, %v297_v7  ;;  %4168 = vmatmul.mubr.msk.bf16.vlgmr.msra.gmra.mxu1 %vm368_vm0, %v297_v7 }
  0xdc   :  { %4339 = vmatprep.mubr.msk.bf16.mxu0 %vm5222_vm1, %v5221_v28  ;;  %4345 = vmatprep.mubr.msk.bf16.mxu1 %vm5222_vm1, %v5221_v28 }
 0x19b   :  { %v406_v15 = vpop.f32.mrf.mxu0 }
 0x19c   :  { %v407_v16 = vadd.f32 %v406_v15, %v311_v13 }
 0x19d   :  { %v408_v17 = vpop.f32.mrf.mxu0 }
 0x19e   :  { %458 = vxpose.xlu1.b32.start [1/2] (short) (narrow) %v407_v16, 32  ;;  %v409_v18 = vadd.f32 %v408_v17, %v315_v14 }
 0x19f   :  { %v410_v19 = vpop.f32.mrf.mxu0 }
 0x1a0   :  { %v411_v20 = vadd.f32 %v410_v19, %v311_v13  ;;  %626 = vxpose.xlu0.b32.start [1/2] (short) (narrow) %v409_v18, 32 }
 0x1a1   :  { %v412_v21 = vpop.f32.mrf.mxu0 }
 0x1a2   :  { %v413_v22 = vadd.f32 %v412_v21, %v315_v14  ;;  %459 = vxpose.xlu1.b32.end [2/2] (short) (narrow) %v411_v20, 32 }
 0x1a4   :  { %627 = vxpose.xlu0.b32.end [2/2] (short) (narrow) %v413_v22, 32 }
 0x21a   :  { %v474_v29 = vpop.trf.xlu1 }
 0x21c   :  { %v642_v27 = vpop.trf.xlu0 }
 0x21d   :  { %658 = vxpose.xlu0.b32.start.end [1/1] (short) (narrow) %v642_v27, 16 }
 0x21e   :  { %v475_v32 = vpop.trf.xlu1 }
 0x220   :  { %v643_v30 = vpop.trf.xlu0 }
 0x221   :  { %v4632_v31 = vpack.i.bf16 %v643_v30, %v474_v29  ;;  %v4239_v29 = vld [vmem:[#allocation7] sm:$0xf]  }
 0x222   :  { %v476_v35 = vpop.trf.xlu1  ;;  %v4240_v30 = vunpack.c.0.s8 %v4239_v29 }
 0x223   :  { %4633 = vxpose.xlu1.b32.start.end [1/1] (short) (narrow) %v4632_v31, 16  ;;  %v5527_v31 = vpop.f32.mrf.mxu1 }
 0x224   :  { %v644_v33 = vpop.trf.xlu0 }
 0x225   :  { %v4644_v34 = vpack.i.bf16 %v644_v33, %v475_v32  ;;  %v285_v32 = vcvt.s32.f32 %v4240_v30  ;;  %v4241_v33 = vunpack.c.1.s8 %v4239_v29 }
 0x226   :  { %v477_v38 = vpop.trf.xlu1 }
 0x227   :  { %4645 = vxpose.xlu0.b32.start.end [1/1] (short) (narrow) %v4644_v34, 16  ;;  %v5529_v34 = vpop.f32.mrf.mxu1 }
 0x228   :  { %v645_v36 = vpop.trf.xlu0 }
 0x229   :  { %v4656_v37 = vpack.i.bf16 %v645_v36, %v476_v35  ;;  %v287_v35 = vmul.f32 -1e+30, %v285_v32  ;;  %v286_v36 = vcvt.s32.f32 %v4241_v33  ;;  %v318_v33 = vsub.s32 2, %v5456_v9 }
 0x22b   :  { %4657 = vxpose.xlu1.b32.start.end [1/1] (short) (narrow) %v4656_v37, 16  ;;  %v5531_v37 = vpop.f32.mrf.mxu1 }
 0x22c   :  { %586 = vxpose.xlu0.b32.start.end [1/1] (short) (narrow) %v477_v38, 16 }
 0x299   :  { %v674_v39 = vpop.trf.xlu0 }
 0x29a   :  { %v786_v40 = vpack.c.bf16 %v674_v39, %v674_v39 }
 0x29c   :  { %v967_v41 = vsel %vm962_vm2, %v786_v40, 0  ;;  %v288_v40 = vmul.f32 -1e+30, %v286_v36  ;;  %v319_v36 = vrot.slane %v5459_v11, %v318_v33 }
 0x29d   :  { %4338 = vmatpush3.bf16.xpose.msra.mxu0 %v967_v41  ;;  %v675_v42 = vpop.trf.xlu0  ;;  %v5535_v41 = vpop.f32.mrf.mxu1 }
 0x29e   :  { %v787_v43 = vpack.c.bf16 %v675_v42, %v675_v42  ;;  %4349 = vmatprep.subr.bf16.mxu0 %v5221_v28 }
 0x29f   :  { %v4634_v44 = vpop.trf.xlu1 }
 0x2a0   :  { %v1013_v45 = vsel %vm962_vm2, %v787_v43, 0  ;;  %v4635_v46 = vunpack.i.l.bf16 %v4634_v44  ;;  %v4638_v47 = vunpack.i.h.bf16 %v4634_v44 }
 0x2a1   :  { %4344 = vmatpush3.bf16.xpose.msra.mxu1 %v1013_v45 }
 0x2a2   :  { %v618_v48 = vpack.c.bf16 %v4635_v46, %v4635_v46  ;;  %4355 = vmatprep.subr.bf16.mxu1 %v5221_v28  ;;  %v788_v50 = vpack.c.bf16 %v4638_v47, %v4638_v47 }
 0x2a3   :  { %v4639_v49 = vpop.trf.xlu1  ;;  %v4646_v51 = vpop.trf.xlu0 }
 0x2a4   :  { %v4640_v52 = vunpack.i.l.bf16 %v4639_v49  ;;  %4340 = vmatmul.mubr.msk.bf16.vlgmr.msra.gmra.mxu0 %vm962_vm2, %v618_v48  ;;  %v4650_v53 = vunpack.i.h.bf16 %v4646_v51  ;;  %v1059_v54 = vsel %vm962_vm2, %v788_v50, 0  ;;  %v4647_v55 = vunpack.i.l.bf16 %v4646_v51 }
 0x2a5   :  { %4351 = vmatprep.mubr.msk.bf16.mxu0 %vm5222_vm1, %v5221_v28  ;;  %4350 = vmatpush3.bf16.xpose.msra.mxu0 %v1059_v54  ;;  %v4643_v57 = vunpack.i.h.bf16 %v4639_v49 }
 0x2a6   :  { %v619_v56 = vpack.c.bf16 %v4640_v52, %v4640_v52  ;;  %4361 = vmatprep.subr.bf16.mxu0 %v5221_v28  ;;  %v790_v59 = vpack.c.bf16 %v4650_v53, %v4650_v53  ;;  %v620_v63 = vpack.c.bf16 %v4647_v55, %v4647_v55 }
 0x2a7   :  { %v4651_v58 = vpop.trf.xlu0  ;;  %v4658_v60 = vpop.trf.xlu1  ;;  %v789_v61 = vpack.c.bf16 %v4643_v57, %v4643_v57 }
 0x2a8   :  { %4346 = vmatmul.mubr.msk.bf16.vlgmr.msra.gmra.mxu1 %vm962_vm2, %v619_v56  ;;  %v4655_v62 = vunpack.i.h.bf16 %v4651_v58  ;;  %v4652_v2 = vunpack.i.l.bf16 %v4651_v58  ;;  %v1151_v3 = vsel %vm962_vm2, %v790_v59, 0  ;;  %v4662_v7 = vunpack.i.h.bf16 %v4658_v60 }
 0x2a9   :  { %4357 = vmatprep.mubr.msk.bf16.mxu1 %vm5222_vm1, %v5221_v28  ;;  %v1105_v1 = vsel %vm962_vm2, %v789_v61, 0  ;;  %v4659_v13 = vunpack.i.l.bf16 %v4658_v60 }
 0x2aa   :  { %4356 = vmatpush3.bf16.xpose.msra.mxu1 %v1105_v1  ;;  %v791_v8 = vpack.c.bf16 %v4655_v62, %v4655_v62  ;;  %v621_v14 = vpack.c.bf16 %v4652_v2, %v4652_v2  ;;  %v792_v15 = vpack.c.bf16 %v4662_v7, %v4662_v7 }
 0x2ab   :  { %v4663_v4 = vpop.trf.xlu1  ;;  %4367 = vmatprep.subr.bf16.mxu1 %v5221_v28  ;;  %v622_v18 = vpack.c.bf16 %v4659_v13, %v4659_v13  ;;  %v602_v22 = vpop.trf.xlu0 }
 0x2ac   :  { %4352 = vmatmul.mubr.msk.bf16.vlgmr.msra.gmra.mxu0 %vm962_vm2, %v620_v63  ;;  %v1197_v16 = vsel %vm962_vm2, %v791_v8, 0  ;;  %v4667_v17 = vunpack.i.h.bf16 %v4663_v4  ;;  %v4664_v19 = vunpack.i.l.bf16 %v4663_v4  ;;  %v1243_v20 = vsel %vm962_vm2, %v792_v15, 0 }
 0x2ad   :  { %4362 = vmatpush3.bf16.xpose.msra.mxu0 %v1151_v3  ;;  %4363 = vmatprep.mubr.msk.bf16.mxu0 %vm5222_vm1, %v5221_v28  ;;  %v624_v25 = vpack.c.bf16 %v602_v22, %v602_v22 }
 0x2ae   :  { %4373 = vmatprep.subr.bf16.mxu0 %v5221_v28  ;;  %v793_v21 = vpack.c.bf16 %v4667_v17, %v4667_v17  ;;  %v623_v23 = vpack.c.bf16 %v4664_v19, %v4664_v19 }
 0x2af   :  { %v603_v26 = vpop.trf.xlu0 }
 0x2b0   :  { %v1289_v24 = vsel %vm962_vm2, %v793_v21, 0  ;;  %v625_v27 = vpack.c.bf16 %v603_v26, %v603_v26 }
 0x2b1   :  { %4358 = vmatmul.mubr.msk.bf16.vlgmr.msra.gmra.mxu1 %vm962_vm2, %v621_v14 }
 0x2b2   :  { %4368 = vmatpush3.bf16.xpose.msra.mxu1 %v1197_v16  ;;  %4369 = vmatprep.mubr.msk.bf16.mxu1 %vm5222_vm1, %v5221_v28 }
 0x2b3   :  { %4379 = vmatprep.subr.bf16.mxu1 %v5221_v28 }
 0x2b4   :  { %4364 = vmatmul.mubr.msk.bf16.vlgmr.msra.gmra.mxu0 %vm962_vm2, %v622_v18 }
 0x2b5   :  { %4374 = vmatpush3.bf16.xpose.msra.mxu0 %v1243_v20  ;;  %4375 = vmatprep.mubr.msk.bf16.mxu0 %vm5222_vm1, %v5221_v28 }
 0x2b6   :  { %4385 = vmatprep.subr.bf16.mxu0 %v5221_v28 }
 0x2b9   :  { %4370 = vmatmul.mubr.msk.bf16.vlgmr.msra.gmra.mxu1 %vm962_vm2, %v623_v23 }
 0x2ba   :  { %4380 = vmatpush3.bf16.xpose.msra.mxu1 %v1289_v24  ;;  %4381 = vmatprep.mubr.msk.bf16.mxu1 %vm5222_vm1, %v5221_v28 }
 0x2bb   :  { %4391 = vmatprep.subr.bf16.mxu1 %v5221_v28 }
 0x2bc   :  { %4376 = vmatmul.mubr.msk.bf16.vlgmr.msra.gmra.mxu0 %vm962_vm2, %v624_v25 }
 0x2bd   :  { %4387 = vmatprep.mubr.msk.bf16.mxu0 %vm5222_vm1, %v5221_v28 }
 0x2c1   :  { %4382 = vmatmul.mubr.msk.bf16.vlgmr.msra.gmra.mxu1 %vm962_vm2, %v625_v27 }
 0x2c2   :  { %4393 = vmatprep.mubr.msk.bf16.mxu1 %vm5222_vm1, %v5221_v28 }
 0x364   :  { %v1003_v38 = vpop.f32.mrf.mxu0 }
 0x365   :  { %v5533_v39 = vadd.f32 %v1003_v38, %v287_v35  ;;  %v454_v38 = vadd.f32 %v5531_v37, %v319_v36 }
 0x366   :  { %v4341_v42 = vpop.f32.mrf.mxu0 }
 0x367   :  { %v1339_v43 = vsel %vm962_vm2, %v5533_v39, -inf }
 0x368   :  { %v1049_v44 = vpop.f32.mrf.mxu1  ;;  %1340 = vmax.xlane.f32.xlu1 %v1339_v43  ;;  %v1006_v45 = vpop.f32.mrf.mxu0 }
 0x369   :  { %v5539_v46 = vadd.f32 %v1049_v44, %v288_v40 }
 0x36a   :  { %v4342_v47 = vpop.f32.mrf.mxu0  ;;  %v4347_v48 = vpop.f32.mrf.mxu1 }
 0x36b   :  { %v1342_v49 = vsel %vm962_vm2, %v5539_v46, -inf }
 0x36c   :  { %1343 = vmax.xlane.f32.xlu0 %v1342_v49  ;;  %v1052_v50 = vpop.f32.mrf.mxu1  ;;  %v1095_v51 = vpop.f32.mrf.mxu0 }
 0x36d   :  { %v1333_v52 = vadd.f32 %v1095_v51, %v287_v35 }
 0x36e   :  { %v4348_v53 = vpop.f32.mrf.mxu1  ;;  %v4353_v54 = vpop.f32.mrf.mxu0 }
 0x36f   :  { %v1345_v55 = vsel %vm962_vm2, %v1333_v52, -inf }
 0x370   :  { %1346 = vmax.xlane.f32.xlu1 %v1345_v55  ;;  %v1098_v56 = vpop.f32.mrf.mxu0 }
 0x371   :  { %v1141_v57 = vpop.f32.mrf.mxu1 }
 0x372   :  { %v5544_v58 = vadd.f32 %v1141_v57, %v288_v40  ;;  %v4354_v59 = vpop.f32.mrf.mxu0 }
 0x373   :  { %v4359_v60 = vpop.f32.mrf.mxu1 }
 0x374   :  { %v1348_v61 = vsel %vm962_vm2, %v5544_v58, -inf  ;;  %v1187_v62 = vpop.f32.mrf.mxu0 }
 0x375   :  { %v1144_v63 = vpop.f32.mrf.mxu1  ;;  %1349 = vmax.xlane.f32.xlu1 %v1348_v61  ;;  %v5548_v1 = vadd.f32 %v1187_v62, %v287_v35 }
 0x376   :  { %v4365_v2 = vpop.f32.mrf.mxu0 }
 0x377   :  { %v4360_v3 = vpop.f32.mrf.mxu1  ;;  %v1351_v4 = vsel %vm962_vm2, %v5548_v1, -inf }
 0x378   :  { %v1190_v7 = vpop.f32.mrf.mxu0 }
 0x379   :  { %v1233_v8 = vpop.f32.mrf.mxu1  ;;  %1352 = vmax.xlane.f32.xlu1 %v1351_v4 }
 0x37a   :  { %v5552_v13 = vadd.f32 %v1233_v8, %v288_v40  ;;  %v4366_v14 = vpop.f32.mrf.mxu0 }
 0x37b   :  { %v4371_v15 = vpop.f32.mrf.mxu1 }
 0x37c   :  { %v1354_v16 = vsel %vm962_vm2, %v5552_v13, -inf  ;;  %v1279_v17 = vpop.f32.mrf.mxu0 }
 0x37d   :  { %1355 = vmax.xlane.f32.xlu0 %v1354_v16  ;;  %v1236_v18 = vpop.f32.mrf.mxu1  ;;  %v1337_v19 = vadd.f32 %v1279_v17, %v287_v35  ;;  %v450_v35 = vadd.f32 %v5527_v31, %v319_v36 }
 0x37e   :  { %v4377_v20 = vpop.f32.mrf.mxu0 }
 0x37f   :  { %v4372_v21 = vpop.f32.mrf.mxu1  ;;  %v1357_v22 = vsel %vm962_vm2, %v1337_v19, -inf }
 0x380   :  { %1358 = vmax.xlane.f32.xlu1 %v1357_v22  ;;  %v1282_v23 = vpop.f32.mrf.mxu0 }
 0x381   :  { %v1325_v24 = vpop.f32.mrf.mxu1 }
 0x382   :  { %v1338_v25 = vadd.f32 %v1325_v24, %v288_v40  ;;  %v4378_v26 = vpop.f32.mrf.mxu0 }
 0x383   :  { %v4383_v27 = vpop.f32.mrf.mxu1 }
 0x384   :  { %v1360_v29 = vsel %vm962_vm2, %v1338_v25, -inf }
 0x385   :  { %1361 = vmax.xlane.f32.xlu0 %v1360_v29  ;;  %v1328_v30 = vpop.f32.mrf.mxu1 }
 0x387   :  { %v4384_v32 = vpop.f32.mrf.mxu1 }
 0x3b3   :  { %794 = vxpose.xlu1.b32.start [1/2] (short) (narrow) %v450_v35, 32 }
 0x3b7   :  { %795 = vxpose.xlu1.b32.end [2/2] (short) (narrow) %v454_v38, 32 }
 0x3f1   :  { %v1341_v42 = vpop.xlane.xlu1 %1340 }
 0x3f2   :  { %v1363_v40 = vsub.f32 %v5533_v39, %v1341_v42 }
 0x3f4   :  { %v1371_v43 = vmul.f32 1.442695, %v1363_v40 }
 0x3f5   :  { %v1344_v55 = vpop.xlane.xlu0 %1343 }
 0x3f6   :  { %4732 = vpow2.f32 %v1371_v43  ;;  %v1364_v56 = vsub.f32 %v5539_v46, %v1344_v55 }
 0x3f8   :  { %v1373_v57 = vmul.f32 1.442695, %v1364_v56 }
 0x3f9   :  { %v1347_v44 = vpop.xlane.xlu1 %1346 }
 0x3fa   :  { %v1365_v45 = vsub.f32 %v1333_v52, %v1347_v44 }
 0x3fc   :  { %v1375_v47 = vmul.f32 1.442695, %v1365_v45 }
 0x3fe   :  { %4734 = vpow2.f32 %v1375_v47  ;;  %v1350_v37 = vpop.xlane.xlu1 %1349 }
 0x3ff   :  { %v1366_v59 = vsub.f32 %v5544_v58, %v1350_v37  ;;  %4736 = vpow2.f32 %v1373_v57 }
 0x401   :  { %v1377_v60 = vmul.f32 1.442695, %v1366_v59 }
 0x402   :  { %v1353_v50 = vpop.xlane.xlu1 %1352 }
 0x403   :  { %v4733_v48 = vpop.eup %4732  ;;  %v1367_v61 = vsub.f32 %v5548_v1, %v1353_v50  ;;  %4738 = vpow2.f32 %v1377_v60 }
 0x404   :  { %v1387_v49 = vsel %vm962_vm2, %v4733_v48, 0.0 }
 0x405   :  { %1388 = vadd.xlane.f32.xlu1 %v1387_v49  ;;  %v1379_v63 = vmul.f32 1.442695, %v1367_v61 }
 0x406   :  { %v1356_v62 = vpop.xlane.xlu0 %1355 }
 0x407   :  { %v1368_v2 = vsub.f32 %v5552_v13, %v1356_v62  ;;  %4740 = vpow2.f32 %v1379_v63 }
 0x409   :  { %v1359_v51 = vpop.xlane.xlu1 %1358  ;;  %v1381_v3 = vmul.f32 1.442695, %v1368_v2 }
 0x40a   :  { %v1369_v4 = vsub.f32 %v1337_v19, %v1359_v51 }
 0x40b   :  { %v5564_v11 = vpop.eup %4734  ;;  %4742 = vpow2.f32 %v1381_v3 }
 0x40c   :  { %v1393_v31 = vsel %vm962_vm2, %v5564_v11, 0.0  ;;  %v1383_v8 = vmul.f32 1.442695, %v1369_v4  ;;  %v5572_v46 = vpop.eup %4736 }
 0x40d   :  { %1394 = vadd.xlane.f32.xlu1 %v1393_v31  ;;  %v1390_v15 = vsel %vm962_vm2, %v5572_v46, 0.0 }
 0x40e   :  { %v1362_v7 = vpop.xlane.xlu0 %1361  ;;  %4744 = vpow2.f32 %v1383_v8 }
 0x40f   :  { %v1370_v14 = vsub.f32 %v1338_v25, %v1362_v7 }
 0x410   :  { %v5576_v1 = vpop.eup %4738 }
 0x411   :  { %v1385_v58 = vmul.f32 1.442695, %v1370_v14  ;;  %v1396_v13 = vsel %vm962_vm2, %v5576_v1, 0.0 }
 0x413   :  { %4746 = vpow2.f32 %v1385_v58 }
 0x414   :  { %v5581_v16 = vpop.eup %4740 }
 0x415   :  { %v1399_v17 = vsel %vm962_vm2, %v5581_v16, 0.0 }
 0x418   :  { %v5585_v18 = vpop.eup %4742 }
 0x419   :  { %v1402_v19 = vsel %vm962_vm2, %v5585_v18, 0.0 }
 0x41b   :  { %v5589_v20 = vpop.eup %4744 }
 0x41c   :  { %v1405_v21 = vsel %vm962_vm2, %v5589_v20, 0.0 }
 0x420   :  { %v5593_v22 = vpop.eup %4746 }
 0x421   :  { %v1408_v23 = vsel %vm962_vm2, %v5593_v22, 0.0 }
 0x42f   :  { %v810_v39 = vpop.trf.xlu1 }
 0x430   :  { %826 = vxpose.xlu0.b32.start.end [1/1] (short) (narrow) %v810_v39, 16 }
 0x433   :  { %v811_v53 = vpop.trf.xlu1 }
 0x437   :  { %v812_v54 = vpop.trf.xlu1 }
 0x43b   :  { %v813_v52 = vpop.trf.xlu1 }
 0x440   :  { %858 = vxpose.xlu1.b32.start.end [1/1] (short) (narrow) %v811_v53, 16 }
 0x445   :  { %922 = vxpose.xlu1.b32.start.end [1/1] (short) (narrow) %v813_v52, 16 }
 0x461   :  { %1391 = vadd.xlane.f32.xlu0 %v1390_v15 }
 0x463   :  { %4669 = vset.pattern.permute.xlu1 %v5220_v0 }
 0x465   :  { %1397 = vadd.xlane.f32.xlu0 %v1396_v13 }
 0x469   :  { %1400 = vadd.xlane.f32.xlu0 %v1399_v17 }
 0x46d   :  { %1403 = vadd.xlane.f32.xlu0 %v1402_v19 }
 0x471   :  { %1406 = vadd.xlane.f32.xlu0 %v1405_v21 }
 0x475   :  { %1409 = vadd.xlane.f32.xlu0 %v1408_v23 }
 0x48e   :  { %v1389_v24 = vpop.xlane.xlu1 %1388 }
 0x48f   :  { %4748 = vrcp.f32 %v1389_v24 }
 0x496   :  { %v1395_v25 = vpop.xlane.xlu1 %1394 }
 0x497   :  { %4750 = vrcp.f32 %v1395_v25  ;;  %v1825_v25 = vld [vmem:[#allocation11] sm:$0xf] }
 0x49c   :  { %v4749_v26 = vpop.eup %4748 }
 0x49d   :  { %v1427_v27 = vmul.f32 %v4749_v26, %v4733_v48  ;;  %v1833_v26 = vsel %vm1455_vm4, %v1825_v25, 0 }
 0x49f   :  { %v1435_v29 = vpack.c.bf16 %v1427_v27, %v1427_v27  ;;  %v1826_v27 = vld [vmem:[#allocation11 + $0x4] sm:$0xf] }
 0x4a1   :  { %1444 = vst.msk [vmem:[#allocation27] sm:$0xf] %vm1443_vm3, %v1435_v29 }
 0x4a2   :  { %890 = vxpose.xlu0.b32.start.end [1/1] (short) (narrow) %v812_v54, 16 }
 0x4a4   :  { %v4751_v30 = vpop.eup %4750 }
 0x4a5   :  { %v1429_v32 = vmul.f32 %v4751_v30, %v5564_v11 }
 0x4a7   :  { %v1437_v33 = vpack.c.bf16 %v1429_v32, %v1429_v32 }
 0x4a9   :  { %1446 = vst.msk [vmem:[#allocation27 + $0x8] sm:$0xf] %vm1443_vm3, %v1437_v33 }
 0x4ac   :  { %v842_v36 = vpop.trf.xlu0 }
 0x4ad   :  { %v954_v35 = vpack.c.bf16 %v842_v36, %v842_v36 }
 0x4af   :  { %v1457_v38 = vsel %vm1455_vm4, %v954_v35, 0 }
 0x4b0   :  { %4386 = vmatpush3.bf16.msra.mxu0 %v1457_v38  ;;  %v843_v42 = vpop.trf.xlu0 }
 0x4b1   :  { %4397 = vmatprep.subr.bf16.mxu0 %v5221_v28  ;;  %v955_v40 = vpack.c.bf16 %v843_v42, %v843_v42 }
 0x4b3   :  { %4388 = vmatmul.mubr.msk.bf16.vlgmr.msra.gmra.mxu0 %vm962_vm2, %v1435_v29  ;;  %v1503_v43 = vsel %vm1455_vm4, %v955_v40, 0  ;;  %v1880_v29 = vsel %vm1455_vm4, %v1826_v27, 0 }
 0x4b4   :  { %4399 = vmatprep.mubr.msk.bf16.mxu0 %vm5222_vm1, %v5221_v28  ;;  %4392 = vmatpush3.bf16.msra.mxu1 %v1503_v43  ;;  %v1827_v43 = vld [vmem:[#allocation11 + $0x8] sm:$0xf] }
 0x4b5   :  { %4403 = vmatprep.subr.bf16.mxu1 %v5221_v28 }
 0x4bc   :  { %v874_v44 = vpop.trf.xlu1 }
 0x4bd   :  { %v956_v45 = vpack.c.bf16 %v874_v44, %v874_v44 }
 0x4bf   :  { %v1549_v47 = vsel %vm1455_vm4, %v956_v45, 0 }
 0x4c0   :  { %4398 = vmatpush3.bf16.msra.mxu0 %v1549_v47  ;;  %v875_v31 = vpop.trf.xlu1  ;;  %v1927_v47 = vsel %vm1455_vm4, %v1827_v43, 0 }
 0x4c1   :  { %4409 = vmatprep.subr.bf16.mxu0 %v5221_v28  ;;  %v957_v50 = vpack.c.bf16 %v875_v31, %v875_v31  ;;  %v1828_v31 = vld [vmem:[#allocation11 + $0xc] sm:$0xf] }
 0x4c3   :  { %4400 = vmatmul.mubr.msk.bf16.vlgmr.msra.gmra.mxu0 %vm962_vm2, %v1437_v33  ;;  %v1595_v52 = vsel %vm1455_vm4, %v957_v50, 0 }
 0x4c4   :  { %4411 = vmatprep.mubr.msk.bf16.mxu0 %vm5222_vm1, %v5221_v28  ;;  %v938_v15 = vpop.trf.xlu1 }
 0x4c8   :  { %v939_v17 = vpop.trf.xlu1 }
 0x4c9   :  { %v961_v23 = vpack.c.bf16 %v939_v17, %v939_v17 }
 0x4cb   :  { %4668 = vset.pattern.permute.xlu0 %v5220_v0  ;;  %v1779_v24 = vsel %vm1455_vm4, %v961_v23, 0 }
 0x4ea   :  { %v1392_v48 = vpop.xlane.xlu0 %1391 }
 0x4eb   :  { %4752 = vrcp.f32 %v1392_v48 }
 0x4ee   :  { %v1398_v49 = vpop.xlane.xlu0 %1397 }
 0x4ef   :  { %4754 = vrcp.f32 %v1398_v49 }
 0x4f2   :  { %v1401_v11 = vpop.xlane.xlu0 %1400 }
 0x4f3   :  { %4756 = vrcp.f32 %v1401_v11 }
 0x4f6   :  { %v1404_v37 = vpop.xlane.xlu0 %1403 }
 0x4f7   :  { %4758 = vrcp.f32 %v1404_v37 }
 0x4f8   :  { %v4753_v51 = vpop.eup %4752 }
 0x4f9   :  { %v1428_v39 = vmul.f32 %v4753_v51, %v5572_v46  ;;  %v1974_v51 = vsel %vm1455_vm4, %v1828_v31, 0 }
 0x4fa   :  { %v1407_v53 = vpop.xlane.xlu0 %1406 }
 0x4fb   :  { %4760 = vrcp.f32 %v1407_v53  ;;  %v1436_v54 = vpack.c.bf16 %v1428_v39, %v1428_v39 }
 0x4fc   :  { %v4755_v55 = vpop.eup %4754 }
 0x4fd   :  { %1445 = vst.msk [vmem:[#allocation27 + $0x4] sm:$0xf] %vm1443_vm3, %v1436_v54  ;;  %4394 = vmatmul.mubr.msk.bf16.vlgmr.msra.gmra.mxu1 %vm962_vm2, %v1436_v54  ;;  %v1430_v56 = vmul.f32 %v4755_v55, %v5576_v1 }
 0x4fe   :  { %v1410_v57 = vpop.xlane.xlu0 %1409  ;;  %4404 = vmatpush3.bf16.msra.mxu1 %v1595_v52  ;;  %4405 = vmatprep.mubr.msk.bf16.mxu1 %vm5222_vm1, %v5221_v28 }
 0x4ff   :  { %4762 = vrcp.f32 %v1410_v57  ;;  %v1438_v59 = vpack.c.bf16 %v1430_v56, %v1430_v56  ;;  %4415 = vmatprep.subr.bf16.mxu1 %v5221_v28 }
 0x500   :  { %v4757_v60 = vpop.eup %4756 }
 0x501   :  { %1447 = vst.msk [vmem:[#allocation27 + $0xc] sm:$0xf] %vm1443_vm3, %v1438_v59  ;;  %v1431_v61 = vmul.f32 %v4757_v60, %v5581_v16  ;;  %v960_v16 = vpack.c.bf16 %v938_v15, %v938_v15 }
 0x503   :  { %v1439_v62 = vpack.c.bf16 %v1431_v61, %v1431_v61 }
 0x504   :  { %v4759_v63 = vpop.eup %4758 }
 0x505   :  { %4406 = vmatmul.mubr.msk.bf16.vlgmr.msra.gmra.mxu1 %vm962_vm2, %v1438_v59  ;;  %1448 = vst.msk [vmem:[#allocation27 + $0x10] sm:$0xf] %vm1443_vm3, %v1439_v62  ;;  %v1432_v2 = vmul.f32 %v4759_v63, %v5585_v18 }
 0x506   :  { %4417 = vmatprep.mubr.msk.bf16.mxu1 %vm5222_vm1, %v5221_v28 }
 0x507   :  { %v1440_v3 = vpack.c.bf16 %v1432_v2, %v1432_v2 }
 0x508   :  { %v4761_v4 = vpop.eup %4760 }
 0x509   :  { %1449 = vst.msk [vmem:[#allocation27 + $0x14] sm:$0xf] %vm1443_vm3, %v1440_v3  ;;  %v1433_v7 = vmul.f32 %v4761_v4, %v5589_v20  ;;  %v1733_v20 = vsel %vm1455_vm4, %v960_v16, 0 }
 0x50b   :  { %v1441_v8 = vpack.c.bf16 %v1433_v7, %v1433_v7 }
 0x50c   :  { %v4763_v14 = vpop.eup %4762 }
 0x50d   :  { %1450 = vst.msk [vmem:[#allocation27 + $0x18] sm:$0xf] %vm1443_vm3, %v1441_v8  ;;  %v1434_v46 = vmul.f32 %v4763_v14, %v5593_v22 }
 0x50f   :  { %v1442_v58 = vpack.c.bf16 %v1434_v46, %v1434_v46 }
 0x511   :  { %1451 = vst.msk [vmem:[#allocation27 + $0x1c] sm:$0xf] %vm1443_vm3, %v1442_v58 }
 0x51e   :  { %v906_v1 = vpop.trf.xlu0 }
 0x51f   :  { %v958_v13 = vpack.c.bf16 %v906_v1, %v906_v1 }
 0x521   :  { %v1641_v18 = vsel %vm1455_vm4, %v958_v13, 0 }
 0x522   :  { %v907_v19 = vpop.trf.xlu0  ;;  %4410 = vmatpush3.bf16.msra.mxu0 %v1641_v18 }
 0x523   :  { %v959_v21 = vpack.c.bf16 %v907_v19, %v907_v19  ;;  %4421 = vmatprep.subr.bf16.mxu0 %v5221_v28 }
 0x525   :  { %v1687_v22 = vsel %vm1455_vm4, %v959_v21, 0  ;;  %4412 = vmatmul.mubr.msk.bf16.vlgmr.msra.gmra.mxu0 %vm962_vm2, %v1439_v62 }
 0x526   :  { %4416 = vmatpush3.bf16.msra.mxu1 %v1687_v22  ;;  %4422 = vmatpush3.bf16.msra.mxu0 %v1733_v20 }
 0x527   :  { %4423 = vmatprep.mubr.msk.bf16.mxu0 %vm5222_vm1, %v5221_v28  ;;  %4427 = vmatprep.subr.bf16.mxu1 %v5221_v28 }
 0x528   :  { %4433 = vmatprep.subr.bf16.mxu0 %v5221_v28 }
 0x529   :  { %4418 = vmatmul.mubr.msk.bf16.vlgmr.msra.gmra.mxu1 %vm962_vm2, %v1440_v3 }
 0x52a   :  { %4428 = vmatpush3.bf16.msra.mxu1 %v1779_v24  ;;  %4429 = vmatprep.mubr.msk.bf16.mxu1 %vm5222_vm1, %v5221_v28 }
 0x52b   :  { %4439 = vmatprep.subr.bf16.mxu1 %v5221_v28 }
 0x52d   :  { %4424 = vmatmul.mubr.msk.bf16.vlgmr.msra.gmra.mxu0 %vm962_vm2, %v1441_v8 }
 0x52e   :  { %4435 = vmatprep.mubr.msk.bf16.mxu0 %vm5222_vm1, %v5221_v28  ;;  %4434 = vmatpush3.bf16.msra.mxu0 %v1833_v26 }
 0x52f   :  { %4445 = vmatprep.subr.bf16.mxu0 %v5221_v28 }
 0x531   :  { %4430 = vmatmul.mubr.msk.bf16.vlgmr.msra.gmra.mxu1 %vm962_vm2, %v1442_v58 }
 0x532   :  { %4441 = vmatprep.mubr.msk.bf16.mxu1 %vm5222_vm1, %v5221_v28  ;;  %4440 = vmatpush3.bf16.msra.mxu1 %v1880_v29 }
 0x533   :  { %4451 = vmatprep.subr.bf16.mxu1 %v5221_v28 }
 0x573   :  { %v1493_v30 = vpop.f32.mrf.mxu0 }
 0x575   :  { %v4389_v32 = vpop.f32.mrf.mxu0 }
 0x577   :  { %v1496_v33 = vpop.f32.mrf.mxu0 }
 0x579   :  { %v4390_v36 = vpop.f32.mrf.mxu0 }
 0x583   :  { %v1585_v35 = vpop.f32.mrf.mxu0 }
 0x585   :  { %v4401_v38 = vpop.f32.mrf.mxu0 }
 0x587   :  { %v1588_v42 = vpop.f32.mrf.mxu0 }
 0x588   :  { %v4189_v42 = vld [vmem:[#allocation13] ss:$0 sm:$0xff] }
 0x589   :  { %v4402_v40 = vpop.f32.mrf.mxu0 }
 0x5bd   :  { %v1539_v44 = vpop.f32.mrf.mxu1 }
 0x5be   :  { %v1821_v45 = vpack.c.bf16 %v1539_v44, %v1493_v30 }
 0x5bf   :  { %v4395_v48 = vpop.f32.mrf.mxu1 }
 0x5c0   :  { %4436 = vmatmul.mubr.msk.bf16.vlgmr.msra.gmra.mxu0 %vm962_vm2, %v1821_v45 }
 0x5c1   :  { %v1542_v49 = vpop.f32.mrf.mxu1  ;;  %4446 = vmatpush3.bf16.msra.mxu0 %v1927_v47  ;;  %4447 = vmatprep.mubr.msk.bf16.mxu0 %vm5222_vm1, %v5221_v28 }
 0x5c2   :  { %4457 = vmatprep.subr.bf16.mxu0 %v5221_v28 }
 0x5c3   :  { %v4396_v11 = vpop.f32.mrf.mxu1 }
 0x5c5   :  { %v1631_v37 = vpop.f32.mrf.mxu1 }
 0x5c6   :  { %v1822_v50 = vpack.c.bf16 %v1631_v37, %v1585_v35 }
 0x5c7   :  { %v4407_v39 = vpop.f32.mrf.mxu1 }
 0x5c8   :  { %4442 = vmatmul.mubr.msk.bf16.vlgmr.msra.gmra.mxu1 %vm962_vm2, %v1822_v50 }
 0x5c9   :  { %v1634_v53 = vpop.f32.mrf.mxu1  ;;  %4452 = vmatpush3.bf16.msra.mxu1 %v1974_v51  ;;  %4453 = vmatprep.mubr.msk.bf16.mxu1 %vm5222_vm1, %v5221_v28 }
 0x5cb   :  { %v4408_v54 = vpop.f32.mrf.mxu1 }
 0x5cc   :  { %v279_v54 = vld [vmem:[%s6011_s3] sm:$0xff] }
 0x5e5   :  { %v1677_v52 = vpop.f32.mrf.mxu0 }
 0x5e7   :  { %v4413_v55 = vpop.f32.mrf.mxu0 }
 0x5e9   :  { %v1680_v56 = vpop.f32.mrf.mxu0  ;;  %v1723_v57 = vpop.f32.mrf.mxu1 }
 0x5ea   :  { %v1823_v59 = vpack.c.bf16 %v1723_v57, %v1677_v52 }
 0x5eb   :  { %v4414_v60 = vpop.f32.mrf.mxu0  ;;  %v4419_v61 = vpop.f32.mrf.mxu1 }
 0x5ec   :  { %4448 = vmatmul.mubr.msk.bf16.vlgmr.msra.gmra.mxu0 %vm962_vm2, %v1823_v59 }
 0x5ed   :  { %v1726_v62 = vpop.f32.mrf.mxu1  ;;  %v1769_v63 = vpop.f32.mrf.mxu0  ;;  %4461 = vmatprep.mubr.msk.bf16.mxu0 %vm5222_vm1, %v5221_v28 }
 0x5ef   :  { %v4420_v2 = vpop.f32.mrf.mxu1  ;;  %v4425_v3 = vpop.f32.mrf.mxu0 }
 0x5f0   :  { %v4718_v2 = vld [vmem:[#allocation19 + $0x10] ss:$8 sps:$4 sm:$0xff]   ;;  %v4720_v3 = vld [vmem:[#allocation19 + $0x14] ss:$8 sps:$4 sm:$0xff]  }
 0x5f1   :  { %v1772_v4 = vpop.f32.mrf.mxu0  ;;  %v1815_v7 = vpop.f32.mrf.mxu1  ;;  %2219 = vmatprep.subr.bf16.mxu1 %v4720_v3 }
 0x5f2   :  { %v1824_v8 = vpack.c.bf16 %v1815_v7, %v1769_v63  ;;  %v280_v63 = vld [vmem:[%s6011_s3 + $0x8] sm:$0xff]  ;;  %v4723_v4 = vld [vmem:[#allocation19 + $0x4] ss:$8 sps:$4 sm:$0xff]   ;;  %v4721_v7 = vld [vmem:[#allocation19] ss:$8 sps:$4 sm:$0xff]  }
 0x5f3   :  { %v4426_v14 = vpop.f32.mrf.mxu0  ;;  %v4431_v46 = vpop.f32.mrf.mxu1 }
 0x5f4   :  { %4454 = vmatmul.mubr.msk.bf16.vlgmr.msra.gmra.mxu1 %vm962_vm2, %v1824_v8  ;;  %v277_v8 = vld [vmem:[#allocation5] sm:$0xff]  ;;  %v278_v14 = vld [vmem:[#allocation5 + $0x8] sm:$0xff] }
 0x5f5   :  { %v1818_v58 = vpop.f32.mrf.mxu1  ;;  %2239 = vmatprep.mubr.bf16.mxu1 %v5220_v0  ;;  %2220 = vmatpush1.bf16.msra.mxu1 %v4718_v2  ;;  %v2167_v46 = vpack.c.bf16 %v278_v14, %v277_v8 }
 0x5f6   :  { %2221 = vmatprep.subr.bf16.mxu1 %v4723_v4  ;;  %v4724_v58 = vld [vmem:[#allocation16 + $0x8] sm:$0xff]  }
 0x5f7   :  { %v4432_v15 = vpop.f32.mrf.mxu1  ;;  %4458 = vmatpush3.bf16.msra.mxu0 %v4724_v58 }
 0x5f8   :  { %4459 = vmatprep.subr.bf16.mxu0 %v5221_v28  ;;  %v4725_v15 = vld [vmem:[#allocation16] sm:$0xff]  }
 0x5f9   :  { %2222 = vmatpush1.bf16.msra.mxu1 %v4721_v7 }
 0x5fa   :  { %4471 = vmatprep.subr.bf16.mxu1 %v5221_v28 }
 0x5fb   :  { %4460 = vmatpush3.bf16.msra.mxu0 %v4725_v15 }
 0x5fc   :  { %4200 = vmatmul.mubr.msk.bf16.vlgmr.msra.gmra.mxu1 %vm368_vm0, %v2167_v46  ;;  %4465 = vmatprep.subr.bf16.mxu0 %v5221_v28 }
 0x5fd   :  { %4473 = vmatprep.mubr.msk.bf16.mxu1 %vm5222_vm1, %v5221_v28 }
 0x680   :  { %v1869_v1 = vpop.f32.mrf.mxu0 }
 0x681   :  { %v2017_v26 = vsel %vm368_vm0, %v1869_v1, 0.0 }
 0x682   :  { %v4437_v13 = vpop.f32.mrf.mxu0 }
 0x684   :  { %v1872_v16 = vpop.f32.mrf.mxu0 }
 0x685   :  { %v2024_v36 = vsel %vm368_vm0, %v1872_v16, 0.0 }
 0x686   :  { %v4438_v17 = vpop.f32.mrf.mxu0 }
 0x688   :  { %v1916_v18 = vpop.f32.mrf.mxu1 }
 0x689   :  { %v2018_v24 = vsel %vm368_vm0, %v1916_v18, 0.0 }
 0x68a   :  { %v4443_v19 = vpop.f32.mrf.mxu1  ;;  %v2019_v29 = vadd.f32 %v2018_v24, %v2017_v26 }
 0x68c   :  { %v1919_v21 = vpop.f32.mrf.mxu1 }
 0x68d   :  { %v2025_v30 = vsel %vm368_vm0, %v1919_v21, 0.0 }
 0x68e   :  { %v4444_v20 = vpop.f32.mrf.mxu1  ;;  %v2026_v40 = vadd.f32 %v2025_v30, %v2024_v36 }
 0x68f   :  { %v4190_v20 = vld [vmem:[%s6012_s7] ss:$0 sm:$0xff] }
 0x6ac   :  { %v1963_v23 = vpop.f32.mrf.mxu0 }
 0x6ad   :  { %v2020_v27 = vsel %vm368_vm0, %v1963_v23, 0.0 }
 0x6ae   :  { %v4449_v22 = vpop.f32.mrf.mxu0  ;;  %v2021_v32 = vadd.f32 %v2020_v27, %v2019_v29 }
 0x6b0   :  { %v1966_v25 = vpop.f32.mrf.mxu0 }
 0x6b1   :  { %v2027_v35 = vsel %vm368_vm0, %v1966_v25, 0.0  ;;  %v4191_v25 = vld [vmem:[#allocation14] ss:$0 sm:$0xff] }
 0x6b2   :  { %v4450_v0 = vpop.f32.mrf.mxu0  ;;  %v2028_v45 = vadd.f32 %v2027_v35, %v2026_v40 }
 0x6b4   :  { %v2010_v33 = vpop.f32.mrf.mxu1 }
 0x6b5   :  { %v2022_v38 = vsel %vm368_vm0, %v2010_v33, 0.0 }
 0x6b6   :  { %v2023_v43 = vadd.f32 %v2022_v38, %v2021_v32  ;;  %v4455_v44 = vpop.f32.mrf.mxu1  ;;  %v2172_v38 = vld [vmem:[#allocation20] sm:$0x3] }
 0x6b7   :  { %v5719_v40 = vrot.slane %v2172_v38, %v314_v12 }
 0x6b8   :  { %v2038_v47 = vadd.f32 %v4189_v42, %v2023_v43  ;;  %v2013_v48 = vpop.f32.mrf.mxu1 }
 0x6b9   :  { %v2029_v49 = vsel %vm368_vm0, %v2013_v48, 0.0 }
 0x6ba   :  { %v2030_v11 = vadd.f32 %v2029_v49, %v2028_v45  ;;  %v4456_v31 = vpop.f32.mrf.mxu1  ;;  %v2040_v37 = vadd.f32 %v2038_v47, %v5449_v5 }
 0x6bb   :  { %v4192_v31 = vld [vmem:[#allocation17] ss:$0 sm:$0xff] }
 0x6bc   :  { %v2039_v50 = vadd.f32 %v4189_v42, %v2030_v11  ;;  %v2044_v51 = vsel %vm368_vm0, %v2040_v37, 0.0  ;;  %v2177_v42 = vrot.slane %v2172_v38, %v310_v10  ;;  %v2241_v43 = vpop.f32.mrf.mxu1 }
 0x6bd   :  { %2045 = vadd.xlane.f32.xlu0 %v2044_v51 }
 0x6be   :  { %v2041_v39 = vadd.f32 %v2039_v50, %v5451_v6  ;;  %v2242_v44 = vadd.f32 %v2241_v43, %v2177_v42  ;;  %v2243_v45 = vpop.f32.mrf.mxu1 }
 0x6bf   :  { %v5722_v47 = vadd.f32 %v2243_v45, %v5719_v40 }
 0x6c0   :  { %v2047_v53 = vsel %vm368_vm0, %v2041_v39, 0.0  ;;  %v2245_v48 = vpop.f32.mrf.mxu1 }
 0x6c1   :  { %2048 = vadd.xlane.f32.xlu1 %v2047_v53  ;;  %v2246_v49 = vadd.f32 %v2245_v48, %v2177_v42 }
 0x6d3   :  { %2089 = vperm.xlu0 %4668, %v279_v54  }
 0x746   :  { %v2046_v52 = vpop.xlane.xlu0 %2045 }
 0x747   :  { %v2051_v55 = vmul.f32 0.03125, %v2046_v52 }
 0x749   :  { %v2053_v56 = vsub.f32 %v2040_v37, %v2051_v55 }
 0x74a   :  { %v2049_v57 = vpop.xlane.xlu1 %2048 }
 0x74b   :  { %v2052_v59 = vmul.f32 0.03125, %v2049_v57  ;;  %v2055_v5 = vmul.f32 %v2053_v56, %v2053_v56 }
 0x74d   :  { %v2054_v60 = vsub.f32 %v2041_v39, %v2052_v59  ;;  %v2057_v61 = vsel %vm368_vm0, %v2055_v5, 0.0 }
 0x74e   :  { %2058 = vadd.xlane.f32.xlu1 %v2057_v61  ;;  %v5700_v0 = vpop.permute.xlu0 %2089 }
 0x74f   :  { %v2056_v62 = vmul.f32 %v2054_v60, %v2054_v60 }
 0x751   :  { %v2060_v6 = vsel %vm368_vm0, %v2056_v62, 0.0 }
 0x752   :  { %2061 = vadd.xlane.f32.xlu1 %v2060_v6 }
 0x763   :  { %2094 = vperm.xlu1 %4669, %v280_v63  }
 0x78c   :  { %2418 = vxpose.xlu1.b32.start [1/2] (short) (narrow) %v2242_v44, 32 }
 0x790   :  { %2419 = vxpose.xlu1.b32.end [2/2] (short) (narrow) %v2246_v49, 32 }
 0x7d7   :  { %v2059_v1 = vpop.xlane.xlu1 %2058 }
 0x7d8   :  { %v2063_v13 = vmul.f32 0.03125, %v2059_v1 }
 0x7da   :  { %v2065_v16 = vadd.f32 1e-05, %v2063_v13 }
 0x7db   :  { %v2062_v17 = vpop.xlane.xlu1 %2061 }
 0x7dc   :  { %4764 = vrsqrt.f32 %v2065_v16  ;;  %v2064_v18 = vmul.f32 0.03125, %v2062_v17 }
 0x7de   :  { %v2066_v19 = vadd.f32 1e-05, %v2064_v18 }
 0x7df   :  { %v5702_v30 = vpop.permute.xlu1 %2094 }
 0x7e0   :  { %4766 = vrsqrt.f32 %v2066_v19 }
 0x7e9   :  { %v4765_v21 = vpop.eup %4764 }
 0x7ea   :  { %v2069_v23 = vmul.f32 %v4765_v21, %v2053_v56 }
 0x7ec   :  { %v2077_v22 = vmul.f32 %v4190_v20, %v2069_v23 }
 0x7ed   :  { %v4767_v24 = vpop.eup %4766 }
 0x7ee   :  { %v2070_v26 = vmul.f32 %v4767_v24, %v2054_v60  ;;  %v2085_v27 = vadd.f32 %v4191_v25, %v2077_v22 }
 0x7f0   :  { %v2078_v29 = vmul.f32 %v4190_v20, %v2070_v26  ;;  %v5705_v33 = vmul.f32 %v5700_v0, %v2085_v27 }
 0x7f2   :  { %v2086_v32 = vadd.f32 %v4191_v25, %v2078_v29 }
 0x7f4   :  { %v5708_v36 = vmul.f32 %v5702_v30, %v2086_v32 }
 0x7f6   :  { %v2099_v35 = vpack.c.bf16 %v5708_v36, %v5705_v33 }
 0x7f8   :  { %4462 = vmatmul.mubr.msk.bf16.vlgmr.msra.gmra.mxu0 %vm368_vm0, %v2099_v35 }
 0x7f9   :  { %4467 = vmatprep.mubr.msk.bf16.mxu0 %vm5222_vm1, %v5221_v28 }
 0x808   :  { %v2434_v11 = vpop.trf.xlu1 }
 0x809   :  { %2450 = vxpose.xlu1.b32.start.end [1/1] (short) (narrow) %v2434_v11, 16 }
 0x80c   :  { %v2435_v53 = vpop.trf.xlu1 }
 0x810   :  { %v2436_v54 = vpop.trf.xlu1 }
 0x814   :  { %v2437_v52 = vpop.trf.xlu1 }
 0x885   :  { %v2466_v55 = vpop.trf.xlu1 }
 0x886   :  { %v2578_v56 = vpack.c.bf16 %v2466_v55, %v2466_v55 }
 0x888   :  { %v2758_v57 = vsel %vm962_vm2, %v2578_v56, 0 }
 0x889   :  { %4466 = vmatpush3.bf16.xpose.msra.mxu0 %v2758_v57  ;;  %v2467_v59 = vpop.trf.xlu1 }
 0x88a   :  { %v2579_v5 = vpack.c.bf16 %v2467_v59, %v2467_v59  ;;  %4477 = vmatprep.subr.bf16.mxu0 %v5221_v28 }
 0x88c   :  { %v2804_v60 = vsel %vm962_vm2, %v2579_v5, 0 }
 0x88d   :  { %4472 = vmatpush3.bf16.xpose.msra.mxu1 %v2804_v60 }
 0x88e   :  { %4483 = vmatprep.subr.bf16.mxu1 %v5221_v28 }
 0x8b8   :  { %v2160_v37 = vpop.f32.mrf.mxu0 }
 0x8b9   :  { %v2161_v50 = vadd.f32 %v4192_v31, %v2160_v37 }
 0x8ba   :  { %v4463_v10 = vpop.f32.mrf.mxu0 }
 0x8bb   :  { %2250 = vxpose.xlu0.b32.start [1/2] (short) (narrow) %v2161_v50, 32 }
 0x8bc   :  { %v2163_v51 = vpop.f32.mrf.mxu0 }
 0x8bd   :  { %v2164_v12 = vadd.f32 %v4192_v31, %v2163_v51 }
 0x8be   :  { %v4464_v39 = vpop.f32.mrf.mxu0 }
 0x8bf   :  { %2251 = vxpose.xlu0.b32.end [2/2] (short) (narrow) %v2164_v12, 32 }
 0x937   :  { %v2266_v61 = vpop.trf.xlu0 }
 0x938   :  { %v4670_v62 = vpack.i.bf16 %v2435_v53, %v2266_v61 }
 0x93a   :  { %4671 = vxpose.xlu1.b32.start.end [1/1] (short) (narrow) %v4670_v62, 16 }
 0x93b   :  { %v2267_v6 = vpop.trf.xlu0 }
 0x93c   :  { %v4682_v63 = vpack.i.bf16 %v2436_v54, %v2267_v6  ;;  %v5764_v6 = vpop.f32.mrf.mxu1 }
 0x93e   :  { %4683 = vxpose.xlu0.b32.start.end [1/1] (short) (narrow) %v4682_v63, 16 }
 0x93f   :  { %v2268_v2 = vpop.trf.xlu0 }
 0x940   :  { %v4694_v3 = vpack.i.bf16 %v2437_v52, %v2268_v2  ;;  %v4243_v52 = vld [vmem:[#allocation8] sm:$0xf]  }
 0x941   :  { %v4244_v55 = vunpack.c.0.s8 %v4243_v52  ;;  %v4245_v57 = vunpack.c.1.s8 %v4243_v52 }
 0x942   :  { %4695 = vxpose.xlu1.b32.start.end [1/1] (short) (narrow) %v4694_v3, 16 }
 0x943   :  { %v2269_v4 = vpop.trf.xlu0  ;;  %v293_v56 = vcvt.s32.f32 %v4244_v55  ;;  %v294_v5 = vcvt.s32.f32 %v4245_v57 }
 0x945   :  { %v295_v59 = vmul.f32 -1e+30, %v293_v56  ;;  %v296_v62 = vmul.f32 -1e+30, %v294_v5 }
 0x947   :  { %2378 = vxpose.xlu1.b32.start.end [1/1] (short) (narrow) %v2269_v4, 16 }
 0x9b6   :  { %v4672_v7 = vpop.trf.xlu1 }
 0x9b7   :  { %v4676_v8 = vunpack.i.h.bf16 %v4672_v7  ;;  %v4673_v14 = vunpack.i.l.bf16 %v4672_v7 }
 0x9b9   :  { %v2410_v46 = vpack.c.bf16 %v4673_v14, %v4673_v14  ;;  %v2580_v58 = vpack.c.bf16 %v4676_v8, %v4676_v8 }
 0x9ba   :  { %v4677_v15 = vpop.trf.xlu1  ;;  %v4684_v1 = vpop.trf.xlu0 }
 0x9bb   :  { %v4681_v13 = vunpack.i.h.bf16 %v4677_v15  ;;  %v4678_v16 = vunpack.i.l.bf16 %v4677_v15  ;;  %4468 = vmatmul.mubr.msk.bf16.vlgmr.msra.gmra.mxu0 %vm962_vm2, %v2410_v46  ;;  %v2850_v17 = vsel %vm962_vm2, %v2580_v58, 0  ;;  %v4688_v18 = vunpack.i.h.bf16 %v4684_v1 }
 0x9bc   :  { %4479 = vmatprep.mubr.msk.bf16.mxu0 %vm5222_vm1, %v5221_v28  ;;  %4478 = vmatpush3.bf16.xpose.msra.mxu0 %v2850_v17  ;;  %v4685_v21 = vunpack.i.l.bf16 %v4684_v1 }
 0x9bd   :  { %v2411_v19 = vpack.c.bf16 %v4678_v16, %v4678_v16  ;;  %v2581_v20 = vpack.c.bf16 %v4681_v13, %v4681_v13  ;;  %4489 = vmatprep.subr.bf16.mxu0 %v5221_v28  ;;  %v2582_v22 = vpack.c.bf16 %v4688_v18, %v4688_v18 }
 0x9be   :  { %v4689_v23 = vpop.trf.xlu0  ;;  %v4696_v24 = vpop.trf.xlu1  ;;  %v2412_v27 = vpack.c.bf16 %v4685_v21, %v4685_v21 }
 0x9bf   :  { %4474 = vmatmul.mubr.msk.bf16.vlgmr.msra.gmra.mxu1 %vm962_vm2, %v2411_v19  ;;  %v2896_v25 = vsel %vm962_vm2, %v2581_v20, 0  ;;  %v4693_v26 = vunpack.i.h.bf16 %v4689_v23  ;;  %v4690_v29 = vunpack.i.l.bf16 %v4689_v23  ;;  %v2942_v35 = vsel %vm962_vm2, %v2582_v22, 0 }
 0x9c0   :  { %4484 = vmatpush3.bf16.xpose.msra.mxu1 %v2896_v25  ;;  %4485 = vmatprep.mubr.msk.bf16.mxu1 %vm5222_vm1, %v5221_v28  ;;  %v4700_v38 = vunpack.i.h.bf16 %v4696_v24  ;;  %v4697_v44 = vunpack.i.l.bf16 %v4696_v24 }
 0x9c1   :  { %4495 = vmatprep.subr.bf16.mxu1 %v5221_v28  ;;  %v2583_v32 = vpack.c.bf16 %v4693_v26, %v4693_v26  ;;  %v2413_v43 = vpack.c.bf16 %v4690_v29, %v4690_v29 }
 0x9c2   :  { %v4701_v42 = vpop.trf.xlu1  ;;  %v2584_v49 = vpack.c.bf16 %v4700_v38, %v4700_v38  ;;  %v2414_v31 = vpack.c.bf16 %v4697_v44, %v4697_v44 }
 0x9c3   :  { %4480 = vmatmul.mubr.msk.bf16.vlgmr.msra.gmra.mxu0 %vm962_vm2, %v2412_v27  ;;  %v2988_v45 = vsel %vm962_vm2, %v2583_v32, 0  ;;  %v4705_v48 = vunpack.i.h.bf16 %v4701_v42  ;;  %v4702_v11 = vunpack.i.l.bf16 %v4701_v42 }
 0x9c4   :  { %4490 = vmatpush3.bf16.xpose.msra.mxu0 %v2942_v35  ;;  %4491 = vmatprep.mubr.msk.bf16.mxu0 %vm5222_vm1, %v5221_v28  ;;  %v3034_v50 = vsel %vm962_vm2, %v2584_v49, 0 }
 0x9c5   :  { %4501 = vmatprep.subr.bf16.mxu0 %v5221_v28  ;;  %v2585_v37 = vpack.c.bf16 %v4705_v48, %v4705_v48  ;;  %v2415_v51 = vpack.c.bf16 %v4702_v11, %v4702_v11 }
 0x9c6   :  { %v2394_v10 = vpop.trf.xlu1 }
 0x9c7   :  { %4486 = vmatmul.mubr.msk.bf16.vlgmr.msra.gmra.mxu1 %vm962_vm2, %v2413_v43  ;;  %v3080_v12 = vsel %vm962_vm2, %v2585_v37, 0  ;;  %v2416_v39 = vpack.c.bf16 %v2394_v10, %v2394_v10 }
 0x9c8   :  { %4496 = vmatpush3.bf16.xpose.msra.mxu1 %v2988_v45  ;;  %4497 = vmatprep.mubr.msk.bf16.mxu1 %vm5222_vm1, %v5221_v28 }
 0x9c9   :  { %4507 = vmatprep.subr.bf16.mxu1 %v5221_v28 }
 0x9ca   :  { %v2395_v53 = vpop.trf.xlu1 }
 0x9cb   :  { %4492 = vmatmul.mubr.msk.bf16.vlgmr.msra.gmra.mxu0 %vm962_vm2, %v2414_v31  ;;  %v2417_v54 = vpack.c.bf16 %v2395_v53, %v2395_v53 }
 0x9cc   :  { %4502 = vmatpush3.bf16.xpose.msra.mxu0 %v3034_v50  ;;  %4503 = vmatprep.mubr.msk.bf16.mxu0 %vm5222_vm1, %v5221_v28 }
 0x9cd   :  { %4513 = vmatprep.subr.bf16.mxu0 %v5221_v28 }
 0x9cf   :  { %4498 = vmatmul.mubr.msk.bf16.vlgmr.msra.gmra.mxu1 %vm962_vm2, %v2415_v51 }
 0x9d0   :  { %4508 = vmatpush3.bf16.xpose.msra.mxu1 %v3080_v12  ;;  %4509 = vmatprep.mubr.msk.bf16.mxu1 %vm5222_vm1, %v5221_v28 }
 0x9d1   :  { %4519 = vmatprep.subr.bf16.mxu1 %v5221_v28 }
 0x9d3   :  { %4504 = vmatmul.mubr.msk.bf16.vlgmr.msra.gmra.mxu0 %vm962_vm2, %v2416_v39 }
 0x9d4   :  { %4515 = vmatprep.mubr.msk.bf16.mxu0 %vm5222_vm1, %v5221_v28 }
 0x9d7   :  { %4510 = vmatmul.mubr.msk.bf16.vlgmr.msra.gmra.mxu1 %vm962_vm2, %v2417_v54 }
 0x9d8   :  { %4521 = vmatprep.mubr.msk.bf16.mxu1 %vm5222_vm1, %v5221_v28 }
 0xa7b   :  { %v2794_v60 = vpop.f32.mrf.mxu0 }
 0xa7c   :  { %v3122_v61 = vadd.f32 %v2794_v60, %v295_v59 }
 0xa7d   :  { %v4469_v63 = vpop.f32.mrf.mxu0 }
 0xa7e   :  { %v3130_v2 = vsel %vm962_vm2, %v3122_v61, -inf }
 0xa7f   :  { %v2840_v3 = vpop.f32.mrf.mxu1  ;;  %3131 = vmax.xlane.f32.xlu0 %v3130_v2  ;;  %v2797_v4 = vpop.f32.mrf.mxu0 }
 0xa80   :  { %v3123_v7 = vadd.f32 %v2840_v3, %v296_v62 }
 0xa81   :  { %v4470_v8 = vpop.f32.mrf.mxu0  ;;  %v4475_v14 = vpop.f32.mrf.mxu1 }
 0xa82   :  { %v3133_v46 = vsel %vm962_vm2, %v3123_v7, -inf }
 0xa83   :  { %v2843_v58 = vpop.f32.mrf.mxu1  ;;  %3134 = vmax.xlane.f32.xlu1 %v3133_v46  ;;  %v2886_v15 = vpop.f32.mrf.mxu0 }
 0xa84   :  { %v3124_v1 = vadd.f32 %v2886_v15, %v295_v59 }
 0xa85   :  { %v4476_v13 = vpop.f32.mrf.mxu1  ;;  %v4481_v16 = vpop.f32.mrf.mxu0 }
 0xa86   :  { %v3136_v18 = vsel %vm962_vm2, %v3124_v1, -inf }
 0xa87   :  { %v2932_v17 = vpop.f32.mrf.mxu1  ;;  %3137 = vmax.xlane.f32.xlu1 %v3136_v18  ;;  %v2889_v21 = vpop.f32.mrf.mxu0 }
 0xa88   :  { %v3125_v19 = vadd.f32 %v2932_v17, %v296_v62 }
 0xa89   :  { %v4487_v20 = vpop.f32.mrf.mxu1  ;;  %v4482_v23 = vpop.f32.mrf.mxu0 }
 0xa8a   :  { %v3139_v22 = vsel %vm962_vm2, %v3125_v19, -inf }
 0xa8b   :  { %v2935_v24 = vpop.f32.mrf.mxu1  ;;  %3140 = vmax.xlane.f32.xlu1 %v3139_v22  ;;  %v2978_v25 = vpop.f32.mrf.mxu0 }
 0xa8c   :  { %v3126_v26 = vadd.f32 %v2978_v25, %v295_v59 }
 0xa8d   :  { %v4488_v27 = vpop.f32.mrf.mxu1  ;;  %v4493_v29 = vpop.f32.mrf.mxu0 }
 0xa8e   :  { %v3142_v35 = vsel %vm962_vm2, %v3126_v26, -inf }
 0xa8f   :  { %v3024_v32 = vpop.f32.mrf.mxu1  ;;  %3143 = vmax.xlane.f32.xlu0 %v3142_v35  ;;  %v2981_v42 = vpop.f32.mrf.mxu0 }
 0xa90   :  { %v3127_v38 = vadd.f32 %v3024_v32, %v296_v62 }
 0xa91   :  { %v4499_v43 = vpop.f32.mrf.mxu1  ;;  %v4494_v44 = vpop.f32.mrf.mxu0 }
 0xa92   :  { %v3145_v45 = vsel %vm962_vm2, %v3127_v38, -inf }
 0xa93   :  { %v3027_v48 = vpop.f32.mrf.mxu1  ;;  %3146 = vmax.xlane.f32.xlu1 %v3145_v45  ;;  %v3070_v49 = vpop.f32.mrf.mxu0 }
 0xa94   :  { %v3128_v11 = vadd.f32 %v3070_v49, %v295_v59  ;;  %v2248_v49 = vadd.f32 %v5764_v6, %v5719_v40 }
 0xa95   :  { %v4500_v31 = vpop.f32.mrf.mxu1  ;;  %v4505_v37 = vpop.f32.mrf.mxu0 }
 0xa96   :  { %v3148_v10 = vsel %vm962_vm2, %v3128_v11, -inf }
 0xa97   :  { %v3116_v50 = vpop.f32.mrf.mxu1  ;;  %3149 = vmax.xlane.f32.xlu0 %v3148_v10  ;;  %v3073_v12 = vpop.f32.mrf.mxu0 }
 0xa98   :  { %v3129_v51 = vadd.f32 %v3116_v50, %v296_v62 }
 0xa99   :  { %v4511_v39 = vpop.f32.mrf.mxu1  ;;  %v4506_v54 = vpop.f32.mrf.mxu0 }
 0xa9a   :  { %v3151_v53 = vsel %vm962_vm2, %v3129_v51, -inf }
 0xa9b   :  { %3152 = vmax.xlane.f32.xlu1 %v3151_v53  ;;  %v3119_v52 = vpop.f32.mrf.mxu1 }
 0xa9d   :  { %v4512_v55 = vpop.f32.mrf.mxu1 }
 0xb08   :  { %v3132_v56 = vpop.xlane.xlu0 %3131 }
 0xb09   :  { %v3154_v57 = vsub.f32 %v3122_v61, %v3132_v56 }
 0xb0b   :  { %v3162_v5 = vmul.f32 1.442695, %v3154_v57 }
 0xb0c   :  { %v3135_v60 = vpop.xlane.xlu1 %3134 }
 0xb0d   :  { %4768 = vpow2.f32 %v3162_v5  ;;  %v3155_v59 = vsub.f32 %v3123_v7, %v3135_v60 }
 0xb0f   :  { %v3164_v63 = vmul.f32 1.442695, %v3155_v59 }
 0xb10   :  { %v3138_v2 = vpop.xlane.xlu1 %3137 }
 0xb11   :  { %4770 = vpow2.f32 %v3164_v63  ;;  %v3156_v3 = vsub.f32 %v3124_v1, %v3138_v2 }
 0xb13   :  { %v3166_v62 = vmul.f32 1.442695, %v3156_v3 }
 0xb14   :  { %v3141_v4 = vpop.xlane.xlu1 %3140 }
 0xb15   :  { %4772 = vpow2.f32 %v3166_v62  ;;  %v3157_v8 = vsub.f32 %v3125_v19, %v3141_v4 }
 0xb17   :  { %v3168_v14 = vmul.f32 1.442695, %v3157_v8 }
 0xb18   :  { %v3144_v46 = vpop.xlane.xlu0 %3143 }
 0xb19   :  { %4774 = vpow2.f32 %v3168_v14  ;;  %v3158_v15 = vsub.f32 %v3126_v26, %v3144_v46 }
 0xb1a   :  { %v4769_v58 = vpop.eup %4768 }
 0xb1b   :  { %v3178_v13 = vsel %vm962_vm2, %v4769_v58, 0.0  ;;  %v3170_v61 = vmul.f32 1.442695, %v3158_v15 }
 0xb1c   :  { %v3147_v16 = vpop.xlane.xlu1 %3146  ;;  %3179 = vadd.xlane.f32.xlu0 %v3178_v13 }
 0xb1d   :  { %v3159_v17 = vsub.f32 %v3127_v38, %v3147_v16  ;;  %4776 = vpow2.f32 %v3170_v61 }
 0xb1e   :  { %v4771_v7 = vpop.eup %4770 }
 0xb1f   :  { %v3172_v18 = vmul.f32 1.442695, %v3159_v17  ;;  %v3181_v1 = vsel %vm962_vm2, %v4771_v7, 0.0 }
 0xb20   :  { %3182 = vadd.xlane.f32.xlu1 %v3181_v1  ;;  %v3150_v21 = vpop.xlane.xlu0 %3149 }
 0xb21   :  { %4778 = vpow2.f32 %v3172_v18  ;;  %v3160_v19 = vsub.f32 %v3128_v11, %v3150_v21 }
 0xb22   :  { %v4773_v20 = vpop.eup %4772 }
 0xb23   :  { %v3174_v23 = vmul.f32 1.442695, %v3160_v19  ;;  %v3184_v24 = vsel %vm962_vm2, %v4773_v20, 0.0 }
 0xb24   :  { %v3153_v22 = vpop.xlane.xlu1 %3152  ;;  %3185 = vadd.xlane.f32.xlu0 %v3184_v24 }
 0xb25   :  { %v3161_v25 = vsub.f32 %v3129_v51, %v3153_v22  ;;  %4780 = vpow2.f32 %v3174_v23 }
 0xb26   :  { %v4775_v26 = vpop.eup %4774 }
 0xb27   :  { %v3176_v27 = vmul.f32 1.442695, %v3161_v25  ;;  %v3187_v29 = vsel %vm962_vm2, %v4775_v26, 0.0 }
 0xb28   :  { %3188 = vadd.xlane.f32.xlu1 %v3187_v29 }
 0xb29   :  { %4782 = vpow2.f32 %v3176_v27 }
 0xb2a   :  { %v4777_v32 = vpop.eup %4776 }
 0xb2b   :  { %v3190_v35 = vsel %vm962_vm2, %v4777_v32, 0.0 }
 0xb2c   :  { %3191 = vadd.xlane.f32.xlu1 %v3190_v35 }
 0xb2e   :  { %v4779_v38 = vpop.eup %4778 }
 0xb2f   :  { %v3193_v42 = vsel %vm962_vm2, %v4779_v38, 0.0 }
 0xb30   :  { %3194 = vadd.xlane.f32.xlu1 %v3193_v42 }
 0xb32   :  { %v4781_v43 = vpop.eup %4780 }
 0xb33   :  { %v3196_v44 = vsel %vm962_vm2, %v4781_v43, 0.0 }
 0xb34   :  { %3197 = vadd.xlane.f32.xlu1 %v3196_v44 }
 0xb36   :  { %v4783_v45 = vpop.eup %4782 }
 0xb37   :  { %v3199_v48 = vsel %vm962_vm2, %v4783_v45, 0.0 }
 0xb38   :  { %3200 = vadd.xlane.f32.xlu1 %v3199_v48 }
 0xb51   :  { %2586 = vxpose.xlu0.b32.start [1/2] (short) (narrow) %v5722_v47, 32 }
 0xb55   :  { %2587 = vxpose.xlu0.b32.end [2/2] (short) (narrow) %v2248_v49, 32 }
 0xba5   :  { %v3180_v11 = vpop.xlane.xlu0 %3179 }
 0xba6   :  { %4784 = vrcp.f32 %v3180_v11 }
 0xba9   :  { %v3183_v31 = vpop.xlane.xlu1 %3182 }
 0xbaa   :  { %4786 = vrcp.f32 %v3183_v31 }
 0xbad   :  { %v3186_v37 = vpop.xlane.xlu0 %3185 }
 0xbae   :  { %4788 = vrcp.f32 %v3186_v37 }
 0xbb1   :  { %v3189_v50 = vpop.xlane.xlu1 %3188 }
 0xbb2   :  { %4790 = vrcp.f32 %v3189_v50 }
 0xbb3   :  { %v4785_v10 = vpop.eup %4784 }
 0xbb4   :  { %v3218_v51 = vmul.f32 %v4785_v10, %v4769_v58  ;;  %v3614_v10 = vld [vmem:[#allocation22] sm:$0xf] }
 0xbb5   :  { %v3192_v12 = vpop.xlane.xlu1 %3191 }
 0xbb6   :  { %v3226_v39 = vpack.c.bf16 %v3218_v51, %v3218_v51  ;;  %4792 = vrcp.f32 %v3192_v12  ;;  %v3622_v51 = vsel %vm1455_vm4, %v3614_v10, 0  ;;  %v3615_v12 = vld [vmem:[#allocation22 + $0x4] sm:$0xf] }
 0xbb7   :  { %v4787_v53 = vpop.eup %4786 }
 0xbb8   :  { %3234 = vst.msk [vmem:[#allocation29] sm:$0xf] %vm1443_vm3, %v3226_v39  ;;  %v3219_v47 = vmul.f32 %v4787_v53, %v4771_v7 }
 0xbb9   :  { %v3195_v54 = vpop.xlane.xlu1 %3194 }
 0xbba   :  { %v3227_v40 = vpack.c.bf16 %v3219_v47, %v3219_v47  ;;  %4794 = vrcp.f32 %v3195_v54  ;;  %v3616_v54 = vld [vmem:[#allocation22 + $0x8] sm:$0xf] }
 0xbbb   :  { %v4789_v6 = vpop.eup %4788 }
 0xbbc   :  { %3235 = vst.msk [vmem:[#allocation29 + $0x4] sm:$0xf] %vm1443_vm3, %v3227_v40  ;;  %v3220_v52 = vmul.f32 %v4789_v6, %v4773_v20 }
 0xbbd   :  { %v3198_v55 = vpop.xlane.xlu1 %3197 }
 0xbbe   :  { %4796 = vrcp.f32 %v3198_v55  ;;  %v3228_v56 = vpack.c.bf16 %v3220_v52, %v3220_v52  ;;  %v3716_v55 = vsel %vm1455_vm4, %v3616_v54, 0 }
 0xbbf   :  { %v4791_v57 = vpop.eup %4790 }
 0xbc0   :  { %3236 = vst.msk [vmem:[#allocation29 + $0x8] sm:$0xf] %vm1443_vm3, %v3228_v56  ;;  %v3221_v5 = vmul.f32 %v4791_v57, %v4775_v26 }
 0xbc1   :  { %v3201_v60 = vpop.xlane.xlu1 %3200 }
 0xbc2   :  { %4798 = vrcp.f32 %v3201_v60  ;;  %v3229_v59 = vpack.c.bf16 %v3221_v5, %v3221_v5 }
 0xbc3   :  { %v4793_v63 = vpop.eup %4792 }
 0xbc4   :  { %3237 = vst.msk [vmem:[#allocation29 + $0xc] sm:$0xf] %vm1443_vm3, %v3229_v59  ;;  %v3222_v2 = vmul.f32 %v4793_v63, %v4777_v32 }
 0xbc6   :  { %v3230_v3 = vpack.c.bf16 %v3222_v2, %v3222_v2  ;;  %v3617_v2 = vld [vmem:[#allocation22 + $0xc] sm:$0xf] }
 0xbc7   :  { %v4795_v62 = vpop.eup %4794 }
 0xbc8   :  { %3238 = vst.msk [vmem:[#allocation29 + $0x10] sm:$0xf] %vm1443_vm3, %v3230_v3  ;;  %v3223_v4 = vmul.f32 %v4795_v62, %v4779_v38 }
 0xbca   :  { %v5790_v8 = vpack.c.bf16 %v3223_v4, %v3223_v4 }
 0xbcb   :  { %v4797_v14 = vpop.eup %4796 }
 0xbcc   :  { %3239 = vst.msk [vmem:[#allocation29 + $0x14] sm:$0xf] %vm1443_vm3, %v5790_v8  ;;  %v3224_v46 = vmul.f32 %v4797_v14, %v4781_v43 }
 0xbcd   :  { %v2602_v58 = vpop.trf.xlu0 }
 0xbce   :  { %2618 = vxpose.xlu1.b32.start.end [1/1] (short) (narrow) %v2602_v58, 16  ;;  %v5794_v15 = vpack.c.bf16 %v3224_v46, %v3224_v46 }
 0xbcf   :  { %v4799_v13 = vpop.eup %4798 }
 0xbd0   :  { %3240 = vst.msk [vmem:[#allocation29 + $0x18] sm:$0xf] %vm1443_vm3, %v5794_v15  ;;  %v3225_v61 = vmul.f32 %v4799_v13, %v4783_v45 }
 0xbd1   :  { %v2603_v16 = vpop.trf.xlu0 }
 0xbd2   :  { %2650 = vxpose.xlu0.b32.start.end [1/1] (short) (narrow) %v2603_v16, 16  ;;  %v3233_v17 = vpack.c.bf16 %v3225_v61, %v3225_v61 }
 0xbd4   :  { %3241 = vst.msk [vmem:[#allocation29 + $0x1c] sm:$0xf] %vm1443_vm3, %v3233_v17 }
 0xbd5   :  { %v2604_v7 = vpop.trf.xlu0 }
 0xbd7   :  { %2682 = vxpose.xlu0.b32.start.end [1/1] (short) (narrow) %v2604_v7, 16 }
 0xbd9   :  { %v2605_v18 = vpop.trf.xlu0 }
 0xbdc   :  { %2714 = vxpose.xlu0.b32.start.end [1/1] (short) (narrow) %v2605_v18, 16 }
 0xc4a   :  { %v2634_v1 = vpop.trf.xlu1 }
 0xc4b   :  { %v2746_v21 = vpack.c.bf16 %v2634_v1, %v2634_v1 }
 0xc4d   :  { %v3246_v19 = vsel %vm1455_vm4, %v2746_v21, 0 }
 0xc4e   :  { %4514 = vmatpush3.bf16.msra.mxu0 %v3246_v19  ;;  %v2635_v20 = vpop.trf.xlu1  ;;  %v2666_v23 = vpop.trf.xlu0 }
 0xc4f   :  { %v2747_v22 = vpack.c.bf16 %v2635_v20, %v2635_v20  ;;  %v2748_v24 = vpack.c.bf16 %v2666_v23, %v2666_v23  ;;  %4525 = vmatprep.subr.bf16.mxu0 %v5221_v28 }
 0xc51   :  { %v3292_v25 = vsel %vm1455_vm4, %v2747_v22, 0  ;;  %4516 = vmatmul.mubr.msk.bf16.vlgmr.msra.gmra.mxu0 %vm962_vm2, %v3226_v39  ;;  %v3338_v26 = vsel %vm1455_vm4, %v2748_v24, 0  ;;  %v3669_v39 = vsel %vm1455_vm4, %v3615_v12, 0 }
 0xc52   :  { %4520 = vmatpush3.bf16.msra.mxu1 %v3292_v25  ;;  %4526 = vmatpush3.bf16.msra.mxu0 %v3338_v26  ;;  %v2667_v27 = vpop.trf.xlu0 }
 0xc53   :  { %v2749_v29 = vpack.c.bf16 %v2667_v27, %v2667_v27  ;;  %4527 = vmatprep.mubr.msk.bf16.mxu0 %vm5222_vm1, %v5221_v28  ;;  %4531 = vmatprep.subr.bf16.mxu1 %v5221_v28 }
 0xc54   :  { %4537 = vmatprep.subr.bf16.mxu0 %v5221_v28 }
 0xc55   :  { %4522 = vmatmul.mubr.msk.bf16.vlgmr.msra.gmra.mxu1 %vm962_vm2, %v3227_v40  ;;  %v3384_v32 = vsel %vm1455_vm4, %v2749_v29, 0 }
 0xc56   :  { %4532 = vmatpush3.bf16.msra.mxu1 %v3384_v32  ;;  %v2698_v35 = vpop.trf.xlu0  ;;  %4533 = vmatprep.mubr.msk.bf16.mxu1 %vm5222_vm1, %v5221_v28 }
 0xc57   :  { %v2750_v38 = vpack.c.bf16 %v2698_v35, %v2698_v35  ;;  %4543 = vmatprep.subr.bf16.mxu1 %v5221_v28 }
 0xc59   :  { %4528 = vmatmul.mubr.msk.bf16.vlgmr.msra.gmra.mxu0 %vm962_vm2, %v3228_v56  ;;  %v3430_v42 = vsel %vm1455_vm4, %v2750_v38, 0 }
 0xc5a   :  { %4538 = vmatpush3.bf16.msra.mxu0 %v3430_v42  ;;  %v2699_v43 = vpop.trf.xlu0  ;;  %4539 = vmatprep.mubr.msk.bf16.mxu0 %vm5222_vm1, %v5221_v28 }
 0xc5b   :  { %v2751_v44 = vpack.c.bf16 %v2699_v43, %v2699_v43  ;;  %4549 = vmatprep.subr.bf16.mxu0 %v5221_v28 }
 0xc5d   :  { %4534 = vmatmul.mubr.msk.bf16.vlgmr.msra.gmra.mxu1 %vm962_vm2, %v3229_v59  ;;  %v3476_v45 = vsel %vm1455_vm4, %v2751_v44, 0 }
 0xc5e   :  { %4544 = vmatpush3.bf16.msra.mxu1 %v3476_v45  ;;  %v2730_v48 = vpop.trf.xlu0  ;;  %4545 = vmatprep.mubr.msk.bf16.mxu1 %vm5222_vm1, %v5221_v28 }
 0xc5f   :  { %v2752_v49 = vpack.c.bf16 %v2730_v48, %v2730_v48  ;;  %4555 = vmatprep.subr.bf16.mxu1 %v5221_v28 }
 0xc61   :  { %4540 = vmatmul.mubr.msk.bf16.vlgmr.msra.gmra.mxu0 %vm962_vm2, %v3230_v3  ;;  %v3522_v11 = vsel %vm1455_vm4, %v2752_v49, 0 }
 0xc62   :  { %4550 = vmatpush3.bf16.msra.mxu0 %v3522_v11  ;;  %v2731_v31 = vpop.trf.xlu0  ;;  %4551 = vmatprep.mubr.msk.bf16.mxu0 %vm5222_vm1, %v5221_v28 }
 0xc63   :  { %v2753_v37 = vpack.c.bf16 %v2731_v31, %v2731_v31  ;;  %4561 = vmatprep.subr.bf16.mxu0 %v5221_v28 }
 0xc65   :  { %4546 = vmatmul.mubr.msk.bf16.vlgmr.msra.gmra.mxu1 %vm962_vm2, %v5790_v8  ;;  %v3568_v50 = vsel %vm1455_vm4, %v2753_v37, 0  ;;  %v3763_v8 = vsel %vm1455_vm4, %v3617_v2, 0 }
 0xc66   :  { %4556 = vmatpush3.bf16.msra.mxu1 %v3568_v50  ;;  %4557 = vmatprep.mubr.msk.bf16.mxu1 %vm5222_vm1, %v5221_v28 }
 0xc67   :  { %4567 = vmatprep.subr.bf16.mxu1 %v5221_v28 }
 0xc69   :  { %4552 = vmatmul.mubr.msk.bf16.vlgmr.msra.gmra.mxu0 %vm962_vm2, %v5794_v15 }
 0xc6a   :  { %4563 = vmatprep.mubr.msk.bf16.mxu0 %vm5222_vm1, %v5221_v28  ;;  %4562 = vmatpush3.bf16.msra.mxu0 %v3622_v51 }
 0xc6b   :  { %4573 = vmatprep.subr.bf16.mxu0 %v5221_v28 }
 0xc6d   :  { %4558 = vmatmul.mubr.msk.bf16.vlgmr.msra.gmra.mxu1 %vm962_vm2, %v3233_v17 }
 0xc6e   :  { %4569 = vmatprep.mubr.msk.bf16.mxu1 %vm5222_vm1, %v5221_v28  ;;  %4568 = vmatpush3.bf16.msra.mxu1 %v3669_v39 }
 0xc6f   :  { %4579 = vmatprep.subr.bf16.mxu1 %v5221_v28 }
 0xd11   :  { %v3282_v53 = vpop.f32.mrf.mxu0 }
 0xd13   :  { %v4517_v47 = vpop.f32.mrf.mxu0 }
 0xd15   :  { %v3285_v40 = vpop.f32.mrf.mxu0  ;;  %v3328_v6 = vpop.f32.mrf.mxu1 }
 0xd16   :  { %v3610_v52 = vpack.c.bf16 %v3328_v6, %v3282_v53 }
 0xd17   :  { %v4518_v56 = vpop.f32.mrf.mxu0  ;;  %v4523_v57 = vpop.f32.mrf.mxu1 }
 0xd18   :  { %4564 = vmatmul.mubr.msk.bf16.vlgmr.msra.gmra.mxu0 %vm962_vm2, %v3610_v52 }
 0xd19   :  { %v3331_v5 = vpop.f32.mrf.mxu1  ;;  %v3374_v60 = vpop.f32.mrf.mxu0  ;;  %4574 = vmatpush3.bf16.msra.mxu0 %v3716_v55  ;;  %4575 = vmatprep.mubr.msk.bf16.mxu0 %vm5222_vm1, %v5221_v28  ;;  %v4221_v55 = vld [vmem:[#allocation23] ss:$0 sm:$0xff] }
 0xd1a   :  { %4585 = vmatprep.subr.bf16.mxu0 %v5221_v28 }
 0xd1b   :  { %v4524_v59 = vpop.f32.mrf.mxu1  ;;  %v4529_v63 = vpop.f32.mrf.mxu0 }
 0xd1d   :  { %v3377_v3 = vpop.f32.mrf.mxu0  ;;  %v3420_v62 = vpop.f32.mrf.mxu1 }
 0xd1e   :  { %v3611_v4 = vpack.c.bf16 %v3420_v62, %v3374_v60 }
 0xd1f   :  { %v4530_v14 = vpop.f32.mrf.mxu0  ;;  %v4535_v46 = vpop.f32.mrf.mxu1 }
 0xd20   :  { %4570 = vmatmul.mubr.msk.bf16.vlgmr.msra.gmra.mxu1 %vm962_vm2, %v3611_v4 }
 0xd21   :  { %v3423_v58 = vpop.f32.mrf.mxu1  ;;  %v3466_v15 = vpop.f32.mrf.mxu0  ;;  %4580 = vmatpush3.bf16.msra.mxu1 %v3763_v8  ;;  %4581 = vmatprep.mubr.msk.bf16.mxu1 %vm5222_vm1, %v5221_v28 }
 0xd22   :  { %4593 = vmatprep.subr.bf16.mxu1 %v5221_v28 }
 0xd23   :  { %v4536_v13 = vpop.f32.mrf.mxu1  ;;  %v4541_v61 = vpop.f32.mrf.mxu0 }
 0xd25   :  { %v3469_v16 = vpop.f32.mrf.mxu0  ;;  %v3512_v17 = vpop.f32.mrf.mxu1 }
 0xd26   :  { %v3612_v7 = vpack.c.bf16 %v3512_v17, %v3466_v15 }
 0xd27   :  { %v4542_v18 = vpop.f32.mrf.mxu0  ;;  %v4547_v1 = vpop.f32.mrf.mxu1 }
 0xd28   :  { %4576 = vmatmul.mubr.msk.bf16.vlgmr.msra.gmra.mxu0 %vm962_vm2, %v3612_v7 }
 0xd29   :  { %v3515_v21 = vpop.f32.mrf.mxu1  ;;  %v3558_v19 = vpop.f32.mrf.mxu0  ;;  %4589 = vmatprep.mubr.msk.bf16.mxu0 %vm5222_vm1, %v5221_v28 }
 0xd2b   :  { %v4548_v20 = vpop.f32.mrf.mxu1  ;;  %v4553_v23 = vpop.f32.mrf.mxu0 }
 0xd2c   :  { %v4728_v20 = vld [vmem:[%s5967_s21 + $0x18] sm:$0xff]  }
 0xd2d   :  { %v3561_v22 = vpop.f32.mrf.mxu0  ;;  %v3604_v24 = vpop.f32.mrf.mxu1 }
 0xd2e   :  { %v3613_v25 = vpack.c.bf16 %v3604_v24, %v3558_v19  ;;  %v4727_v19 = vld [vmem:[%s5965_s19] sm:$0xff]  }
 0xd2f   :  { %v4554_v26 = vpop.f32.mrf.mxu0  ;;  %v4559_v27 = vpop.f32.mrf.mxu1 }
 0xd30   :  { %4582 = vmatmul.mubr.msk.bf16.vlgmr.msra.gmra.mxu1 %vm962_vm2, %v3613_v25 }
 0xd31   :  { %v3607_v29 = vpop.f32.mrf.mxu1  ;;  %4601 = vmatprep.mubr.msk.bf16.mxu1 %vm5222_vm1, %v5221_v28  ;;  %4594 = vmatpush3.bf16.msra.mxu1 %v4728_v20 }
 0xd32   :  { %4595 = vmatprep.subr.bf16.mxu1 %v5221_v28 }
 0xd33   :  { %v4560_v32 = vpop.f32.mrf.mxu1 }
 0xd34   :  { %v4222_v32 = vld [vmem:[#allocation25] ss:$0 sm:$0xff] }
 0xdd8   :  { %v3658_v35 = vpop.f32.mrf.mxu0 }
 0xdd9   :  { %v3806_v10 = vsel %vm368_vm0, %v3658_v35, 0.0 }
 0xdda   :  { %v4565_v38 = vpop.f32.mrf.mxu0 }
 0xddc   :  { %v3661_v42 = vpop.f32.mrf.mxu0 }
 0xddd   :  { %v3813_v40 = vsel %vm368_vm0, %v3661_v42, 0.0 }
 0xdde   :  { %v4566_v43 = vpop.f32.mrf.mxu0 }
 0xddf   :  { %v4223_v43 = vld [vmem:[%s5964_s18] ss:$0 sm:$0xff] }
 0xde0   :  { %v3705_v44 = vpop.f32.mrf.mxu1 }
 0xde1   :  { %v3807_v37 = vsel %vm368_vm0, %v3705_v44, 0.0 }
 0xde2   :  { %v4571_v45 = vpop.f32.mrf.mxu1  ;;  %v3808_v12 = vadd.f32 %v3807_v37, %v3806_v10  ;;  %v4730_v10 = vld [vmem:[%s5967_s21 + $0x8] sm:$0xff]  }
 0xde4   :  { %v3708_v48 = vpop.f32.mrf.mxu1 }
 0xde5   :  { %v3814_v53 = vsel %vm368_vm0, %v3708_v48, 0.0 }
 0xde6   :  { %v4572_v49 = vpop.f32.mrf.mxu1  ;;  %v3815_v56 = vadd.f32 %v3814_v53, %v3813_v40 }
 0xde8   :  { %v3752_v11 = vpop.f32.mrf.mxu0 }
 0xde9   :  { %v3809_v51 = vsel %vm368_vm0, %v3752_v11, 0.0 }
 0xdea   :  { %v4577_v31 = vpop.f32.mrf.mxu0  ;;  %v3810_v47 = vadd.f32 %v3809_v51, %v3808_v12  ;;  %v4731_v51 = vld [vmem:[%s5967_s21] sm:$0xff]  }
 0xdeb   :  { %v4224_v12 = vld [vmem:[%s5966_s20] ss:$0 sm:$0xff]  ;;  %s5223_s20 = smov [#allocation27]  }
 0xdec   :  { %v3755_v50 = vpop.f32.mrf.mxu0 }
 0xded   :  { %v3816_v6 = vsel %vm368_vm0, %v3755_v50, 0.0  ;;  %v4729_v50 = vld [vmem:[%s5967_s21 + $0x10] sm:$0xff]   ;;  %s4121_s21 = sshll.u32 %s5223_s20, 4  ;;  %s4122_s21 = int_to_ptr.vmem [resolvable:$true] %s4121_s21 }
 0xdee   :  { %v4578_v39 = vpop.f32.mrf.mxu0  ;;  %v3817_v60 = vadd.f32 %v3816_v6, %v3815_v56  ;;  %4596 = vmatpush3.bf16.msra.mxu1 %v4729_v50  ;;  %p5124_p6 = scmp.lt.s32.totalorder %s4122_s21, %s4122_s21 }
 0xdef   :  { %4597 = vmatprep.subr.bf16.mxu1 %v5221_v28 }
 0xdf0   :  { %v3799_v54 = vpop.f32.mrf.mxu1 }
 0xdf1   :  { %v3811_v52 = vsel %vm368_vm0, %v3799_v54, 0.0 }
 0xdf2   :  { %v3812_v57 = vadd.f32 %v3811_v52, %v3810_v47  ;;  %v4583_v5 = vpop.f32.mrf.mxu1  ;;  %4598 = vmatpush3.bf16.msra.mxu1 %v4730_v10 }
 0xdf3   :  { %4599 = vmatprep.subr.bf16.mxu1 %v5221_v28 }
 0xdf4   :  { %v3827_v59 = vadd.f32 %v4221_v55, %v3812_v57  ;;  %v3802_v63 = vpop.f32.mrf.mxu1 }
 0xdf5   :  { %v3818_v2 = vsel %vm368_vm0, %v3802_v63, 0.0 }
 0xdf6   :  { %v3819_v3 = vadd.f32 %v3818_v2, %v3817_v60  ;;  %v4584_v62 = vpop.f32.mrf.mxu1  ;;  %v3829_v4 = vadd.f32 %v3827_v59, %v5705_v33  ;;  %4600 = vmatpush3.bf16.msra.mxu1 %v4731_v51 }
 0xdf8   :  { %v3828_v8 = vadd.f32 %v4221_v55, %v3819_v3  ;;  %v3833_v14 = vsel %vm368_vm0, %v3829_v4, 0.0 }
 0xdf9   :  { %3834 = vadd.xlane.f32.xlu0 %v3833_v14 }
 0xdfa   :  { %v3830_v46 = vadd.f32 %v3828_v8, %v5708_v36  ;;  %v4726_v36 = vld [vmem:[%s5965_s19 + $0x8] sm:$0xff]  }
 0xdfb   :  { %4586 = vmatpush3.bf16.msra.mxu0 %v4726_v36 }
 0xdfc   :  { %v3836_v58 = vsel %vm368_vm0, %v3830_v46, 0.0  ;;  %4587 = vmatprep.subr.bf16.mxu0 %v5221_v28  ;;  %v4228_v28 = vld [vmem:[%s5968_s22] ss:$0 sm:$0xff]  ;;  %s5119_s22 = scalar_lea.vmem %s4122_s21, 512 }
 0xdfd   :  { %3837 = vadd.xlane.f32.xlu1 %v3836_v58  ;;  %p5120_p5 = scmp.ne.s32.totalorder %s4122_s21, %s5119_s22  ;;  %p5125_p7 = scmp.lt.s32.totalorder %s5119_s22, %s5119_s22 }
 0xdff   :  { %4588 = vmatpush3.bf16.msra.mxu0 %v4727_v19  ;;  %p5126_p8 = por %p5125_p7, %p5124_p6 }
 0xe01   :  { %p5127_p9 = pnand %p5126_p8, %p5120_p5 }
 0xe82   :  { %v3835_v15 = vpop.xlane.xlu0 %3834 }
 0xe83   :  { %v3839_v13 = vmul.f32 0.03125, %v3835_v15 }
 0xe85   :  { %v3841_v61 = vsub.f32 %v3829_v4, %v3839_v13 }
 0xe86   :  { %v3838_v16 = vpop.xlane.xlu1 %3837 }
 0xe87   :  { %v3840_v17 = vmul.f32 0.03125, %v3838_v16  ;;  %v3843_v7 = vmul.f32 %v3841_v61, %v3841_v61 }
 0xe89   :  { %v3842_v18 = vsub.f32 %v3830_v46, %v3840_v17  ;;  %v3845_v1 = vsel %vm368_vm0, %v3843_v7, 0.0 }
 0xe8a   :  { %3846 = vadd.xlane.f32.xlu1 %v3845_v1 }
 0xe8b   :  { %v3844_v33 = vmul.f32 %v3842_v18, %v3842_v18 }
 0xe8d   :  { %v3848_v21 = vsel %vm368_vm0, %v3844_v33, 0.0 }
 0xe8e   :  { %3849 = vadd.xlane.f32.xlu0 %v3848_v21 }
 0xf13   :  { %v3847_v23 = vpop.xlane.xlu1 %3846 }
 0xf14   :  { %v3851_v22 = vmul.f32 0.03125, %v3847_v23 }
 0xf16   :  { %v3853_v24 = vadd.f32 1e-05, %v3851_v22 }
 0xf17   :  { %v3850_v25 = vpop.xlane.xlu0 %3849 }
 0xf18   :  { %4800 = vrsqrt.f32 %v3853_v24  ;;  %v3852_v26 = vmul.f32 0.03125, %v3850_v25 }
 0xf1a   :  { %v3854_v27 = vadd.f32 1e-05, %v3852_v26 }
 0xf1c   :  { %4802 = vrsqrt.f32 %v3854_v27 }
 0xf25   :  { %v4801_v29 = vpop.eup %4800 }
 0xf26   :  { %v3857_v35 = vmul.f32 %v4801_v29, %v3841_v61 }
 0xf28   :  { %v3865_v38 = vmul.f32 %v4222_v32, %v3857_v35 }
 0xf29   :  { %v4803_v42 = vpop.eup %4802 }
 0xf2a   :  { %v3858_v44 = vmul.f32 %v4803_v42, %v3842_v18  ;;  %v3873_v48 = vadd.f32 %v4223_v43, %v3865_v38 }
 0xf2c   :  { %v3866_v45 = vmul.f32 %v4222_v32, %v3858_v44  ;;  %v3875_v11 = vmul.f32 %v3873_v48, %v5700_v0 }
 0xf2e   :  { %v3874_v49 = vadd.f32 %v4223_v43, %v3866_v45 }
 0xf30   :  { %v3876_v31 = vmul.f32 %v3874_v49, %v5702_v30 }
 0xf32   :  { %v3877_v37 = vpack.c.bf16 %v3876_v31, %v3875_v11 }
 0xf34   :  { %4590 = vmatmul.mubr.msk.bf16.vlgmr.msra.gmra.mxu0 %vm368_vm0, %v3877_v37 }
 0xff4   :  { %v3938_v39 = vpop.f32.mrf.mxu0 }
 0xff5   :  { %v3939_v47 = vadd.f32 %v4224_v12, %v3938_v39 }
 0xff6   :  { %v4591_v53 = vpop.f32.mrf.mxu0 }
 0xff7   :  { %v3945_v52 = vmax.f32 %v3939_v47, 0.0 }
 0xff8   :  { %v3941_v54 = vpop.f32.mrf.mxu0 }
 0xff9   :  { %v3942_v40 = vadd.f32 %v4224_v12, %v3941_v54 }
 0xffa   :  { %v4592_v6 = vpop.f32.mrf.mxu0 }
 0xffb   :  { %v3946_v55 = vmax.f32 %v3942_v40, 0.0 }
 0xffd   :  { %v3947_v56 = vpack.c.bf16 %v3946_v55, %v3945_v52 }
 0xfff   :  { %4602 = vmatmul.mubr.msk.bf16.vlgmr.msra.gmra.mxu1 %vm3987_vm5, %v3947_v56 }
0x10bf   :  { %v4025_v57 = vpop.f32.mrf.mxu1 }
0x10c0   :  { %v4026_v5 = vadd.f32 %v4228_v28, %v4025_v57 }
0x10c1   :  { %v4603_v60 = vpop.f32.mrf.mxu1 }
0x10c2   :  { %v4032_v59 = vadd.f32 %v4026_v5, %v3875_v11 }
0x10c3   :  { %v4028_v63 = vpop.f32.mrf.mxu1 }
0x10c4   :  { %v4029_v2 = vadd.f32 %v4228_v28, %v4028_v63  ;;  %v4036_v3 = vsel %vm368_vm0, %v4032_v59, 0.0 }
0x10c5   :  { %4037 = vadd.xlane.f32.xlu1 %v4036_v3  ;;  %v4604_v62 = vpop.f32.mrf.mxu1 }
0x10c6   :  { %v4033_v4 = vadd.f32 %v4029_v2, %v3876_v31 }
0x10c8   :  { %v4039_v8 = vsel %vm368_vm0, %v4033_v4, 0.0 }
0x10c9   :  { %4040 = vadd.xlane.f32.xlu0 %v4039_v8 }
0x114e   :  { %v4038_v14 = vpop.xlane.xlu1 %4037 }
0x114f   :  { %v4042_v46 = vmul.f32 0.03125, %v4038_v14 }
0x1151   :  { %v4044_v58 = vsub.f32 %v4032_v59, %v4042_v46 }
0x1152   :  { %v4041_v15 = vpop.xlane.xlu0 %4040 }
0x1153   :  { %v4043_v13 = vmul.f32 0.03125, %v4041_v15  ;;  %v4046_v61 = vmul.f32 %v4044_v58, %v4044_v58 }
0x1155   :  { %v4045_v16 = vsub.f32 %v4033_v4, %v4043_v13  ;;  %v4048_v17 = vsel %vm368_vm0, %v4046_v61, 0.0 }
0x1156   :  { %4049 = vadd.xlane.f32.xlu1 %v4048_v17 }
0x1157   :  { %v4047_v7 = vmul.f32 %v4045_v16, %v4045_v16 }
0x1159   :  { %v4051_v18 = vsel %vm368_vm0, %v4047_v7, 0.0 }
0x115a   :  { %4052 = vadd.xlane.f32.xlu0 %v4051_v18 }
0x115b   :  { %5130 = shalt.err (!%p5127_p9)
}
0x115c   :  { %4127 = dma.vmem_to_hbm [thread:$0]  %s4122_s21, 512, %s5972_s26, [#allocation28], %s6008_s28, %s6008_s28, %s5207_s0  }
0x115d   :  { %s5224_s8 = smov [#allocation29]  }
0x115e   :  { %s4133_s10 = sshll.u32 %s5224_s8, 4  ;;  %s4134_s10 = int_to_ptr.vmem [resolvable:$true] %s4133_s10 }
0x115f   :  { %s5139_s6 = scalar_lea.vmem %s4134_s10, 512  ;;  %p5144_p11 = scmp.lt.s32.totalorder %s4134_s10, %s4134_s10 }
0x1160   :  { %p5140_p10 = scmp.ne.s32.totalorder %s4134_s10, %s5139_s6  ;;  %p5145_p12 = scmp.lt.s32.totalorder %s5139_s6, %s5139_s6 }
0x1162   :  { %p5146_p13 = por %p5145_p12, %p5144_p11 }
0x1164   :  { %p5147_p0 = pnand %p5146_p13, %p5140_p10 }
0x1166   :  { %5150 = shalt.err (!%p5147_p0)
}
0x1167   :  { %4139 = dma.vmem_to_hbm [thread:$0]  %s4134_s10, 512, %s5973_s27, [#allocation28], %s6008_s28, %s6008_s28, %s5207_s0   ;;  %v322_v1 = vsub.s32 3, %v5456_v9  ;;  %v4816_v33 = vld [vmem:[#allocation10] sm:$0xf]  ;;  %v4817_v53 = vld [vmem:[#allocation2] sm:$0xff] }
0x1168   :  { %v4235_v44 = vld [vmem:[%s5970_s24] ss:$0 sm:$0xff]  ;;  %v4818_v52 = vld [vmem:[#allocation2 + $0x8] sm:$0xff] }
0x1169   :  { %v323_v21 = vrot.slane %v4816_v33, %v322_v1 }
0x116b   :  { %v452_v36 = vadd.f32 %v5529_v34, %v323_v21  ;;  %v456_v20 = vadd.f32 %v5535_v41, %v323_v21  ;;  %v4234_v41 = vld [vmem:[%s5969_s23] ss:$0 sm:$0xff]  ;;  %s5225_s23 = smov [#allocation26]  }
0x116c   :  { %s4109_s24 = sshll.u32 %s5225_s23, 4  ;;  %s4110_s24 = int_to_ptr.vmem [resolvable:$true] %s4109_s24 }
0x116d   :  { %v4236_v19 = vmul.f32 -1.442695, %v452_v36  ;;  %v4237_v23 = vmul.f32 -1.442695, %v456_v20  ;;  %s5159_s19 = scalar_lea.vmem %s4110_s24, 256  ;;  %p5164_p2 = scmp.lt.s32.totalorder %s4110_s24, %s4110_s24 }
0x116e   :  { %p5160_p1 = scmp.ne.s32.totalorder %s4110_s24, %s5159_s19  ;;  %p5165_p3 = scmp.lt.s32.totalorder %s5159_s19, %s5159_s19 }
0x116f   :  { %4804 = vpow2.f32 %v4236_v19 }
0x1170   :  { %4806 = vpow2.f32 %v4237_v23  ;;  %p5166_p4 = por %p5165_p3, %p5164_p2 }
0x1172   :  { %p5167_p5 = pnand %p5166_p4, %p5160_p1 }
0x117c   :  { %v4805_v22 = vpop.eup %4804 }
0x117d   :  { %v4086_v26 = vadd.f32 1.0, %v4805_v22  ;;  %v4807_v29 = vpop.eup %4806 }
0x117e   :  { %v4087_v9 = vadd.f32 1.0, %v4807_v29 }
0x11df   :  { %v4050_v24 = vpop.xlane.xlu1 %4049 }
0x11e0   :  { %v4054_v25 = vmul.f32 0.03125, %v4050_v24 }
0x11e2   :  { %v4056_v27 = vadd.f32 1e-05, %v4054_v25 }
0x11e3   :  { %v4053_v32 = vpop.xlane.xlu0 %4052 }
0x11e4   :  { %4808 = vrsqrt.f32 %v4056_v27  ;;  %v4055_v35 = vmul.f32 0.03125, %v4053_v32 }
0x11e5   :  { %4810 = vrcp.f32 %v4086_v26 }
0x11e6   :  { %v4057_v38 = vadd.f32 1e-05, %v4055_v35 }
0x11e8   :  { %4812 = vrsqrt.f32 %v4057_v38 }
0x11e9   :  { %4814 = vrcp.f32 %v4087_v9 }
0x11f1   :  { %v4809_v34 = vpop.eup %4808 }
0x11f2   :  { %v4060_v42 = vmul.f32 %v4809_v34, %v4044_v58  ;;  %v4811_v43 = vpop.eup %4810 }
0x11f3   :  { %v4094_v31 = vsub.f32 1.0, %v4811_v43 }
0x11f4   :  { %v4068_v45 = vmul.f32 %v4234_v41, %v4060_v42 }
0x11f5   :  { %v4813_v48 = vpop.eup %4812  ;;  %v4096_v47 = vmul.f32 %v4817_v53, %v4094_v31 }
0x11f6   :  { %v4061_v49 = vmul.f32 %v4813_v48, %v4045_v16  ;;  %v4076_v11 = vadd.f32 %v4235_v44, %v4068_v45  ;;  %v4815_v37 = vpop.eup %4814 }
0x11f7   :  { %v4095_v39 = vsub.f32 1.0, %v4815_v37 }
0x11f8   :  { %v4069_v50 = vmul.f32 %v4234_v41, %v4061_v49  ;;  %v4078_v10 = vmul.f32 %v4076_v11, %v5700_v0 }
0x11f9   :  { %v4097_v55 = vmul.f32 %v4818_v52, %v4095_v39 }
0x11fa   :  { %v4077_v51 = vadd.f32 %v4235_v44, %v4069_v50  ;;  %v4092_v12 = vmul.f32 %v4811_v43, %v4078_v10 }
0x11fc   :  { %v4079_v54 = vmul.f32 %v4077_v51, %v5702_v30  ;;  %v4098_v40 = vadd.f32 %v4096_v47, %v4092_v12 }
0x11fe   :  { %v4093_v6 = vmul.f32 %v4815_v37, %v4079_v54  ;;  %v4100_v56 = vmul.f32 %v4098_v40, %v5700_v0 }
0x1200   :  { %v4099_v28 = vadd.f32 %v4097_v55, %v4093_v6  ;;  %4102 = vst.msk [vmem:[#allocation26] sm:$0xff] %vm368_vm0, %v4100_v56 }
0x1202   :  { %v4101_v57 = vmul.f32 %v4099_v28, %v5702_v30 }
0x1204   :  { %4103 = vst.msk [vmem:[#allocation26 + $0x8] sm:$0xff] %vm368_vm0, %v4101_v57 }
0x1205   :  { %5170 = shalt.err (!%p5167_p5)
}
0x1206   :  { %4115 = dma.vmem_to_hbm [thread:$0]  %s4110_s24, 256, %s5971_s25, [#allocation4], %s6001_s29, %s6001_s29, %s6000_s14  }
0x1207   :  { %5195 = dma.done.wait [#allocation4], 256  }
0x1208   :  { %5196 = vsyncadd [#allocation4], 4294967040 }
0x1209   :  { %5197 = dma.done.wait [#allocation28], 1024  }
0x120a   :  { %5198 = vsyncadd [#allocation28], 4294966272 }
0x120b   :  { %4149 = vsyncpa [#allocation3], 1 }
0x120c   :  { %4150 = vsyncpa [#allocation6], 1 }
0x120d   :  { %4151 = vsyncpa [#allocation9], 1 }
0x120e   :  { %4152 = vsyncpa [#allocation12], 1 }
0x120f   :  { %4153 = vsyncpa [#allocation15], 1 }
0x1210   :  { %4154 = vsyncpa [#allocation18], 1 }
0x1211   :  { %4155 = vsyncpa [#allocation21], 1 }
0x1212   :  { %4156 = vsyncpa [#allocation24], 1 }
0x1213   :  { %4157 = vsyncpa [#allocation4], 1 }
0x1214   :  { %4158 = vsyncpa [#allocation28], 1 }

</bundles_post_ra>
